<compile_context>
chip_gen: v7x
topology: tpu7x:2x2x1
jax: 0.10.0
libtpu: 0.0.40
codegen_flags: <defaults>
</compile_context>

<pallas_src>
import jax
import jax.numpy as jnp
from jax import lax
from jax.experimental import pallas as pl
from jax.experimental.pallas import tpu as pltpu


# ----------------------------------------------------------------------------
# Pallas kernel: single (im2col) matmul + [2x2 max-pool] + bias + ReLU
# ----------------------------------------------------------------------------
def _conv_pool_kernel(x_ref, w_ref, b_ref, o_ref):
    # x_ref: (P, bm, K) bf16  phase-major pre-pool im2col rows
    #                         (P=1 -> no pool, P=4 -> the four 2x2 pool phases)
    # w_ref: (K, C)     bf16  conv weight, HWIO-flattened, zero-padded to 128s
    # b_ref: (1, C)     f32   conv bias, zero-padded
    # o_ref: (bm, C)          relu(max_p(x_p @ w) + b), lane-dense (C % 128 == 0)
    p, bm, k = x_ref.shape
    # Fold the phase axis into M: ONE big MXU matmul instead of P small ones.
    x = x_ref[...].reshape(p * bm, k)
    y = jnp.dot(x, w_ref[...], preferred_element_type=jnp.float32)  # (P*bm, C)
    if p > 1:
        # 2x2 max-pool: balanced max tree over the P phase chunks (chunk starts
        # are multiples of bm -> aligned, unmasked slices; VPU work only).
        chunks = [y[i * bm:(i + 1) * bm] for i in range(p)]
        while len(chunks) > 1:
            nxt = [jnp.maximum(chunks[i], chunks[i + 1])
                   for i in range(0, len(chunks) - 1, 2)]
            if len(chunks) % 2:
                nxt.append(chunks[-1])
            chunks = nxt
        y = chunks[0]
    o_ref[...] = jnp.maximum(y + b_ref[...], 0.0).astype(o_ref.dtype)


def _fused_conv_pool(x_stacked, w, b, *, out_dtype, block_m=512):
    """x_stacked: (P, M, K) bf16 phase-major im2col rows; w: (K, C) bf16;
    b: (1, C) f32  ->  (M, C) out_dtype = relu(max_over_P(x_p @ w) + b)."""
    P, M, K = x_stacked.shape
    Kw, C = w.shape
    assert Kw == K and K % 128 == 0 and C % 128 == 0
    assert M % 8 == 0, "pooled row count must be a multiple of 8 (even H, W)"
    # Single grid step at these shapes; otherwise pick the largest
    # multiple-of-8 divisor of M <= block_m (no masked last tile needed).
    bm = M if M <= block_m else block_m
    while M % bm:
        bm -= 8
    return pl.pallas_call(
        _conv_pool_kernel,
        out_shape=jax.ShapeDtypeStruct((M, C), out_dtype),
        grid_spec=pltpu.PrefetchScalarGridSpec(
            num_scalar_prefetch=0,
            grid=(M // bm,),
            in_specs=[
                pl.BlockSpec((P, bm, K), lambda i: (0, i, 0)),
                pl.BlockSpec((K, C), lambda i: (0, 0)),
                pl.BlockSpec((1, C), lambda i: (0, 0)),
            ],
            out_specs=pl.BlockSpec((bm, C), lambda i: (i, 0)),
        ),
        compiler_params=pltpu.CompilerParams(
            dimension_semantics=("parallel",)),
    )(x_stacked, w, b)


# ----------------------------------------------------------------------------
# Wrapper-side layout glue (pure JAX)
# ----------------------------------------------------------------------------
def _pad_last(a, mult=128):
    p = (-a.shape[-1]) % mult
    if p:
        a = jnp.pad(a, [(0, 0)] * (a.ndim - 1) + [(0, p)])
    return a


def _im2col3x3(x_nhwc, *, pool):
    """3x3 / stride 1 / pad 1 patches, phase-major when fused with 2x2 pool.

    pool=False -> (1, N*H*W, 9*C)            rows in (n, h, w) order
    pool=True  -> (4, N*(H//2)*(W//2), 9*C)  phase (pi, pj) holds the rows of
                  pre-pool positions (2*h2+pi, 2*w2+pj), each in (n, h2, w2)
                  order.  Built directly from the padded activation (no
                  intermediate full-resolution im2col materialization).
    Patch channel order is (kh, kw, c)."""
    N, H, W, C = x_nhwc.shape
    xp = jnp.pad(x_nhwc, ((0, 0), (1, 1), (1, 1), (0, 0)))
    if not pool:
        taps = [xp[:, kh:kh + H, kw:kw + W, :]
                for kh in range(3) for kw in range(3)]
        return jnp.concatenate(taps, axis=-1).reshape(1, N * H * W, 9 * C)
    Ho, Wo = H // 2, W // 2
    phases = []
    for pi in range(2):
        for pj in range(2):
            taps = [xp[:, pi + kh:pi + kh + H:2, pj + kw:pj + kw + W:2, :]
                    for kh in range(3) for kw in range(3)]
            phases.append(
                jnp.concatenate(taps, axis=-1).reshape(N * Ho * Wo, 9 * C))
    return jnp.stack(phases, axis=0)


def _prep_conv_w(w_oihw):
    """torch (Cout, Cin, 3, 3) -> (Kpad, Cpad) bf16: HWIO-flattened, K and Cout
    zero-padded to multiples of 128 (aligned MXU feeds, lane-dense stores)."""
    cout = w_oihw.shape[0]
    w = jnp.transpose(w_oihw, (2, 3, 1, 0)).reshape(-1, cout)   # (9*Cin, Cout)
    kpad = (-w.shape[0]) % 128
    cpad = (-cout) % 128
    return jnp.pad(w, ((0, kpad), (0, cpad))).astype(jnp.bfloat16)


def _prep_bias(b):
    cpad = (-b.shape[0]) % 128
    return jnp.pad(b, (0, cpad)).reshape(1, -1).astype(jnp.float32)


def convert4x_forward(x_nchw, w1, b1, w2, b2, w3, b3):
    N, Cin, H, W = x_nchw.shape
    c2_real, c3_real = w2.shape[0], w3.shape[0]                  # 130, 4
    x = jnp.transpose(x_nchw, (0, 2, 3, 1)).astype(jnp.bfloat16)  # NHWC bf16

    # --- conv1 + ReLU (no pool) ----------------------------------------------
    cols1 = _pad_last(_im2col3x3(x, pool=False))                 # (1, 512, 128)
    y1 = _fused_conv_pool(cols1, _prep_conv_w(w1), _prep_bias(b1),
                          out_dtype=jnp.bfloat16)                # (512, 128)
    y1 = y1.reshape(N, H, W, -1)

    # --- conv2 + ReLU + MaxPool2d(2), fused ----------------------------------
    cols2 = _pad_last(_im2col3x3(y1, pool=True))                 # (4, 128, 1152)
    y2 = _fused_conv_pool(cols2, _prep_conv_w(w2), _prep_bias(b2),
                          out_dtype=jnp.bfloat16)                # (128, 256)
    H2, W2 = H // 2, W // 2
    # Drop conv2's zero channel padding BEFORE conv3's im2col so conv3 does not
    # contract over 9*126 all-zero columns (K: 2304 -> 1280).
    y2 = y2.reshape(N, H2, W2, -1)[..., :c2_real]                # (N, 8, 8, 130)

    # --- conv3 + ReLU + MaxPool2d(2), fused ----------------------------------
    cols3 = _pad_last(_im2col3x3(y2, pool=True))                 # (4, 32, 1280)
    y3 = _fused_conv_pool(cols3, _prep_conv_w(w3), _prep_bias(b3),
                          out_dtype=jnp.float32)                 # (32, 128)
    H4, W4 = H2 // 2, W2 // 2
    y3 = y3.reshape(N, H4, W4, -1)[..., :c3_real]                # (N, 4, 4, 4)
    return jnp.transpose(y3, (0, 3, 1, 2))                       # NCHW


# ----------------------------------------------------------------------------
# Pure-JAX reference matching the PyTorch forward (f32, HIGHEST precision)
# ----------------------------------------------------------------------------
def convert4x_reference(x_nchw, w1, b1, w2, b2, w3, b3):
    def conv_relu(x_nhwc, w_oihw, b):
        w_hwio = jnp.transpose(w_oihw, (2, 3, 1, 0))
        y = lax.conv_general_dilated(
            x_nhwc, w_hwio, window_strides=(1, 1), padding=((1, 1), (1, 1)),
            dimension_numbers=("NHWC", "HWIO", "NHWC"),
            precision=lax.Precision.HIGHEST)
        return jnp.maximum(y + b, 0.0)

    def pool2(x):
        n, h, w, c = x.shape
        return x.reshape(n, h // 2, 2, w // 2, 2, c).max(axis=(2, 4))

    x = jnp.transpose(x_nchw, (0, 2, 3, 1))
    y = conv_relu(x, w1, b1)
    y = pool2(conv_relu(y, w2, b2))
    y = pool2(conv_relu(y, w3, b3))
    return jnp.transpose(y, (0, 3, 1, 2))


if __name__ == "__main__":
    key = jax.random.PRNGKey(0)
    ks = jax.random.split(key, 7)
    N, Cin, H, W = 2, 4, 16, 16

    x = jax.random.normal(ks[0], (N, Cin, H, W), jnp.float32)

    def init_conv(kw, kb, cout, cin):
        fan = float(cin * 9)
        w = jax.random.uniform(kw, (cout, cin, 3, 3), jnp.float32, -1.0, 1.0) / jnp.sqrt(fan)
        b = jax.random.uniform(kb, (cout,), jnp.float32, -1.0, 1.0) / jnp.sqrt(fan)
        return w, b

    w1, b1 = init_conv(ks[1], ks[2], 128, Cin)
    w2, b2 = init_conv(ks[3], ks[4], 130, 128)
    w3, b3 = init_conv(ks[5], ks[6], 4, 130)

    out = jax.jit(convert4x_forward)(x, w1, b1, w2, b2, w3, b3)
    out = jax.block_until_ready(out)

    ref = convert4x_reference(x, w1, b1, w2, b2, w3, b3)
    assert out.shape == (N, 4, H // 4, W // 4)
    # Tolerance sized for bf16 activation/weight feeds with f32 accumulation
    # over three conv layers (K up to 1170): expected max |err| ~ 1e-3 here.
    assert jnp.allclose(out.astype(jnp.float32), ref, rtol=1e-2, atol=1e-2), \
        float(jnp.max(jnp.abs(out.astype(jnp.float32) - ref)))
    print("KERNEL_OK")
</pallas_src>

<mosaic_0001>
module attributes {stable_mosaic.version = 11 : i64} {
  func.func @_conv_pool_kernel(%arg0: i32, %arg1: memref<1x512x128xbf16, #tpu.memory_space<vmem>>, %arg2: memref<128x128xbf16, #tpu.memory_space<vmem>>, %arg3: memref<1x128xf32, #tpu.memory_space<vmem>>, %arg4: memref<512x128xbf16, #tpu.memory_space<vmem>>) attributes {dimension_semantics = [#tpu.dimension_semantics<parallel>], iteration_bounds = array<i64: 1>, scalar_prefetch = 0 : i64, scratch_operands = 0 : i64, tpu.core_type = #tpu.core_type<tc>, window_params = [{transform_indices = @transform_0, window_bounds = array<i64: 1, 512, 128>}, {pipeline_mode = #tpu.pipeline_mode<synchronous>, transform_indices = @transform_1, window_bounds = array<i64: 128, 128>}, {pipeline_mode = #tpu.pipeline_mode<synchronous>, transform_indices = @transform_2, window_bounds = array<i64: 1, 128>}, {transform_indices = @transform_3, window_bounds = array<i64: 512, 128>}]} {
    %c0 = arith.constant 0 : index
    %c0_0 = arith.constant 0 : index
    %c0_1 = arith.constant 0 : index
    %0 = vector.load %arg1[%c0, %c0_0, %c0_1] : memref<1x512x128xbf16, #tpu.memory_space<vmem>>, vector<1x512x128xbf16>
    %1 = vector.shape_cast %0 : vector<1x512x128xbf16> to vector<512x128xbf16>
    %c0_2 = arith.constant 0 : index
    %c0_3 = arith.constant 0 : index
    %2 = vector.load %arg2[%c0_2, %c0_3] : memref<128x128xbf16, #tpu.memory_space<vmem>>, vector<128x128xbf16>
    %cst = arith.constant dense<0.000000e+00> : vector<512x128xf32>
    %3 = tpu.matmul %1, %2, %cst {dimension_numbers = #tpu.dot_dimension_numbers<[1], [0], [0], [1], [0, 0, 1, 1], [], []>} : vector<512x128xbf16>, vector<128x128xbf16>, vector<512x128xf32> -> vector<512x128xf32>
    %c0_4 = arith.constant 0 : index
    %c0_5 = arith.constant 0 : index
    %4 = vector.load %arg3[%c0_4, %c0_5] : memref<1x128xf32, #tpu.memory_space<vmem>>, vector<1x128xf32>
    %5 = vector.broadcast %4 : vector<1x128xf32> to vector<512x128xf32>
    %6 = arith.addf %3, %5 : vector<512x128xf32>
    %cst_6 = arith.constant 0.000000e+00 : f32
    %7 = vector.broadcast %cst_6 : f32 to vector<512x128xf32>
    %8 = arith.maximumf %6, %7 : vector<512x128xf32>
    %9 = arith.truncf %8 : vector<512x128xf32> to vector<512x128xbf16>
    %c0_7 = arith.constant 0 : index
    %c0_8 = arith.constant 0 : index
    %10 = vector.load %arg4[%c0_7, %c0_8] : memref<512x128xbf16, #tpu.memory_space<vmem>>, vector<512x128xbf16>
    tpu.vector_store %arg4[%c0_7, %c0_8], %9 {strides = array<i32>} : memref<512x128xbf16, #tpu.memory_space<vmem>>, vector<512x128xbf16>,
    return
  }
  func.func @transform_0(%arg0: i32) -> (i32, i32, i32) {
    %c0_i32 = arith.constant 0 : i32
    %c0_i32_0 = arith.constant 0 : i32
    %c0_i32_1 = arith.constant 0 : i32
    return %c0_i32, %arg0, %c0_i32_0 : i32, i32, i32
  }
  func.func @transform_1(%arg0: i32) -> (i32, i32) {
    %c0_i32 = arith.constant 0 : i32
    %c0_i32_0 = arith.constant 0 : i32
    %c0_i32_1 = arith.constant 0 : i32
    return %c0_i32, %c0_i32_0 : i32, i32
  }
  func.func @transform_2(%arg0: i32) -> (i32, i32) {
    %c0_i32 = arith.constant 0 : i32
    %c0_i32_0 = arith.constant 0 : i32
    %c0_i32_1 = arith.constant 0 : i32
    return %c0_i32, %c0_i32_0 : i32, i32
  }
  func.func @transform_3(%arg0: i32) -> (i32, i32) {
    %c0_i32 = arith.constant 0 : i32
    %c0_i32_0 = arith.constant 0 : i32
    return %arg0, %c0_i32 : i32, i32
  }
}

module attributes {stable_mosaic.version = 11 : i64} {
  func.func @_conv_pool_kernel(%arg0: i32, %arg1: memref<4x128x1152xbf16, #tpu.memory_space<vmem>>, %arg2: memref<1152x256xbf16, #tpu.memory_space<vmem>>, %arg3: memref<1x256xf32, #tpu.memory_space<vmem>>, %arg4: memref<128x256xbf16, #tpu.memory_space<vmem>>) attributes {dimension_semantics = [#tpu.dimension_semantics<parallel>], iteration_bounds = array<i64: 1>, scalar_prefetch = 0 : i64, scratch_operands = 0 : i64, tpu.core_type = #tpu.core_type<tc>, window_params = [{transform_indices = @transform_0, window_bounds = array<i64: 4, 128, 1152>}, {pipeline_mode = #tpu.pipeline_mode<synchronous>, transform_indices = @transform_1, window_bounds = array<i64: 1152, 256>}, {pipeline_mode = #tpu.pipeline_mode<synchronous>, transform_indices = @transform_2, window_bounds = array<i64: 1, 256>}, {transform_indices = @transform_3, window_bounds = array<i64: 128, 256>}]} {
    %c0 = arith.constant 0 : index
    %c0_0 = arith.constant 0 : index
    %c0_1 = arith.constant 0 : index
    %0 = vector.load %arg1[%c0, %c0_0, %c0_1] : memref<4x128x1152xbf16, #tpu.memory_space<vmem>>, vector<4x128x1152xbf16>
    %1 = vector.shape_cast %0 : vector<4x128x1152xbf16> to vector<512x1152xbf16>
    %c0_2 = arith.constant 0 : index
    %c0_3 = arith.constant 0 : index
    %2 = vector.load %arg2[%c0_2, %c0_3] : memref<1152x256xbf16, #tpu.memory_space<vmem>>, vector<1152x256xbf16>
    %cst = arith.constant dense<0.000000e+00> : vector<512x256xf32>
    %3 = tpu.matmul %1, %2, %cst {dimension_numbers = #tpu.dot_dimension_numbers<[1], [0], [0], [1], [0, 0, 1, 1], [], []>} : vector<512x1152xbf16>, vector<1152x256xbf16>, vector<512x256xf32> -> vector<512x256xf32>
    %4 = vector.extract_strided_slice %3 {offsets = [0, 0], sizes = [128, 256], strides = [1, 1]} : vector<512x256xf32> to vector<128x256xf32>
    %5 = vector.extract_strided_slice %3 {offsets = [128, 0], sizes = [128, 256], strides = [1, 1]} : vector<512x256xf32> to vector<128x256xf32>
    %6 = vector.extract_strided_slice %3 {offsets = [256, 0], sizes = [128, 256], strides = [1, 1]} : vector<512x256xf32> to vector<128x256xf32>
    %7 = vector.extract_strided_slice %3 {offsets = [384, 0], sizes = [128, 256], strides = [1, 1]} : vector<512x256xf32> to vector<128x256xf32>
    %8 = arith.maximumf %4, %5 : vector<128x256xf32>
    %9 = arith.maximumf %6, %7 : vector<128x256xf32>
    %10 = arith.maximumf %8, %9 : vector<128x256xf32>
    %c0_4 = arith.constant 0 : index
    %c0_5 = arith.constant 0 : index
    %11 = vector.load %arg3[%c0_4, %c0_5] : memref<1x256xf32, #tpu.memory_space<vmem>>, vector<1x256xf32>
    %12 = vector.broadcast %11 : vector<1x256xf32> to vector<128x256xf32>
    %13 = arith.addf %10, %12 : vector<128x256xf32>
    %cst_6 = arith.constant 0.000000e+00 : f32
    %14 = vector.broadcast %cst_6 : f32 to vector<128x256xf32>
    %15 = arith.maximumf %13, %14 : vector<128x256xf32>
    %16 = arith.truncf %15 : vector<128x256xf32> to vector<128x256xbf16>
    %c0_7 = arith.constant 0 : index
    %c0_8 = arith.constant 0 : index
    %17 = vector.load %arg4[%c0_7, %c0_8] : memref<128x256xbf16, #tpu.memory_space<vmem>>, vector<128x256xbf16>
    tpu.vector_store %arg4[%c0_7, %c0_8], %16 {strides = array<i32>} : memref<128x256xbf16, #tpu.memory_space<vmem>>, vector<128x256xbf16>,
    return
  }
  func.func @transform_0(%arg0: i32) -> (i32, i32, i32) {
    %c0_i32 = arith.constant 0 : i32
    %c0_i32_0 = arith.constant 0 : i32
    %c0_i32_1 = arith.constant 0 : i32
    return %c0_i32, %arg0, %c0_i32_0 : i32, i32, i32
  }
  func.func @transform_1(%arg0: i32) -> (i32, i32) {
    %c0_i32 = arith.constant 0 : i32
    %c0_i32_0 = arith.constant 0 : i32
    %c0_i32_1 = arith.constant 0 : i32
    return %c0_i32, %c0_i32_0 : i32, i32
  }
  func.func @transform_2(%arg0: i32) -> (i32, i32) {
    %c0_i32 = arith.constant 0 : i32
    %c0_i32_0 = arith.constant 0 : i32
    %c0_i32_1 = arith.constant 0 : i32
    return %c0_i32, %c0_i32_0 : i32, i32
  }
  func.func @transform_3(%arg0: i32) -> (i32, i32) {
    %c0_i32 = arith.constant 0 : i32
    %c0_i32_0 = arith.constant 0 : i32
    return %arg0, %c0_i32 : i32, i32
  }
}

module attributes {stable_mosaic.version = 11 : i64} {
  func.func @_conv_pool_kernel(%arg0: i32, %arg1: memref<4x32x1280xbf16, #tpu.memory_space<vmem>>, %arg2: memref<1280x128xbf16, #tpu.memory_space<vmem>>, %arg3: memref<1x128xf32, #tpu.memory_space<vmem>>, %arg4: memref<32x128xf32, #tpu.memory_space<vmem>>) attributes {dimension_semantics = [#tpu.dimension_semantics<parallel>], iteration_bounds = array<i64: 1>, scalar_prefetch = 0 : i64, scratch_operands = 0 : i64, tpu.core_type = #tpu.core_type<tc>, window_params = [{transform_indices = @transform_0, window_bounds = array<i64: 4, 32, 1280>}, {pipeline_mode = #tpu.pipeline_mode<synchronous>, transform_indices = @transform_1, window_bounds = array<i64: 1280, 128>}, {pipeline_mode = #tpu.pipeline_mode<synchronous>, transform_indices = @transform_2, window_bounds = array<i64: 1, 128>}, {transform_indices = @transform_3, window_bounds = array<i64: 32, 128>}]} {
    %c0 = arith.constant 0 : index
    %c0_0 = arith.constant 0 : index
    %c0_1 = arith.constant 0 : index
    %0 = vector.load %arg1[%c0, %c0_0, %c0_1] : memref<4x32x1280xbf16, #tpu.memory_space<vmem>>, vector<4x32x1280xbf16>
    %1 = vector.shape_cast %0 : vector<4x32x1280xbf16> to vector<128x1280xbf16>
    %c0_2 = arith.constant 0 : index
    %c0_3 = arith.constant 0 : index
    %2 = vector.load %arg2[%c0_2, %c0_3] : memref<1280x128xbf16, #tpu.memory_space<vmem>>, vector<1280x128xbf16>
    %cst = arith.constant dense<0.000000e+00> : vector<128x128xf32>
    %3 = tpu.matmul %1, %2, %cst {dimension_numbers = #tpu.dot_dimension_numbers<[1], [0], [0], [1], [0, 0, 1, 1], [], []>} : vector<128x1280xbf16>, vector<1280x128xbf16>, vector<128x128xf32> -> vector<128x128xf32>
    %4 = vector.extract_strided_slice %3 {offsets = [0, 0], sizes = [32, 128], strides = [1, 1]} : vector<128x128xf32> to vector<32x128xf32>
    %5 = vector.extract_strided_slice %3 {offsets = [32, 0], sizes = [32, 128], strides = [1, 1]} : vector<128x128xf32> to vector<32x128xf32>
    %6 = vector.extract_strided_slice %3 {offsets = [64, 0], sizes = [32, 128], strides = [1, 1]} : vector<128x128xf32> to vector<32x128xf32>
    %7 = vector.extract_strided_slice %3 {offsets = [96, 0], sizes = [32, 128], strides = [1, 1]} : vector<128x128xf32> to vector<32x128xf32>
    %8 = arith.maximumf %4, %5 : vector<32x128xf32>
    %9 = arith.maximumf %6, %7 : vector<32x128xf32>
    %10 = arith.maximumf %8, %9 : vector<32x128xf32>
    %c0_4 = arith.constant 0 : index
    %c0_5 = arith.constant 0 : index
    %11 = vector.load %arg3[%c0_4, %c0_5] : memref<1x128xf32, #tpu.memory_space<vmem>>, vector<1x128xf32>
    %12 = vector.broadcast %11 : vector<1x128xf32> to vector<32x128xf32>
    %13 = arith.addf %10, %12 : vector<32x128xf32>
    %cst_6 = arith.constant 0.000000e+00 : f32
    %14 = vector.broadcast %cst_6 : f32 to vector<32x128xf32>
    %15 = arith.maximumf %13, %14 : vector<32x128xf32>
    %c0_7 = arith.constant 0 : index
    %c0_8 = arith.constant 0 : index
    %16 = vector.load %arg4[%c0_7, %c0_8] : memref<32x128xf32, #tpu.memory_space<vmem>>, vector<32x128xf32>
    tpu.vector_store %arg4[%c0_7, %c0_8], %15 {strides = array<i32>} : memref<32x128xf32, #tpu.memory_space<vmem>>, vector<32x128xf32>,
    return
  }
  func.func @transform_0(%arg0: i32) -> (i32, i32, i32) {
    %c0_i32 = arith.constant 0 : i32
    %c0_i32_0 = arith.constant 0 : i32
    %c0_i32_1 = arith.constant 0 : i32
    return %c0_i32, %arg0, %c0_i32_0 : i32, i32, i32
  }
  func.func @transform_1(%arg0: i32) -> (i32, i32) {
    %c0_i32 = arith.constant 0 : i32
    %c0_i32_0 = arith.constant 0 : i32
    %c0_i32_1 = arith.constant 0 : i32
    return %c0_i32, %c0_i32_0 : i32, i32
  }
  func.func @transform_2(%arg0: i32) -> (i32, i32) {
    %c0_i32 = arith.constant 0 : i32
    %c0_i32_0 = arith.constant 0 : i32
    %c0_i32_1 = arith.constant 0 : i32
    return %c0_i32, %c0_i32_0 : i32, i32
  }
  func.func @transform_3(%arg0: i32) -> (i32, i32) {
    %c0_i32 = arith.constant 0 : i32
    %c0_i32_0 = arith.constant 0 : i32
    return %arg0, %c0_i32 : i32, i32
  }
}

</mosaic_0001>

<bundles_post_ra>
// kernel: convert4x_forward.3
= control target key start
LH: loop header
LB: loop body
LE: loop exit
PB: predicated region body
PF: predicated region fallthrough
CT: control target
= control target key end

     0   :  { %s1860_s1 = inlined_call_operand.vmem [shape: bf16[128,128], index: 1, kind: input, shape index: {}]   ;;  %s1861_s0 = inlined_call_operand.vmem [shape: bf16[1,512,128], index: 0, kind: input, shape index: {}]   ;;  %s1862_s2 = inlined_call_operand.vmem [shape: f32[1,128], index: 2, kind: input, shape index: {}]   ;;  %s1863_s3 = inlined_call_operand.vmem [shape: bf16[512,128], index: 3, kind: output, shape index: {}]  }
   0x1   :  { %v1515_v0 = vld [vmem:[%s1860_s1] sm:$0xff]   ;;  %v1516_v1 = vld [vmem:[%s1860_s1 + $0x8] sm:$0xff]   ;;  %v1517_v2 = vld [vmem:[%s1860_s1 + $0x10] sm:$0xff]  }
   0x2   :  { %1419 = vmatprep.subr.bf16.mxu0 %v1515_v0  ;;  %1499 = vmatprep.subr.bf16.mxu1 %v1515_v0  ;;  %v1518_v3 = vld [vmem:[%s1860_s1 + $0x18] sm:$0xff]   ;;  %v1523_v4 = vld [vmem:[%s1861_s0] sm:$0xff]   ;;  %v1520_v7 = vld [vmem:[%s1860_s1 + $0x28] sm:$0xff]  }
   0x3   :  { %1420 = vmatpush3.bf16.msra.mxu0 %v1515_v0  ;;  %1507 = vmatpush3.bf16.msra.mxu1 %v1515_v0  ;;  %v1524_v5 = vld [vmem:[%s1861_s0 + $0x80] sm:$0xff]   ;;  %v1521_v8 = vld [vmem:[%s1860_s1 + $0x30] sm:$0xff]   ;;  %v1522_v9 = vld [vmem:[%s1860_s1 + $0x38] sm:$0xff]  }
   0x4   :  { %1421 = vmatprep.subr.bf16.mxu0 %v1516_v1  ;;  %1500 = vmatprep.subr.bf16.mxu1 %v1516_v1  ;;  %v1519_v6 = vld [vmem:[%s1860_s1 + $0x20] sm:$0xff]   ;;  %v1525_v10 = vld [vmem:[%s1861_s0 + $0x8] sm:$0xff]   ;;  %v1527_v12 = vld [vmem:[%s1861_s0 + $0x10] sm:$0xff]  }
   0x5   :  { %1435 = vmatprep.mubr.bf16.mxu0 %v1523_v4  ;;  %1467 = vmatprep.mubr.bf16.mxu1 %v1524_v5  ;;  %v1526_v11 = vld [vmem:[%s1861_s0 + $0x88] sm:$0xff]   ;;  %v1528_v13 = vld [vmem:[%s1861_s0 + $0x90] sm:$0xff]   ;;  %v1529_v14 = vld [vmem:[%s1861_s0 + $0x18] sm:$0xff]  }
   0x6   :  { %v1530_v15 = vld [vmem:[%s1861_s0 + $0x98] sm:$0xff]   ;;  %v1531_v16 = vld [vmem:[%s1861_s0 + $0x20] sm:$0xff]   ;;  %v1533_v18 = vld [vmem:[%s1861_s0 + $0x28] sm:$0xff]  }
   0x7   :  { %1422 = vmatpush3.bf16.msra.mxu0 %v1516_v1  ;;  %1508 = vmatpush3.bf16.msra.mxu1 %v1516_v1  ;;  %v1532_v17 = vld [vmem:[%s1861_s0 + $0xa0] sm:$0xff]   ;;  %v1534_v19 = vld [vmem:[%s1861_s0 + $0xa8] sm:$0xff]   ;;  %v1535_v20 = vld [vmem:[%s1861_s0 + $0x30] sm:$0xff]  }
   0x8   :  { %1423 = vmatprep.subr.bf16.mxu0 %v1517_v2  ;;  %1501 = vmatprep.subr.bf16.mxu1 %v1517_v2  ;;  %v1536_v21 = vld [vmem:[%s1861_s0 + $0xb0] sm:$0xff]   ;;  %v1537_v22 = vld [vmem:[%s1861_s0 + $0x38] sm:$0xff]   ;;  %v1539_v24 = vld [vmem:[%s1861_s0 + $0x40] sm:$0xff]  }
   0x9   :  { %v1538_v23 = vld [vmem:[%s1861_s0 + $0xb8] sm:$0xff]   ;;  %v1540_v25 = vld [vmem:[%s1861_s0 + $0xc0] sm:$0xff]   ;;  %v1541_v26 = vld [vmem:[%s1861_s0 + $0x48] sm:$0xff]  }
   0xa   :  { %v1542_v27 = vld [vmem:[%s1861_s0 + $0xc8] sm:$0xff]   ;;  %v1543_v28 = vld [vmem:[%s1861_s0 + $0x50] sm:$0xff]   ;;  %v1545_v30 = vld [vmem:[%s1861_s0 + $0x58] sm:$0xff]  }
   0xb   :  { %1424 = vmatpush3.bf16.msra.mxu0 %v1517_v2  ;;  %1509 = vmatpush3.bf16.msra.mxu1 %v1517_v2  ;;  %v1544_v29 = vld [vmem:[%s1861_s0 + $0xd0] sm:$0xff]   ;;  %v1546_v31 = vld [vmem:[%s1861_s0 + $0xd8] sm:$0xff]   ;;  %v1547_v32 = vld [vmem:[%s1861_s0 + $0x60] sm:$0xff]  }
   0xc   :  { %1425 = vmatprep.subr.bf16.mxu0 %v1518_v3  ;;  %1502 = vmatprep.subr.bf16.mxu1 %v1518_v3  ;;  %v1548_v33 = vld [vmem:[%s1861_s0 + $0xe0] sm:$0xff]   ;;  %v1549_v34 = vld [vmem:[%s1861_s0 + $0x68] sm:$0xff]   ;;  %v1551_v36 = vld [vmem:[%s1861_s0 + $0x70] sm:$0xff]  }
   0xd   :  { %v1550_v35 = vld [vmem:[%s1861_s0 + $0xe8] sm:$0xff]   ;;  %v1552_v37 = vld [vmem:[%s1861_s0 + $0xf0] sm:$0xff]   ;;  %v1553_v38 = vld [vmem:[%s1861_s0 + $0x78] sm:$0xff]  }
   0xe   :  { %v1554_v39 = vld [vmem:[%s1861_s0 + $0xf8] sm:$0xff]   ;;  %v1698_v40 = vld [vmem:[%s1862_s2] ss:$0 sm:$0xff] }
   0xf   :  { %1426 = vmatpush3.bf16.msra.mxu0 %v1518_v3  ;;  %1510 = vmatpush3.bf16.msra.mxu1 %v1518_v3 }
  0x10   :  { %1427 = vmatprep.subr.bf16.mxu0 %v1519_v6  ;;  %1503 = vmatprep.subr.bf16.mxu1 %v1519_v6 }
  0x13   :  { %1428 = vmatpush3.bf16.msra.mxu0 %v1519_v6  ;;  %1511 = vmatpush3.bf16.msra.mxu1 %v1519_v6 }
  0x14   :  { %1429 = vmatprep.subr.bf16.mxu0 %v1520_v7  ;;  %1504 = vmatprep.subr.bf16.mxu1 %v1520_v7 }
  0x17   :  { %1430 = vmatpush3.bf16.msra.mxu0 %v1520_v7  ;;  %1512 = vmatpush3.bf16.msra.mxu1 %v1520_v7 }
  0x18   :  { %1431 = vmatprep.subr.bf16.mxu0 %v1521_v8  ;;  %1505 = vmatprep.subr.bf16.mxu1 %v1521_v8 }
  0x1b   :  { %1432 = vmatpush3.bf16.msra.mxu0 %v1521_v8  ;;  %1513 = vmatpush3.bf16.msra.mxu1 %v1521_v8 }
  0x1c   :  { %1433 = vmatprep.subr.bf16.mxu0 %v1522_v9  ;;  %1506 = vmatprep.subr.bf16.mxu1 %v1522_v9 }
  0x1f   :  { %1434 = vmatpush3.bf16.msra.mxu0 %v1522_v9  ;;  %1514 = vmatpush3.bf16.msra.mxu1 %v1522_v9 }
  0x22   :  { %1436 = vmatmul.mubr.bf16.vlgmr.msra.gmra.mrb[0].mxu0 %v1525_v10  ;;  %1468 = vmatmul.mubr.bf16.vlgmr.msra.gmra.mrb[0].mxu1 %v1526_v11 }
  0x23   :  { %1439 = vmatprep.mubr.bf16.mxu0 %v1527_v12  ;;  %1471 = vmatprep.mubr.bf16.mxu1 %v1528_v13 }
  0x2a   :  { %1440 = vmatmul.mubr.bf16.gmra.mrb[4].mxu0 %v1529_v14  ;;  %1472 = vmatmul.mubr.bf16.gmra.mrb[4].mxu1 %v1530_v15 }
  0x2b   :  { %1443 = vmatprep.mubr.bf16.mxu0 %v1531_v16  ;;  %1475 = vmatprep.mubr.bf16.mxu1 %v1532_v17 }
  0x32   :  { %1444 = vmatmul.mubr.bf16.gmra.mrb[8].mxu0 %v1533_v18  ;;  %1476 = vmatmul.mubr.bf16.gmra.mrb[8].mxu1 %v1534_v19 }
  0x33   :  { %1447 = vmatprep.mubr.bf16.mxu0 %v1535_v20  ;;  %1479 = vmatprep.mubr.bf16.mxu1 %v1536_v21 }
  0x3a   :  { %1448 = vmatmul.mubr.bf16.gmra.mrb[12].mxu0 %v1537_v22  ;;  %1480 = vmatmul.mubr.bf16.gmra.mrb[12].mxu1 %v1538_v23 }
  0x3b   :  { %1451 = vmatprep.mubr.bf16.mxu0 %v1539_v24  ;;  %1483 = vmatprep.mubr.bf16.mxu1 %v1540_v25 }
  0x42   :  { %1452 = vmatmul.mubr.bf16.gmra.mrb[16].mxu0 %v1541_v26  ;;  %1484 = vmatmul.mubr.bf16.gmra.mrb[16].mxu1 %v1542_v27 }
  0x43   :  { %1455 = vmatprep.mubr.bf16.mxu0 %v1543_v28  ;;  %1487 = vmatprep.mubr.bf16.mxu1 %v1544_v29 }
  0x4a   :  { %1456 = vmatmul.mubr.bf16.gmra.mrb[20].mxu0 %v1545_v30  ;;  %1488 = vmatmul.mubr.bf16.gmra.mrb[20].mxu1 %v1546_v31 }
  0x4b   :  { %1459 = vmatprep.mubr.bf16.mxu0 %v1547_v32  ;;  %1491 = vmatprep.mubr.bf16.mxu1 %v1548_v33 }
  0x52   :  { %1460 = vmatmul.mubr.bf16.gmra.mrb[24].mxu0 %v1549_v34  ;;  %1492 = vmatmul.mubr.bf16.gmra.mrb[24].mxu1 %v1550_v35 }
  0x53   :  { %1463 = vmatprep.mubr.bf16.mxu0 %v1551_v36  ;;  %1495 = vmatprep.mubr.bf16.mxu1 %v1552_v37 }
  0x5a   :  { %1464 = vmatmul.mubr.bf16.gmra.mrb[28].mxu0 %v1553_v38  ;;  %1496 = vmatmul.mubr.bf16.gmra.mrb[28].mxu1 %v1554_v39 }
  0xf5   :  { %v1437_v41 = vpop.f32.mrb[0].mxu0  ;;  %v1469_v42 = vpop.f32.mrb[0].mxu1 }
  0xf6   :  { %v385_v43 = vadd.f32 %v1437_v41, %v1698_v40  ;;  %v513_v44 = vadd.f32 %v1469_v42, %v1698_v40  ;;  %v376_v45 = vpop.f32.mrb[1].mxu0  ;;  %v504_v46 = vpop.f32.mrb[1].mxu1 }
  0xf7   :  { %v377_v47 = vadd.f32 %v1698_v40, %v376_v45  ;;  %v505_v48 = vadd.f32 %v1698_v40, %v504_v46  ;;  %v1438_v49 = vpop.f32.mrb[2].mxu0  ;;  %v1470_v50 = vpop.f32.mrb[2].mxu1 }
  0xf8   :  { %v388_v51 = vadd.f32 %v1438_v49, %v1698_v40  ;;  %v516_v52 = vadd.f32 %v1470_v50, %v1698_v40  ;;  %v379_v53 = vpop.f32.mrb[3].mxu0  ;;  %v507_v54 = vpop.f32.mrb[3].mxu1  ;;  %v633_v57 = vmax.f32 %v385_v43, 0.0  ;;  %v665_v58 = vmax.f32 %v513_v44, 0.0 }
  0xf9   :  { %v380_v55 = vadd.f32 %v1698_v40, %v379_v53  ;;  %v508_v56 = vadd.f32 %v1698_v40, %v507_v54  ;;  %v631_v61 = vmax.f32 %v377_v47, 0.0  ;;  %v663_v62 = vmax.f32 %v505_v48, 0.0 }
  0xfa   :  { %v634_v59 = vmax.f32 %v388_v51, 0.0  ;;  %v666_v60 = vmax.f32 %v516_v52, 0.0 }
  0xfb   :  { %v632_v63 = vmax.f32 %v380_v55, 0.0  ;;  %v664_v0 = vmax.f32 %v508_v56, 0.0 }
  0xfc   :  { %v1196_v1 = vpack.c.bf16 %v634_v59, %v633_v57  ;;  %v1276_v2 = vpack.c.bf16 %v666_v60, %v665_v58 }
  0xfd   :  { %v1191_v3 = vpack.c.bf16 %v632_v63, %v631_v61  ;;  %v1271_v4 = vpack.c.bf16 %v664_v0, %v663_v62  ;;  %v1441_v5 = vpop.f32.mrb[4].mxu0  ;;  %v1473_v6 = vpop.f32.mrb[4].mxu1 }
  0xfe   :  { %1348 = vst [vmem:[%s1863_s3 + $0x8] sm:$0xff] %v1196_v1   ;;  %1364 = vst [vmem:[%s1863_s3 + $0x88] sm:$0xff] %v1276_v2   ;;  %v401_v7 = vadd.f32 %v1441_v5, %v1698_v40  ;;  %v529_v8 = vadd.f32 %v1473_v6, %v1698_v40  ;;  %v392_v9 = vpop.f32.mrb[5].mxu0  ;;  %v520_v10 = vpop.f32.mrb[5].mxu1 }
  0xff   :  { %1192 = vst [vmem:[%s1863_s3] sm:$0xff] %v1191_v3   ;;  %1363 = vst [vmem:[%s1863_s3 + $0x80] sm:$0xff] %v1271_v4   ;;  %v393_v11 = vadd.f32 %v1698_v40, %v392_v9  ;;  %v521_v12 = vadd.f32 %v1698_v40, %v520_v10  ;;  %v1442_v13 = vpop.f32.mrb[6].mxu0  ;;  %v1474_v14 = vpop.f32.mrb[6].mxu1 }
 0x100   :  { %v404_v15 = vadd.f32 %v1442_v13, %v1698_v40  ;;  %v532_v16 = vadd.f32 %v1474_v14, %v1698_v40  ;;  %v395_v17 = vpop.f32.mrb[7].mxu0  ;;  %v523_v18 = vpop.f32.mrb[7].mxu1  ;;  %v637_v21 = vmax.f32 %v401_v7, 0.0  ;;  %v669_v22 = vmax.f32 %v529_v8, 0.0 }
 0x101   :  { %v396_v19 = vadd.f32 %v1698_v40, %v395_v17  ;;  %v524_v20 = vadd.f32 %v1698_v40, %v523_v18  ;;  %v635_v25 = vmax.f32 %v393_v11, 0.0  ;;  %v667_v26 = vmax.f32 %v521_v12, 0.0 }
 0x102   :  { %v638_v23 = vmax.f32 %v404_v15, 0.0  ;;  %v670_v24 = vmax.f32 %v532_v16, 0.0 }
 0x103   :  { %v636_v27 = vmax.f32 %v396_v19, 0.0  ;;  %v668_v28 = vmax.f32 %v524_v20, 0.0 }
 0x104   :  { %v1206_v29 = vpack.c.bf16 %v638_v23, %v637_v21  ;;  %v1286_v30 = vpack.c.bf16 %v670_v24, %v669_v22 }
 0x105   :  { %v1201_v31 = vpack.c.bf16 %v636_v27, %v635_v25  ;;  %v1281_v32 = vpack.c.bf16 %v668_v28, %v667_v26  ;;  %v1445_v33 = vpop.f32.mrb[8].mxu0  ;;  %v1477_v34 = vpop.f32.mrb[8].mxu1 }
 0x106   :  { %1350 = vst [vmem:[%s1863_s3 + $0x18] sm:$0xff] %v1206_v29   ;;  %1366 = vst [vmem:[%s1863_s3 + $0x98] sm:$0xff] %v1286_v30   ;;  %v417_v35 = vadd.f32 %v1445_v33, %v1698_v40  ;;  %v545_v36 = vadd.f32 %v1477_v34, %v1698_v40  ;;  %v408_v37 = vpop.f32.mrb[9].mxu0  ;;  %v536_v38 = vpop.f32.mrb[9].mxu1 }
 0x107   :  { %1349 = vst [vmem:[%s1863_s3 + $0x10] sm:$0xff] %v1201_v31   ;;  %1365 = vst [vmem:[%s1863_s3 + $0x90] sm:$0xff] %v1281_v32   ;;  %v409_v39 = vadd.f32 %v1698_v40, %v408_v37  ;;  %v537_v41 = vadd.f32 %v1698_v40, %v536_v38  ;;  %v1446_v42 = vpop.f32.mrb[10].mxu0  ;;  %v1478_v43 = vpop.f32.mrb[10].mxu1 }
 0x108   :  { %v420_v44 = vadd.f32 %v1446_v42, %v1698_v40  ;;  %v548_v45 = vadd.f32 %v1478_v43, %v1698_v40  ;;  %v411_v46 = vpop.f32.mrb[11].mxu0  ;;  %v539_v47 = vpop.f32.mrb[11].mxu1  ;;  %v641_v50 = vmax.f32 %v417_v35, 0.0  ;;  %v673_v51 = vmax.f32 %v545_v36, 0.0 }
 0x109   :  { %v412_v48 = vadd.f32 %v1698_v40, %v411_v46  ;;  %v540_v49 = vadd.f32 %v1698_v40, %v539_v47  ;;  %v639_v54 = vmax.f32 %v409_v39, 0.0  ;;  %v671_v55 = vmax.f32 %v537_v41, 0.0 }
 0x10a   :  { %v642_v52 = vmax.f32 %v420_v44, 0.0  ;;  %v674_v53 = vmax.f32 %v548_v45, 0.0 }
 0x10b   :  { %v640_v56 = vmax.f32 %v412_v48, 0.0  ;;  %v672_v57 = vmax.f32 %v540_v49, 0.0 }
 0x10c   :  { %v1216_v58 = vpack.c.bf16 %v642_v52, %v641_v50  ;;  %v1296_v59 = vpack.c.bf16 %v674_v53, %v673_v51 }
 0x10d   :  { %v1211_v60 = vpack.c.bf16 %v640_v56, %v639_v54  ;;  %v1291_v61 = vpack.c.bf16 %v672_v57, %v671_v55  ;;  %v1449_v62 = vpop.f32.mrb[12].mxu0  ;;  %v1481_v63 = vpop.f32.mrb[12].mxu1 }
 0x10e   :  { %1352 = vst [vmem:[%s1863_s3 + $0x28] sm:$0xff] %v1216_v58   ;;  %1368 = vst [vmem:[%s1863_s3 + $0xa8] sm:$0xff] %v1296_v59   ;;  %v433_v0 = vadd.f32 %v1449_v62, %v1698_v40  ;;  %v561_v1 = vadd.f32 %v1481_v63, %v1698_v40  ;;  %v424_v2 = vpop.f32.mrb[13].mxu0  ;;  %v552_v3 = vpop.f32.mrb[13].mxu1 }
 0x10f   :  { %1351 = vst [vmem:[%s1863_s3 + $0x20] sm:$0xff] %v1211_v60   ;;  %1367 = vst [vmem:[%s1863_s3 + $0xa0] sm:$0xff] %v1291_v61   ;;  %v425_v4 = vadd.f32 %v1698_v40, %v424_v2  ;;  %v553_v5 = vadd.f32 %v1698_v40, %v552_v3  ;;  %v1450_v6 = vpop.f32.mrb[14].mxu0  ;;  %v1482_v7 = vpop.f32.mrb[14].mxu1 }
 0x110   :  { %v436_v8 = vadd.f32 %v1450_v6, %v1698_v40  ;;  %v564_v9 = vadd.f32 %v1482_v7, %v1698_v40  ;;  %v427_v10 = vpop.f32.mrb[15].mxu0  ;;  %v555_v11 = vpop.f32.mrb[15].mxu1  ;;  %v645_v14 = vmax.f32 %v433_v0, 0.0  ;;  %v677_v15 = vmax.f32 %v561_v1, 0.0 }
 0x111   :  { %v428_v12 = vadd.f32 %v1698_v40, %v427_v10  ;;  %v556_v13 = vadd.f32 %v1698_v40, %v555_v11  ;;  %v643_v18 = vmax.f32 %v425_v4, 0.0  ;;  %v675_v19 = vmax.f32 %v553_v5, 0.0 }
 0x112   :  { %v646_v16 = vmax.f32 %v436_v8, 0.0  ;;  %v678_v17 = vmax.f32 %v564_v9, 0.0 }
 0x113   :  { %v644_v20 = vmax.f32 %v428_v12, 0.0  ;;  %v676_v21 = vmax.f32 %v556_v13, 0.0 }
 0x114   :  { %v1226_v22 = vpack.c.bf16 %v646_v16, %v645_v14  ;;  %v1306_v23 = vpack.c.bf16 %v678_v17, %v677_v15 }
 0x115   :  { %v1221_v24 = vpack.c.bf16 %v644_v20, %v643_v18  ;;  %v1301_v25 = vpack.c.bf16 %v676_v21, %v675_v19  ;;  %v1453_v26 = vpop.f32.mrb[16].mxu0  ;;  %v1485_v27 = vpop.f32.mrb[16].mxu1 }
 0x116   :  { %1354 = vst [vmem:[%s1863_s3 + $0x38] sm:$0xff] %v1226_v22   ;;  %1370 = vst [vmem:[%s1863_s3 + $0xb8] sm:$0xff] %v1306_v23   ;;  %v449_v28 = vadd.f32 %v1453_v26, %v1698_v40  ;;  %v577_v29 = vadd.f32 %v1485_v27, %v1698_v40  ;;  %v440_v30 = vpop.f32.mrb[17].mxu0  ;;  %v568_v31 = vpop.f32.mrb[17].mxu1 }
 0x117   :  { %1353 = vst [vmem:[%s1863_s3 + $0x30] sm:$0xff] %v1221_v24   ;;  %1369 = vst [vmem:[%s1863_s3 + $0xb0] sm:$0xff] %v1301_v25   ;;  %v441_v32 = vadd.f32 %v1698_v40, %v440_v30  ;;  %v569_v33 = vadd.f32 %v1698_v40, %v568_v31  ;;  %v1454_v34 = vpop.f32.mrb[18].mxu0  ;;  %v1486_v35 = vpop.f32.mrb[18].mxu1 }
 0x118   :  { %v452_v36 = vadd.f32 %v1454_v34, %v1698_v40  ;;  %v580_v37 = vadd.f32 %v1486_v35, %v1698_v40  ;;  %v443_v38 = vpop.f32.mrb[19].mxu0  ;;  %v571_v39 = vpop.f32.mrb[19].mxu1  ;;  %v649_v43 = vmax.f32 %v449_v28, 0.0  ;;  %v681_v44 = vmax.f32 %v577_v29, 0.0 }
 0x119   :  { %v444_v41 = vadd.f32 %v1698_v40, %v443_v38  ;;  %v572_v42 = vadd.f32 %v1698_v40, %v571_v39  ;;  %v647_v47 = vmax.f32 %v441_v32, 0.0  ;;  %v679_v48 = vmax.f32 %v569_v33, 0.0 }
 0x11a   :  { %v650_v45 = vmax.f32 %v452_v36, 0.0  ;;  %v682_v46 = vmax.f32 %v580_v37, 0.0 }
 0x11b   :  { %v648_v49 = vmax.f32 %v444_v41, 0.0  ;;  %v680_v50 = vmax.f32 %v572_v42, 0.0 }
 0x11c   :  { %v1236_v51 = vpack.c.bf16 %v650_v45, %v649_v43  ;;  %v1316_v52 = vpack.c.bf16 %v682_v46, %v681_v44 }
 0x11d   :  { %v1231_v53 = vpack.c.bf16 %v648_v49, %v647_v47  ;;  %v1311_v54 = vpack.c.bf16 %v680_v50, %v679_v48  ;;  %v1457_v55 = vpop.f32.mrb[20].mxu0  ;;  %v1489_v56 = vpop.f32.mrb[20].mxu1 }
 0x11e   :  { %1356 = vst [vmem:[%s1863_s3 + $0x48] sm:$0xff] %v1236_v51   ;;  %1372 = vst [vmem:[%s1863_s3 + $0xc8] sm:$0xff] %v1316_v52   ;;  %v465_v57 = vadd.f32 %v1457_v55, %v1698_v40  ;;  %v593_v58 = vadd.f32 %v1489_v56, %v1698_v40  ;;  %v456_v59 = vpop.f32.mrb[21].mxu0  ;;  %v584_v60 = vpop.f32.mrb[21].mxu1 }
 0x11f   :  { %1355 = vst [vmem:[%s1863_s3 + $0x40] sm:$0xff] %v1231_v53   ;;  %1371 = vst [vmem:[%s1863_s3 + $0xc0] sm:$0xff] %v1311_v54   ;;  %v457_v61 = vadd.f32 %v1698_v40, %v456_v59  ;;  %v585_v62 = vadd.f32 %v1698_v40, %v584_v60  ;;  %v1458_v63 = vpop.f32.mrb[22].mxu0  ;;  %v1490_v0 = vpop.f32.mrb[22].mxu1 }
 0x120   :  { %v468_v1 = vadd.f32 %v1458_v63, %v1698_v40  ;;  %v596_v2 = vadd.f32 %v1490_v0, %v1698_v40  ;;  %v459_v3 = vpop.f32.mrb[23].mxu0  ;;  %v587_v4 = vpop.f32.mrb[23].mxu1  ;;  %v653_v7 = vmax.f32 %v465_v57, 0.0  ;;  %v685_v8 = vmax.f32 %v593_v58, 0.0 }
 0x121   :  { %v460_v5 = vadd.f32 %v1698_v40, %v459_v3  ;;  %v588_v6 = vadd.f32 %v1698_v40, %v587_v4  ;;  %v651_v11 = vmax.f32 %v457_v61, 0.0  ;;  %v683_v12 = vmax.f32 %v585_v62, 0.0 }
 0x122   :  { %v654_v9 = vmax.f32 %v468_v1, 0.0  ;;  %v686_v10 = vmax.f32 %v596_v2, 0.0 }
 0x123   :  { %v652_v13 = vmax.f32 %v460_v5, 0.0  ;;  %v684_v14 = vmax.f32 %v588_v6, 0.0 }
 0x124   :  { %v1246_v15 = vpack.c.bf16 %v654_v9, %v653_v7  ;;  %v1326_v16 = vpack.c.bf16 %v686_v10, %v685_v8 }
 0x125   :  { %v1241_v17 = vpack.c.bf16 %v652_v13, %v651_v11  ;;  %v1321_v18 = vpack.c.bf16 %v684_v14, %v683_v12  ;;  %v1461_v19 = vpop.f32.mrb[24].mxu0  ;;  %v1493_v20 = vpop.f32.mrb[24].mxu1 }
 0x126   :  { %1358 = vst [vmem:[%s1863_s3 + $0x58] sm:$0xff] %v1246_v15   ;;  %1374 = vst [vmem:[%s1863_s3 + $0xd8] sm:$0xff] %v1326_v16   ;;  %v481_v21 = vadd.f32 %v1461_v19, %v1698_v40  ;;  %v609_v22 = vadd.f32 %v1493_v20, %v1698_v40  ;;  %v472_v23 = vpop.f32.mrb[25].mxu0  ;;  %v600_v24 = vpop.f32.mrb[25].mxu1 }
 0x127   :  { %1357 = vst [vmem:[%s1863_s3 + $0x50] sm:$0xff] %v1241_v17   ;;  %1373 = vst [vmem:[%s1863_s3 + $0xd0] sm:$0xff] %v1321_v18   ;;  %v473_v25 = vadd.f32 %v1698_v40, %v472_v23  ;;  %v601_v26 = vadd.f32 %v1698_v40, %v600_v24  ;;  %v1462_v27 = vpop.f32.mrb[26].mxu0  ;;  %v1494_v28 = vpop.f32.mrb[26].mxu1 }
 0x128   :  { %v484_v29 = vadd.f32 %v1462_v27, %v1698_v40  ;;  %v612_v30 = vadd.f32 %v1494_v28, %v1698_v40  ;;  %v475_v31 = vpop.f32.mrb[27].mxu0  ;;  %v603_v32 = vpop.f32.mrb[27].mxu1  ;;  %v657_v35 = vmax.f32 %v481_v21, 0.0  ;;  %v689_v36 = vmax.f32 %v609_v22, 0.0 }
 0x129   :  { %v476_v33 = vadd.f32 %v1698_v40, %v475_v31  ;;  %v604_v34 = vadd.f32 %v1698_v40, %v603_v32  ;;  %v655_v39 = vmax.f32 %v473_v25, 0.0  ;;  %v687_v41 = vmax.f32 %v601_v26, 0.0 }
 0x12a   :  { %v658_v37 = vmax.f32 %v484_v29, 0.0  ;;  %v690_v38 = vmax.f32 %v612_v30, 0.0 }
 0x12b   :  { %v656_v42 = vmax.f32 %v476_v33, 0.0  ;;  %v688_v43 = vmax.f32 %v604_v34, 0.0 }
 0x12c   :  { %v1256_v44 = vpack.c.bf16 %v658_v37, %v657_v35  ;;  %v1336_v45 = vpack.c.bf16 %v690_v38, %v689_v36 }
 0x12d   :  { %v1251_v46 = vpack.c.bf16 %v656_v42, %v655_v39  ;;  %v1331_v47 = vpack.c.bf16 %v688_v43, %v687_v41  ;;  %v1465_v48 = vpop.f32.mrb[28].mxu0  ;;  %v1497_v49 = vpop.f32.mrb[28].mxu1 }
 0x12e   :  { %1360 = vst [vmem:[%s1863_s3 + $0x68] sm:$0xff] %v1256_v44   ;;  %1376 = vst [vmem:[%s1863_s3 + $0xe8] sm:$0xff] %v1336_v45   ;;  %v497_v50 = vadd.f32 %v1465_v48, %v1698_v40  ;;  %v625_v51 = vadd.f32 %v1497_v49, %v1698_v40  ;;  %v488_v52 = vpop.f32.mrb[29].mxu0  ;;  %v616_v53 = vpop.f32.mrb[29].mxu1 }
 0x12f   :  { %1359 = vst [vmem:[%s1863_s3 + $0x60] sm:$0xff] %v1251_v46   ;;  %1375 = vst [vmem:[%s1863_s3 + $0xe0] sm:$0xff] %v1331_v47   ;;  %v489_v54 = vadd.f32 %v1698_v40, %v488_v52  ;;  %v617_v55 = vadd.f32 %v1698_v40, %v616_v53  ;;  %v1466_v56 = vpop.f32.mrb[30].mxu0  ;;  %v1498_v57 = vpop.f32.mrb[30].mxu1 }
 0x130   :  { %v500_v58 = vadd.f32 %v1466_v56, %v1698_v40  ;;  %v628_v59 = vadd.f32 %v1498_v57, %v1698_v40  ;;  %v491_v60 = vpop.f32.mrb[31].mxu0  ;;  %v619_v61 = vpop.f32.mrb[31].mxu1  ;;  %v661_v0 = vmax.f32 %v497_v50, 0.0  ;;  %v693_v1 = vmax.f32 %v625_v51, 0.0 }
 0x131   :  { %v492_v62 = vadd.f32 %v1698_v40, %v491_v60  ;;  %v620_v63 = vadd.f32 %v1698_v40, %v619_v61  ;;  %v659_v4 = vmax.f32 %v489_v54, 0.0  ;;  %v691_v5 = vmax.f32 %v617_v55, 0.0 }
 0x132   :  { %v662_v2 = vmax.f32 %v500_v58, 0.0  ;;  %v694_v3 = vmax.f32 %v628_v59, 0.0 }
 0x133   :  { %v660_v6 = vmax.f32 %v492_v62, 0.0  ;;  %v692_v7 = vmax.f32 %v620_v63, 0.0 }
 0x134   :  { %v1266_v8 = vpack.c.bf16 %v662_v2, %v661_v0  ;;  %v1346_v9 = vpack.c.bf16 %v694_v3, %v693_v1 }
 0x135   :  { %v1261_v10 = vpack.c.bf16 %v660_v6, %v659_v4  ;;  %v1341_v11 = vpack.c.bf16 %v692_v7, %v691_v5 }
 0x136   :  { %1362 = vst [vmem:[%s1863_s3 + $0x78] sm:$0xff] %v1266_v8   ;;  %1378 = vst [vmem:[%s1863_s3 + $0xf8] sm:$0xff] %v1346_v9  }
 0x137   :  { %1361 = vst [vmem:[%s1863_s3 + $0x70] sm:$0xff] %v1261_v10   ;;  %1377 = vst [vmem:[%s1863_s3 + $0xf0] sm:$0xff] %v1341_v11  }

// kernel: convert4x_forward.4
= control target key start
LH: loop header
LB: loop body
LE: loop exit
PB: predicated region body
PF: predicated region fallthrough
CT: control target
= control target key end

     0   :  { %s8505_s1 = inlined_call_operand.vmem [shape: bf16[1152,256], index: 1, kind: input, shape index: {}]   ;;  %s8506_s0 = inlined_call_operand.vmem [shape: bf16[4,128,1152], index: 0, kind: input, shape index: {}]   ;;  %s8507_s2 = inlined_call_operand.vmem [shape: f32[1,256], index: 2, kind: input, shape index: {}]   ;;  %s8508_s3 = inlined_call_operand.vmem [shape: bf16[128,256], index: 3, kind: output, shape index: {}]  }
   0x1   :  { %v5733_v0 = vld [vmem:[%s8505_s1 + $0x4] ss:$8 sps:$4 sm:$0xff]   ;;  %v5737_v2 = vld [vmem:[%s8505_s1] ss:$8 sps:$4 sm:$0xff]   ;;  %v5739_v4 = vld [vmem:[%s8505_s1 + $0x14] ss:$8 sps:$4 sm:$0xff]  }
   0x2   :  { %v5735_v1 = vld [vmem:[%s8505_s1 + $0x204] ss:$8 sps:$4 sm:$0xff]   ;;  %2671 = vmatprep.subr.bf16.mxu1 %v5733_v0  ;;  %v5738_v3 = vld [vmem:[%s8505_s1 + $0x200] ss:$8 sps:$4 sm:$0xff]   ;;  %v5741_v5 = vld [vmem:[%s8505_s1 + $0x214] ss:$8 sps:$4 sm:$0xff]  }
   0x3   :  { %3377 = vmatprep.subr.bf16.mxu0 %v5735_v1  ;;  %2672 = vmatpush1.bf16.msra.mxu1 %v5737_v2  ;;  %v5743_v6 = vld [vmem:[%s8505_s1 + $0x10] ss:$8 sps:$4 sm:$0xff]   ;;  %v5745_v8 = vld [vmem:[%s8505_s1 + $0x24] ss:$8 sps:$4 sm:$0xff]   ;;  %v5749_v10 = vld [vmem:[%s8505_s1 + $0x20] ss:$8 sps:$4 sm:$0xff]  }
   0x4   :  { %3378 = vmatpush1.bf16.msra.mxu0 %v5738_v3  ;;  %2673 = vmatprep.subr.bf16.mxu1 %v5739_v4  ;;  %v5744_v7 = vld [vmem:[%s8505_s1 + $0x210] ss:$8 sps:$4 sm:$0xff]   ;;  %v5747_v9 = vld [vmem:[%s8505_s1 + $0x224] ss:$8 sps:$4 sm:$0xff]   ;;  %v5750_v11 = vld [vmem:[%s8505_s1 + $0x220] ss:$8 sps:$4 sm:$0xff]  }
   0x5   :  { %3379 = vmatprep.subr.bf16.mxu0 %v5741_v5  ;;  %v5751_v12 = vld [vmem:[%s8505_s1 + $0x34] ss:$8 sps:$4 sm:$0xff]   ;;  %v5755_v14 = vld [vmem:[%s8505_s1 + $0x30] ss:$8 sps:$4 sm:$0xff]   ;;  %v5757_v16 = vld [vmem:[%s8505_s1 + $0x44] ss:$8 sps:$4 sm:$0xff]  }
   0x6   :  { %v5753_v13 = vld [vmem:[%s8505_s1 + $0x234] ss:$8 sps:$4 sm:$0xff]   ;;  %v5756_v15 = vld [vmem:[%s8505_s1 + $0x230] ss:$8 sps:$4 sm:$0xff]   ;;  %v5759_v17 = vld [vmem:[%s8505_s1 + $0x244] ss:$8 sps:$4 sm:$0xff]  }
   0x7   :  { %2674 = vmatpush1.bf16.msra.mxu1 %v5743_v6  ;;  %v5761_v18 = vld [vmem:[%s8505_s1 + $0x40] ss:$8 sps:$4 sm:$0xff]   ;;  %v5763_v20 = vld [vmem:[%s8505_s1 + $0x54] ss:$8 sps:$4 sm:$0xff]   ;;  %v5767_v22 = vld [vmem:[%s8505_s1 + $0x50] ss:$8 sps:$4 sm:$0xff]  }
   0x8   :  { %3380 = vmatpush1.bf16.msra.mxu0 %v5744_v7  ;;  %2675 = vmatprep.subr.bf16.mxu1 %v5745_v8  ;;  %v5762_v19 = vld [vmem:[%s8505_s1 + $0x240] ss:$8 sps:$4 sm:$0xff]   ;;  %v5765_v21 = vld [vmem:[%s8505_s1 + $0x254] ss:$8 sps:$4 sm:$0xff]   ;;  %v5768_v23 = vld [vmem:[%s8505_s1 + $0x250] ss:$8 sps:$4 sm:$0xff]  }
   0x9   :  { %3381 = vmatprep.subr.bf16.mxu0 %v5747_v9  ;;  %v5769_v24 = vld [vmem:[%s8505_s1 + $0x64] ss:$8 sps:$4 sm:$0xff]   ;;  %v5773_v26 = vld [vmem:[%s8505_s1 + $0x60] ss:$8 sps:$4 sm:$0xff]   ;;  %v5775_v28 = vld [vmem:[%s8505_s1 + $0x74] ss:$8 sps:$4 sm:$0xff]  }
   0xa   :  { %v5771_v25 = vld [vmem:[%s8505_s1 + $0x264] ss:$8 sps:$4 sm:$0xff]   ;;  %v5774_v27 = vld [vmem:[%s8505_s1 + $0x260] ss:$8 sps:$4 sm:$0xff]   ;;  %v5777_v29 = vld [vmem:[%s8505_s1 + $0x274] ss:$8 sps:$4 sm:$0xff]  }
   0xb   :  { %2676 = vmatpush1.bf16.msra.mxu1 %v5749_v10  ;;  %v5779_v30 = vld [vmem:[%s8505_s1 + $0x70] ss:$8 sps:$4 sm:$0xff]   ;;  %v5781_v32 = vld [vmem:[%s8505_s1 + $0x84] ss:$8 sps:$4 sm:$0xff]   ;;  %v5785_v34 = vld [vmem:[%s8505_s1 + $0x80] ss:$8 sps:$4 sm:$0xff]  }
   0xc   :  { %3382 = vmatpush1.bf16.msra.mxu0 %v5750_v11  ;;  %2677 = vmatprep.subr.bf16.mxu1 %v5751_v12  ;;  %v5780_v31 = vld [vmem:[%s8505_s1 + $0x270] ss:$8 sps:$4 sm:$0xff]   ;;  %v5783_v33 = vld [vmem:[%s8505_s1 + $0x284] ss:$8 sps:$4 sm:$0xff]   ;;  %v5786_v35 = vld [vmem:[%s8505_s1 + $0x280] ss:$8 sps:$4 sm:$0xff]  }
   0xd   :  { %3383 = vmatprep.subr.bf16.mxu0 %v5753_v13  ;;  %v5787_v36 = vld [vmem:[%s8505_s1 + $0x94] ss:$8 sps:$4 sm:$0xff]   ;;  %v5791_v38 = vld [vmem:[%s8505_s1 + $0x90] ss:$8 sps:$4 sm:$0xff]   ;;  %v5793_v40 = vld [vmem:[%s8505_s1 + $0xa4] ss:$8 sps:$4 sm:$0xff]  }
   0xe   :  { %v5789_v37 = vld [vmem:[%s8505_s1 + $0x294] ss:$8 sps:$4 sm:$0xff]   ;;  %v5792_v39 = vld [vmem:[%s8505_s1 + $0x290] ss:$8 sps:$4 sm:$0xff]   ;;  %v5795_v41 = vld [vmem:[%s8505_s1 + $0x2a4] ss:$8 sps:$4 sm:$0xff]  }
   0xf   :  { %2678 = vmatpush1.bf16.msra.mxu1 %v5755_v14  ;;  %v5797_v42 = vld [vmem:[%s8505_s1 + $0xa0] ss:$8 sps:$4 sm:$0xff]   ;;  %v5799_v44 = vld [vmem:[%s8505_s1 + $0xb4] ss:$8 sps:$4 sm:$0xff]   ;;  %v5803_v46 = vld [vmem:[%s8505_s1 + $0xb0] ss:$8 sps:$4 sm:$0xff]  }
  0x10   :  { %3384 = vmatpush1.bf16.msra.mxu0 %v5756_v15  ;;  %2679 = vmatprep.subr.bf16.mxu1 %v5757_v16  ;;  %v5798_v43 = vld [vmem:[%s8505_s1 + $0x2a0] ss:$8 sps:$4 sm:$0xff]   ;;  %v5801_v45 = vld [vmem:[%s8505_s1 + $0x2b4] ss:$8 sps:$4 sm:$0xff]   ;;  %v5804_v47 = vld [vmem:[%s8505_s1 + $0x2b0] ss:$8 sps:$4 sm:$0xff]  }
  0x11   :  { %3385 = vmatprep.subr.bf16.mxu0 %v5759_v17  ;;  %v5805_v48 = vld [vmem:[%s8505_s1 + $0xc4] ss:$8 sps:$4 sm:$0xff]   ;;  %v5834_v51 = vld [vmem:[%s8506_s0 + $0x14] ss:$36 sps:$4 sm:$0xff]   ;;  %v5809_v52 = vld [vmem:[%s8505_s1 + $0xc0] ss:$8 sps:$4 sm:$0xff]  }
  0x12   :  { %v5831_v49 = vld [vmem:[%s8506_s0 + $0x4] ss:$36 sps:$4 sm:$0xff]   ;;  %3409 = vmatprep.mubr.bf16.mxu0 %v5834_v51  ;;  %v5811_v54 = vld [vmem:[%s8505_s1 + $0xd4] ss:$8 sps:$4 sm:$0xff]   ;;  %v5815_v56 = vld [vmem:[%s8505_s1 + $0xd0] ss:$8 sps:$4 sm:$0xff]  }
  0x13   :  { %2680 = vmatpush1.bf16.msra.mxu1 %v5761_v18  ;;  %v5807_v50 = vld [vmem:[%s8505_s1 + $0x2c4] ss:$8 sps:$4 sm:$0xff]   ;;  %2703 = vmatprep.mubr.bf16.mxu1 %v5831_v49  ;;  %v5810_v53 = vld [vmem:[%s8505_s1 + $0x2c0] ss:$8 sps:$4 sm:$0xff]   ;;  %v5813_v55 = vld [vmem:[%s8505_s1 + $0x2d4] ss:$8 sps:$4 sm:$0xff]  }
  0x14   :  { %3386 = vmatpush1.bf16.msra.mxu0 %v5762_v19  ;;  %2681 = vmatprep.subr.bf16.mxu1 %v5763_v20  ;;  %v5816_v57 = vld [vmem:[%s8505_s1 + $0x2d0] ss:$8 sps:$4 sm:$0xff]   ;;  %v5817_v58 = vld [vmem:[%s8505_s1 + $0xe4] ss:$8 sps:$4 sm:$0xff]   ;;  %v5821_v60 = vld [vmem:[%s8505_s1 + $0xe0] ss:$8 sps:$4 sm:$0xff]  }
  0x15   :  { %3387 = vmatprep.subr.bf16.mxu0 %v5765_v21  ;;  %v5819_v59 = vld [vmem:[%s8505_s1 + $0x2e4] ss:$8 sps:$4 sm:$0xff]   ;;  %v5822_v61 = vld [vmem:[%s8505_s1 + $0x2e0] ss:$8 sps:$4 sm:$0xff]   ;;  %v5823_v62 = vld [vmem:[%s8505_s1 + $0xf4] ss:$8 sps:$4 sm:$0xff]  }
  0x16   :  { %v5825_v63 = vld [vmem:[%s8505_s1 + $0x2f4] ss:$8 sps:$4 sm:$0xff]   ;;  %v5827_v0 = vld [vmem:[%s8505_s1 + $0xf0] ss:$8 sps:$4 sm:$0xff]   ;;  %v5837_v2 = vld [vmem:[%s8505_s1 + $0x104] ss:$8 sps:$4 sm:$0xff]  }
  0x17   :  { %2682 = vmatpush1.bf16.msra.mxu1 %v5767_v22  ;;  %v5828_v1 = vld [vmem:[%s8505_s1 + $0x2f0] ss:$8 sps:$4 sm:$0xff]   ;;  %v5840_v3 = vld [vmem:[%s8505_s1 + $0x304] ss:$8 sps:$4 sm:$0xff]   ;;  %v5835_v6 = vld [vmem:[%s8505_s1 + $0x100] ss:$8 sps:$4 sm:$0xff]  }
  0x18   :  { %3388 = vmatpush1.bf16.msra.mxu0 %v5768_v23  ;;  %2683 = vmatprep.subr.bf16.mxu1 %v5769_v24  ;;  %v5829_v4 = vld [vmem:[%s8506_s0] ss:$36 sps:$4 sm:$0xff]   ;;  %v5832_v5 = vld [vmem:[%s8506_s0 + $0x10] ss:$36 sps:$4 sm:$0xff]   ;;  %v5845_v16 = vld [vmem:[%s8506_s0 + $0x48] ss:$36 sps:$4 sm:$0xff]  }
  0x19   :  { %3389 = vmatprep.subr.bf16.mxu0 %v5771_v25  ;;  %v5838_v7 = vld [vmem:[%s8505_s1 + $0x300] ss:$8 sps:$4 sm:$0xff]   ;;  %v5841_v8 = vld [vmem:[%s8506_s0 + $0x4c] ss:$36 sps:$4 sm:$0xff]   ;;  %v5849_v10 = vld [vmem:[%s8505_s1 + $0x314] ss:$8 sps:$4 sm:$0xff]  }
  0x1a   :  { %v5843_v9 = vld [vmem:[%s8506_s0 + $0x5c] ss:$36 sps:$4 sm:$0xff]   ;;  %v5847_v12 = vld [vmem:[%s8505_s1 + $0x310] ss:$8 sps:$4 sm:$0xff]   ;;  %v5861_v14 = vld [vmem:[%s8505_s1 + $0x324] ss:$8 sps:$4 sm:$0xff]  }
  0x1b   :  { %2684 = vmatpush1.bf16.msra.mxu1 %v5773_v26  ;;  %v5857_v11 = vld [vmem:[%s8505_s1 + $0x114] ss:$8 sps:$4 sm:$0xff]   ;;  %v5855_v13 = vld [vmem:[%s8505_s1 + $0x110] ss:$8 sps:$4 sm:$0xff]   ;;  %v5878_v15 = vld [vmem:[%s8505_s1 + $0x124] ss:$8 sps:$4 sm:$0xff]  }
  0x1c   :  { %3390 = vmatpush1.bf16.msra.mxu0 %v5774_v27  ;;  %2685 = vmatprep.subr.bf16.mxu1 %v5775_v28  ;;  %v5846_v17 = vld [vmem:[%s8506_s0 + $0x58] ss:$36 sps:$4 sm:$0xff]   ;;  %v5852_v19 = vld [vmem:[%s8506_s0 + $0xa4] ss:$36 sps:$4 sm:$0xff]   ;;  %v5854_v26 = vld [vmem:[%s8506_s0 + $0x90] ss:$36 sps:$4 sm:$0xff]  }
  0x1d   :  { %3391 = vmatprep.subr.bf16.mxu0 %v5777_v29  ;;  %v5850_v18 = vld [vmem:[%s8506_s0 + $0x94] ss:$36 sps:$4 sm:$0xff]   ;;  %v5859_v20 = vld [vmem:[%s8505_s1 + $0x320] ss:$8 sps:$4 sm:$0xff]   ;;  %v5882_v27 = vld [vmem:[%s8505_s1 + $0x344] ss:$8 sps:$4 sm:$0xff]  }
  0x1e   :  { %v5876_v21 = vld [vmem:[%s8505_s1 + $0x120] ss:$8 sps:$4 sm:$0xff]   ;;  %v5870_v22 = vld [vmem:[%s8505_s1 + $0x334] ss:$8 sps:$4 sm:$0xff]   ;;  %v5868_v24 = vld [vmem:[%s8505_s1 + $0x330] ss:$8 sps:$4 sm:$0xff]  }
  0x1f   :  { %2686 = vmatpush1.bf16.msra.mxu1 %v5779_v30  ;;  %v5899_v23 = vld [vmem:[%s8505_s1 + $0x134] ss:$8 sps:$4 sm:$0xff]   ;;  %v5897_v25 = vld [vmem:[%s8505_s1 + $0x130] ss:$8 sps:$4 sm:$0xff]   ;;  %v5858_v28 = vld [vmem:[%s8506_s0 + $0xa0] ss:$36 sps:$4 sm:$0xff]  }
  0x20   :  { %3392 = vmatpush1.bf16.msra.mxu0 %v5780_v31  ;;  %2687 = vmatprep.subr.bf16.mxu1 %v5781_v32  ;;  %v5862_v29 = vld [vmem:[%s8506_s0 + $0xdc] ss:$36 sps:$4 sm:$0xff]   ;;  %v5864_v30 = vld [vmem:[%s8506_s0 + $0xec] ss:$36 sps:$4 sm:$0xff]  }
  0x21   :  { %3393 = vmatprep.subr.bf16.mxu0 %v5783_v33  ;;  %v5880_v31 = vld [vmem:[%s8505_s1 + $0x340] ss:$8 sps:$4 sm:$0xff]   ;;  %v5891_v32 = vld [vmem:[%s8505_s1 + $0x354] ss:$8 sps:$4 sm:$0xff]   ;;  %v5883_v49 = vld [vmem:[%s8506_s0 + $0x16c] ss:$36 sps:$4 sm:$0xff]  }
  0x22   :  { %v5918_v33 = vld [vmem:[%s8505_s1 + $0x140] ss:$8 sps:$4 sm:$0xff]  }
  0x23   :  { %2688 = vmatpush1.bf16.msra.mxu1 %v5785_v34  ;;  %v5920_v34 = vld [vmem:[%s8505_s1 + $0x144] ss:$8 sps:$4 sm:$0xff]   ;;  %v5922_v51 = vld [vmem:[%s8505_s1 + $0x380] ss:$8 sps:$4 sm:$0xff]  }
  0x24   :  { %3394 = vmatpush1.bf16.msra.mxu0 %v5786_v35  ;;  %2689 = vmatprep.subr.bf16.mxu1 %v5787_v36  ;;  %v5889_v35 = vld [vmem:[%s8505_s1 + $0x350] ss:$8 sps:$4 sm:$0xff]   ;;  %v5903_v36 = vld [vmem:[%s8505_s1 + $0x364] ss:$8 sps:$4 sm:$0xff]  }
  0x25   :  { %3395 = vmatprep.subr.bf16.mxu0 %v5789_v37  ;;  %v5866_v37 = vld [vmem:[%s8506_s0 + $0xd8] ss:$36 sps:$4 sm:$0xff]  }
  0x27   :  { %2690 = vmatpush1.bf16.msra.mxu1 %v5791_v38  ;;  %v5867_v38 = vld [vmem:[%s8506_s0 + $0xe8] ss:$36 sps:$4 sm:$0xff]  }
  0x28   :  { %3396 = vmatpush1.bf16.msra.mxu0 %v5792_v39  ;;  %2691 = vmatprep.subr.bf16.mxu1 %v5793_v40  ;;  %v5871_v39 = vld [vmem:[%s8506_s0 + $0x124] ss:$36 sps:$4 sm:$0xff]   ;;  %v5873_v40 = vld [vmem:[%s8506_s0 + $0x134] ss:$36 sps:$4 sm:$0xff]  }
  0x29   :  { %3397 = vmatprep.subr.bf16.mxu0 %v5795_v41  ;;  %v5901_v41 = vld [vmem:[%s8505_s1 + $0x360] ss:$8 sps:$4 sm:$0xff]  }
  0x2b   :  { %2692 = vmatpush1.bf16.msra.mxu1 %v5797_v42  ;;  %v5912_v42 = vld [vmem:[%s8505_s1 + $0x374] ss:$8 sps:$4 sm:$0xff]  }
  0x2c   :  { %3398 = vmatpush1.bf16.msra.mxu0 %v5798_v43  ;;  %2693 = vmatprep.subr.bf16.mxu1 %v5799_v44  ;;  %v5939_v43 = vld [vmem:[%s8505_s1 + $0x150] ss:$8 sps:$4 sm:$0xff]   ;;  %v5941_v44 = vld [vmem:[%s8505_s1 + $0x154] ss:$8 sps:$4 sm:$0xff]  }
  0x2d   :  { %3399 = vmatprep.subr.bf16.mxu0 %v5801_v45  ;;  %v5910_v45 = vld [vmem:[%s8505_s1 + $0x370] ss:$8 sps:$4 sm:$0xff]  }
  0x2f   :  { %2694 = vmatpush1.bf16.msra.mxu1 %v5803_v46  ;;  %v5875_v46 = vld [vmem:[%s8506_s0 + $0x120] ss:$36 sps:$4 sm:$0xff]  }
  0x30   :  { %3400 = vmatpush1.bf16.msra.mxu0 %v5804_v47  ;;  %2695 = vmatprep.subr.bf16.mxu1 %v5805_v48  ;;  %v5924_v47 = vld [vmem:[%s8505_s1 + $0x384] ss:$8 sps:$4 sm:$0xff]   ;;  %v5879_v48 = vld [vmem:[%s8506_s0 + $0x130] ss:$36 sps:$4 sm:$0xff]  }
  0x31   :  { %3401 = vmatprep.subr.bf16.mxu0 %v5807_v50  ;;  %v5885_v50 = vld [vmem:[%s8506_s0 + $0x17c] ss:$36 sps:$4 sm:$0xff]  }
  0x33   :  { %2696 = vmatpush1.bf16.msra.mxu1 %v5809_v52  ;;  %v5933_v52 = vld [vmem:[%s8505_s1 + $0x394] ss:$8 sps:$4 sm:$0xff]  }
  0x34   :  { %3402 = vmatpush1.bf16.msra.mxu0 %v5810_v53  ;;  %2697 = vmatprep.subr.bf16.mxu1 %v5811_v54  ;;  %v5931_v53 = vld [vmem:[%s8505_s1 + $0x390] ss:$8 sps:$4 sm:$0xff]   ;;  %v5887_v54 = vld [vmem:[%s8506_s0 + $0x168] ss:$36 sps:$4 sm:$0xff]  }
  0x35   :  { %3403 = vmatprep.subr.bf16.mxu0 %v5813_v55  ;;  %v5960_v55 = vld [vmem:[%s8505_s1 + $0x160] ss:$8 sps:$4 sm:$0xff]  }
  0x37   :  { %2698 = vmatpush1.bf16.msra.mxu1 %v5815_v56  ;;  %v5945_v56 = vld [vmem:[%s8505_s1 + $0x3a4] ss:$8 sps:$4 sm:$0xff]  }
  0x38   :  { %3404 = vmatpush1.bf16.msra.mxu0 %v5816_v57  ;;  %2699 = vmatprep.subr.bf16.mxu1 %v5817_v58  ;;  %v5962_v57 = vld [vmem:[%s8505_s1 + $0x164] ss:$8 sps:$4 sm:$0xff]   ;;  %v5888_v58 = vld [vmem:[%s8506_s0 + $0x178] ss:$36 sps:$4 sm:$0xff]  }
  0x39   :  { %3405 = vmatprep.subr.bf16.mxu0 %v5819_v59  ;;  %v5892_v59 = vld [vmem:[%s8506_s0 + $0x1b4] ss:$36 sps:$4 sm:$0xff]  }
  0x3b   :  { %2700 = vmatpush1.bf16.msra.mxu1 %v5821_v60  ;;  %v5894_v60 = vld [vmem:[%s8506_s0 + $0x1c4] ss:$36 sps:$4 sm:$0xff]  }
  0x3c   :  { %3406 = vmatpush1.bf16.msra.mxu0 %v5822_v61  ;;  %2701 = vmatprep.subr.bf16.mxu1 %v5823_v62  ;;  %v5943_v61 = vld [vmem:[%s8505_s1 + $0x3a0] ss:$8 sps:$4 sm:$0xff]   ;;  %v5954_v62 = vld [vmem:[%s8505_s1 + $0x3b4] ss:$8 sps:$4 sm:$0xff]  }
  0x3d   :  { %3407 = vmatprep.subr.bf16.mxu0 %v5825_v63  ;;  %v5896_v63 = vld [vmem:[%s8506_s0 + $0x1b0] ss:$36 sps:$4 sm:$0xff]  }
  0x3f   :  { %2702 = vmatpush1.bf16.msra.mxu1 %v5827_v0  ;;  %v5900_v0 = vld [vmem:[%s8506_s0 + $0x1c0] ss:$36 sps:$4 sm:$0xff]  }
  0x40   :  { %3408 = vmatpush1.bf16.msra.mxu0 %v5828_v1  ;;  %3024 = vmatprep.subr.bf16.mxu1 %v5837_v2  ;;  %v5952_v1 = vld [vmem:[%s8505_s1 + $0x3b0] ss:$8 sps:$4 sm:$0xff]   ;;  %v5966_v2 = vld [vmem:[%s8505_s1 + $0x3c4] ss:$8 sps:$4 sm:$0xff]  }
  0x41   :  { %3730 = vmatprep.subr.bf16.mxu0 %v5840_v3  ;;  %v5904_v3 = vld [vmem:[%s8506_s0 + $0x1fc] ss:$36 sps:$4 sm:$0xff]  }
  0x42   :  { %2704 = vmatmul.mubr.bf16.vlgmr.msra.gmra.mrb[0].mxu1 %v5829_v4  ;;  %v5981_v4 = vld [vmem:[%s8505_s1 + $0x170] ss:$8 sps:$4 sm:$0xff]  }
  0x43   :  { %3410 = vmatmul.mubr.bf16.vlgmr.msra.gmra.mrb[0].mxu0 %v5832_v5  ;;  %3025 = vmatpush1.bf16.msra.mxu1 %v5835_v6  ;;  %v5983_v5 = vld [vmem:[%s8505_s1 + $0x174] ss:$8 sps:$4 sm:$0xff]   ;;  %v5906_v6 = vld [vmem:[%s8506_s0 + $0x20c] ss:$36 sps:$4 sm:$0xff]  }
  0x44   :  { %3731 = vmatpush1.bf16.msra.mxu0 %v5838_v7  ;;  %2713 = vmatprep.mubr.bf16.mxu1 %v5841_v8  ;;  %v5964_v7 = vld [vmem:[%s8505_s1 + $0x3c0] ss:$8 sps:$4 sm:$0xff]   ;;  %v5975_v8 = vld [vmem:[%s8505_s1 + $0x3d4] ss:$8 sps:$4 sm:$0xff]  }
  0x45   :  { %3419 = vmatprep.mubr.bf16.mxu0 %v5843_v9  ;;  %3732 = vmatprep.subr.bf16.mxu0 %v5849_v10  ;;  %v5908_v9 = vld [vmem:[%s8506_s0 + $0x1f8] ss:$36 sps:$4 sm:$0xff]  }
  0x46   :  { %3026 = vmatprep.subr.bf16.mxu1 %v5857_v11  ;;  %v5973_v10 = vld [vmem:[%s8505_s1 + $0x3d0] ss:$8 sps:$4 sm:$0xff]   ;;  %v5987_v11 = vld [vmem:[%s8505_s1 + $0x3e4] ss:$8 sps:$4 sm:$0xff]  }
  0x47   :  { %3027 = vmatpush1.bf16.msra.mxu1 %v5855_v13  ;;  %v5913_v13 = vld [vmem:[%s8506_s0 + $0x244] ss:$36 sps:$4 sm:$0xff]  }
  0x48   :  { %3733 = vmatpush1.bf16.msra.mxu0 %v5847_v12  ;;  %3028 = vmatprep.subr.bf16.mxu1 %v5878_v15  ;;  %v5909_v12 = vld [vmem:[%s8506_s0 + $0x208] ss:$36 sps:$4 sm:$0xff]  }
  0x49   :  { %3734 = vmatprep.subr.bf16.mxu0 %v5861_v14  ;;  %v5915_v14 = vld [vmem:[%s8506_s0 + $0x254] ss:$36 sps:$4 sm:$0xff]   ;;  %v5985_v15 = vld [vmem:[%s8505_s1 + $0x3e0] ss:$8 sps:$4 sm:$0xff]  }
  0x4a   :  { %2714 = vmatmul.mubr.bf16.gmra.mrb[4].mxu1 %v5845_v16  ;;  %v6005_v16 = vld [vmem:[%s8505_s1 + $0x184] ss:$8 sps:$4 sm:$0xff]  }
  0x4b   :  { %3420 = vmatmul.mubr.bf16.gmra.mrb[4].mxu0 %v5846_v17  ;;  %2723 = vmatprep.mubr.bf16.mxu1 %v5850_v18  ;;  %v5996_v17 = vld [vmem:[%s8505_s1 + $0x3f4] ss:$8 sps:$4 sm:$0xff]   ;;  %v6003_v18 = vld [vmem:[%s8505_s1 + $0x180] ss:$8 sps:$4 sm:$0xff]  }
  0x4c   :  { %3429 = vmatprep.mubr.bf16.mxu0 %v5852_v19  ;;  %3735 = vmatpush1.bf16.msra.mxu0 %v5859_v20  ;;  %v5917_v19 = vld [vmem:[%s8506_s0 + $0x240] ss:$36 sps:$4 sm:$0xff]   ;;  %v5994_v20 = vld [vmem:[%s8505_s1 + $0x3f0] ss:$8 sps:$4 sm:$0xff]  }
  0x4d   :  { %3029 = vmatpush1.bf16.msra.mxu1 %v5876_v21  ;;  %3736 = vmatprep.subr.bf16.mxu0 %v5870_v22  ;;  %v6008_v21 = vld [vmem:[%s8505_s1 + $0x404] ss:$8 sps:$4 sm:$0xff]   ;;  %v5921_v22 = vld [vmem:[%s8506_s0 + $0x250] ss:$36 sps:$4 sm:$0xff]  }
  0x4e   :  { %3030 = vmatprep.subr.bf16.mxu1 %v5899_v23  ;;  %v5925_v23 = vld [vmem:[%s8506_s0 + $0x28c] ss:$36 sps:$4 sm:$0xff]  }
  0x50   :  { %3737 = vmatpush1.bf16.msra.mxu0 %v5868_v24  ;;  %v5927_v24 = vld [vmem:[%s8506_s0 + $0x29c] ss:$36 sps:$4 sm:$0xff]  }
  0x51   :  { %3031 = vmatpush1.bf16.msra.mxu1 %v5897_v25  ;;  %3738 = vmatprep.subr.bf16.mxu0 %v5882_v27  ;;  %v6022_v25 = vld [vmem:[%s8505_s1 + $0x194] ss:$8 sps:$4 sm:$0xff]   ;;  %v5929_v27 = vld [vmem:[%s8506_s0 + $0x288] ss:$36 sps:$4 sm:$0xff]  }
  0x52   :  { %2724 = vmatmul.mubr.bf16.gmra.mrb[8].mxu1 %v5854_v26  ;;  %3032 = vmatprep.subr.bf16.mxu1 %v5920_v34  ;;  %v6020_v26 = vld [vmem:[%s8505_s1 + $0x190] ss:$8 sps:$4 sm:$0xff]   ;;  %v5942_v34 = vld [vmem:[%s8506_s0 + $0x2e0] ss:$36 sps:$4 sm:$0xff]  }
  0x53   :  { %3430 = vmatmul.mubr.bf16.gmra.mrb[8].mxu0 %v5858_v28  ;;  %2733 = vmatprep.mubr.bf16.mxu1 %v5862_v29  ;;  %v5930_v28 = vld [vmem:[%s8506_s0 + $0x298] ss:$36 sps:$4 sm:$0xff]  }
  0x54   :  { %3439 = vmatprep.mubr.bf16.mxu0 %v5864_v30  ;;  %3739 = vmatpush1.bf16.msra.mxu0 %v5880_v31  ;;  %v5934_v29 = vld [vmem:[%s8506_s0 + $0x2d4] ss:$36 sps:$4 sm:$0xff]   ;;  %v6035_v30 = vld [vmem:[%s8505_s1 + $0x1a0] ss:$8 sps:$4 sm:$0xff]   ;;  %v6037_v31 = vld [vmem:[%s8505_s1 + $0x1a4] ss:$8 sps:$4 sm:$0xff]  }
  0x55   :  { %3740 = vmatprep.subr.bf16.mxu0 %v5891_v32  ;;  %3033 = vmatpush1.bf16.msra.mxu1 %v5918_v33  ;;  %v5936_v32 = vld [vmem:[%s8506_s0 + $0x2e4] ss:$36 sps:$4 sm:$0xff]   ;;  %v5938_v33 = vld [vmem:[%s8506_s0 + $0x2d0] ss:$36 sps:$4 sm:$0xff]  }
  0x56   :  { %3034 = vmatprep.subr.bf16.mxu1 %v5941_v44  ;;  %v5957_v44 = vld [vmem:[%s8506_s0 + $0x374] ss:$36 sps:$4 sm:$0xff]  }
  0x58   :  { %3741 = vmatpush1.bf16.msra.mxu0 %v5889_v35  ;;  %v5946_v35 = vld [vmem:[%s8506_s0 + $0x31c] ss:$36 sps:$4 sm:$0xff]  }
  0x59   :  { %3742 = vmatprep.subr.bf16.mxu0 %v5903_v36  ;;  %3035 = vmatpush1.bf16.msra.mxu1 %v5939_v43  ;;  %v6053_v36 = vld [vmem:[%s8505_s1 + $0x1b0] ss:$8 sps:$4 sm:$0xff]   ;;  %v5955_v43 = vld [vmem:[%s8506_s0 + $0x364] ss:$36 sps:$4 sm:$0xff]  }
  0x5a   :  { %2734 = vmatmul.mubr.bf16.gmra.mrb[12].mxu1 %v5866_v37  ;;  %3036 = vmatprep.subr.bf16.mxu1 %v5962_v57  ;;  %v6055_v37 = vld [vmem:[%s8505_s1 + $0x1b4] ss:$8 sps:$4 sm:$0xff]  }
  0x5b   :  { %3440 = vmatmul.mubr.bf16.gmra.mrb[12].mxu0 %v5867_v38  ;;  %2743 = vmatprep.mubr.bf16.mxu1 %v5871_v39  ;;  %v5948_v38 = vld [vmem:[%s8506_s0 + $0x32c] ss:$36 sps:$4 sm:$0xff]   ;;  %v6068_v39 = vld [vmem:[%s8505_s1 + $0x1c0] ss:$8 sps:$4 sm:$0xff]  }
  0x5c   :  { %3449 = vmatprep.mubr.bf16.mxu0 %v5873_v40  ;;  %3743 = vmatpush1.bf16.msra.mxu0 %v5901_v41  ;;  %v5950_v40 = vld [vmem:[%s8506_s0 + $0x318] ss:$36 sps:$4 sm:$0xff]   ;;  %v6070_v41 = vld [vmem:[%s8505_s1 + $0x1c4] ss:$8 sps:$4 sm:$0xff]   ;;  %v5980_v57 = vld [vmem:[%s8506_s0 + $0x3f0] ss:$36 sps:$4 sm:$0xff]  }
  0x5d   :  { %3744 = vmatprep.subr.bf16.mxu0 %v5912_v42  ;;  %3037 = vmatpush1.bf16.msra.mxu1 %v5960_v55  ;;  %v5951_v42 = vld [vmem:[%s8506_s0 + $0x328] ss:$36 sps:$4 sm:$0xff]   ;;  %v5976_v55 = vld [vmem:[%s8506_s0 + $0x3f4] ss:$36 sps:$4 sm:$0xff]  }
  0x5e   :  { %3038 = vmatprep.subr.bf16.mxu1 %v5983_v5  ;;  %v6002_v5 = vld [vmem:[%s8506_s0 + $0x480] ss:$36 sps:$4 sm:$0xff]  }
  0x60   :  { %3745 = vmatpush1.bf16.msra.mxu0 %v5910_v45  ;;  %v6086_v45 = vld [vmem:[%s8505_s1 + $0x1d0] ss:$8 sps:$4 sm:$0xff]  }
  0x61   :  { %3746 = vmatprep.subr.bf16.mxu0 %v5924_v47  ;;  %3039 = vmatpush1.bf16.msra.mxu1 %v5981_v4  ;;  %v6088_v47 = vld [vmem:[%s8505_s1 + $0x1d4] ss:$8 sps:$4 sm:$0xff]  }
  0x62   :  { %2744 = vmatmul.mubr.bf16.gmra.mrb[16].mxu1 %v5875_v46  ;;  %3040 = vmatprep.subr.bf16.mxu1 %v6005_v16  ;;  %v5959_v46 = vld [vmem:[%s8506_s0 + $0x360] ss:$36 sps:$4 sm:$0xff]   ;;  %v5999_v4 = vld [vmem:[%s8506_s0 + $0x18] ss:$36 sps:$4 sm:$0xff]  }
  0x63   :  { %3450 = vmatmul.mubr.bf16.gmra.mrb[16].mxu0 %v5879_v48  ;;  %2753 = vmatprep.mubr.bf16.mxu1 %v5883_v49  ;;  %v5963_v48 = vld [vmem:[%s8506_s0 + $0x370] ss:$36 sps:$4 sm:$0xff]   ;;  %v6072_v16 = vld [vmem:[%s8505_s1 + $0x420] ss:$8 sps:$4 sm:$0xff]  }
  0x64   :  { %3459 = vmatprep.mubr.bf16.mxu0 %v5885_v50  ;;  %3747 = vmatpush1.bf16.msra.mxu0 %v5922_v51  ;;  %v5967_v49 = vld [vmem:[%s8506_s0 + $0x3ac] ss:$36 sps:$4 sm:$0xff]   ;;  %v5969_v50 = vld [vmem:[%s8506_s0 + $0x3bc] ss:$36 sps:$4 sm:$0xff]  }
  0x65   :  { %3748 = vmatprep.subr.bf16.mxu0 %v5933_v52  ;;  %3041 = vmatpush1.bf16.msra.mxu1 %v6003_v18  ;;  %v6101_v51 = vld [vmem:[%s8505_s1 + $0x1e0] ss:$8 sps:$4 sm:$0xff]   ;;  %v6103_v52 = vld [vmem:[%s8505_s1 + $0x1e4] ss:$8 sps:$4 sm:$0xff]   ;;  %v6105_v18 = vld [vmem:[%s8505_s1 + $0x430] ss:$8 sps:$4 sm:$0xff]  }
  0x66   :  { %3042 = vmatprep.subr.bf16.mxu1 %v6022_v25  ;;  %v6028_v25 = vld [vmem:[%s8506_s0 + $0x558] ss:$36 sps:$4 sm:$0xff]  }
  0x68   :  { %3749 = vmatpush1.bf16.msra.mxu0 %v5931_v53  ;;  %v5971_v53 = vld [vmem:[%s8506_s0 + $0x3a8] ss:$36 sps:$4 sm:$0xff]  }
  0x69   :  { %3750 = vmatprep.subr.bf16.mxu0 %v5945_v56  ;;  %3043 = vmatpush1.bf16.msra.mxu1 %v6020_v26  ;;  %v5978_v56 = vld [vmem:[%s8506_s0 + $0x404] ss:$36 sps:$4 sm:$0xff]   ;;  %v6029_v26 = vld [vmem:[%s8506_s0 + $0xf0] ss:$36 sps:$4 sm:$0xff]  }
  0x6a   :  { %2754 = vmatmul.mubr.bf16.gmra.mrb[20].mxu1 %v5887_v54  ;;  %3044 = vmatprep.subr.bf16.mxu1 %v6037_v31  ;;  %v5972_v54 = vld [vmem:[%s8506_s0 + $0x3b8] ss:$36 sps:$4 sm:$0xff]   ;;  %v6042_v31 = vld [vmem:[%s8506_s0 + $0x5ec] ss:$36 sps:$4 sm:$0xff]  }
  0x6b   :  { %3460 = vmatmul.mubr.bf16.gmra.mrb[20].mxu0 %v5888_v58  ;;  %2763 = vmatprep.mubr.bf16.mxu1 %v5892_v59  ;;  %v5984_v58 = vld [vmem:[%s8506_s0 + $0x400] ss:$36 sps:$4 sm:$0xff]  }
  0x6c   :  { %3469 = vmatprep.mubr.bf16.mxu0 %v5894_v60  ;;  %3751 = vmatpush1.bf16.msra.mxu0 %v5943_v61  ;;  %v5988_v59 = vld [vmem:[%s8506_s0 + $0x43c] ss:$36 sps:$4 sm:$0xff]   ;;  %v5990_v60 = vld [vmem:[%s8506_s0 + $0x44c] ss:$36 sps:$4 sm:$0xff]  }
  0x6d   :  { %3752 = vmatprep.subr.bf16.mxu0 %v5954_v62  ;;  %3045 = vmatpush1.bf16.msra.mxu1 %v6035_v30  ;;  %v6119_v61 = vld [vmem:[%s8505_s1 + $0x1f0] ss:$8 sps:$4 sm:$0xff]   ;;  %v6121_v62 = vld [vmem:[%s8505_s1 + $0x1f4] ss:$8 sps:$4 sm:$0xff]  }
  0x6e   :  { %3046 = vmatprep.subr.bf16.mxu1 %v6055_v37  ;;  %v6038_v30 = vld [vmem:[%s8506_s0 + $0x138] ss:$36 sps:$4 sm:$0xff]  }
  0x6f   :  { %v6048_v37 = vld [vmem:[%s8506_s0 + $0x634] ss:$36 sps:$4 sm:$0xff]  }
  0x70   :  { %3753 = vmatpush1.bf16.msra.mxu0 %v5952_v1  ;;  %v5997_v1 = vld [vmem:[%s8506_s0 + $0x484] ss:$36 sps:$4 sm:$0xff]  }
  0x71   :  { %3754 = vmatprep.subr.bf16.mxu0 %v5966_v2  ;;  %3047 = vmatpush1.bf16.msra.mxu1 %v6053_v36  ;;  %v6001_v2 = vld [vmem:[%s8506_s0 + $0x1c] ss:$36 sps:$4 sm:$0xff]  }
  0x72   :  { %2764 = vmatmul.mubr.bf16.gmra.mrb[24].mxu1 %v5896_v63  ;;  %3048 = vmatprep.subr.bf16.mxu1 %v6070_v41  ;;  %v5992_v63 = vld [vmem:[%s8506_s0 + $0x438] ss:$36 sps:$4 sm:$0xff]   ;;  %v6047_v36 = vld [vmem:[%s8506_s0 + $0x180] ss:$36 sps:$4 sm:$0xff]  }
  0x73   :  { %3470 = vmatmul.mubr.bf16.gmra.mrb[24].mxu0 %v5900_v0  ;;  %2773 = vmatprep.mubr.bf16.mxu1 %v5904_v3  ;;  %v5993_v0 = vld [vmem:[%s8506_s0 + $0x448] ss:$36 sps:$4 sm:$0xff]   ;;  %v6057_v41 = vld [vmem:[%s8506_s0 + $0x67c] ss:$36 sps:$4 sm:$0xff]  }
  0x74   :  { %3479 = vmatprep.mubr.bf16.mxu0 %v5906_v6  ;;  %3755 = vmatpush1.bf16.msra.mxu0 %v5964_v7  ;;  %v6365_v3 = vld [vmem:[%s8505_s1 + $0x204] ss:$8 sps:$4 sm:$0xff]   ;;  %v6006_v6 = vld [vmem:[%s8505_s1 + $0x400] ss:$8 sps:$4 sm:$0xff]  }
  0x75   :  { %3756 = vmatprep.subr.bf16.mxu0 %v5975_v8  ;;  %3049 = vmatpush1.bf16.msra.mxu1 %v6068_v39  ;;  %v6009_v7 = vld [vmem:[%s8506_s0 + $0x4cc] ss:$36 sps:$4 sm:$0xff]   ;;  %v6011_v8 = vld [vmem:[%s8506_s0 + $0x64] ss:$36 sps:$4 sm:$0xff]  }
  0x76   :  { %3050 = vmatprep.subr.bf16.mxu1 %v6088_v47  ;;  %v6052_v39 = vld [vmem:[%s8506_s0 + $0x630] ss:$36 sps:$4 sm:$0xff]   ;;  %v6067_v47 = vld [vmem:[%s8506_s0 + $0x6c0] ss:$36 sps:$4 sm:$0xff]  }
  0x78   :  { %3757 = vmatpush1.bf16.msra.mxu0 %v5973_v10  ;;  %v6039_v10 = vld [vmem:[%s8505_s1 + $0x410] ss:$8 sps:$4 sm:$0xff]  }
  0x79   :  { %3758 = vmatprep.subr.bf16.mxu0 %v5987_v11  ;;  %3051 = vmatpush1.bf16.msra.mxu1 %v6086_v45  ;;  %v6013_v11 = vld [vmem:[%s8506_s0 + $0x4c8] ss:$36 sps:$4 sm:$0xff]  }
  0x7a   :  { %2774 = vmatmul.mubr.bf16.gmra.mrb[28].mxu1 %v5908_v9  ;;  %3052 = vmatprep.subr.bf16.mxu1 %v6103_v52  ;;  %v6041_v9 = vld [vmem:[%s8505_s1 + $0x414] ss:$8 sps:$4 sm:$0xff]   ;;  %v6063_v45 = vld [vmem:[%s8506_s0 + $0x6c4] ss:$36 sps:$4 sm:$0xff]  }
  0x7b   :  { %3480 = vmatmul.mubr.bf16.gmra.mrb[28].mxu0 %v5909_v12  ;;  %2783 = vmatprep.mubr.bf16.mxu1 %v5913_v13  ;;  %v6014_v12 = vld [vmem:[%s8506_s0 + $0x60] ss:$36 sps:$4 sm:$0xff]  }
  0x7c   :  { %3489 = vmatprep.mubr.bf16.mxu0 %v5915_v14  ;;  %3759 = vmatpush1.bf16.msra.mxu0 %v5985_v15  ;;  %v6074_v13 = vld [vmem:[%s8505_s1 + $0x424] ss:$8 sps:$4 sm:$0xff]   ;;  %v6015_v14 = vld [vmem:[%s8506_s0 + $0x514] ss:$36 sps:$4 sm:$0xff]  }
  0x7d   :  { %3760 = vmatprep.subr.bf16.mxu0 %v5996_v17  ;;  %3053 = vmatpush1.bf16.msra.mxu1 %v6101_v51  ;;  %v6017_v15 = vld [vmem:[%s8506_s0 + $0xac] ss:$36 sps:$4 sm:$0xff]   ;;  %v6107_v17 = vld [vmem:[%s8505_s1 + $0x434] ss:$8 sps:$4 sm:$0xff]   ;;  %v6189_v51 = vld [vmem:[%s8505_s1 + $0x460] ss:$8 sps:$4 sm:$0xff]  }
  0x7e   :  { %3054 = vmatprep.subr.bf16.mxu1 %v6121_v62  ;;  %v6191_v52 = vld [vmem:[%s8505_s1 + $0x464] ss:$8 sps:$4 sm:$0xff]   ;;  %v6095_v62 = vld [vmem:[%s8506_s0 + $0x330] ss:$36 sps:$4 sm:$0xff]  }
  0x80   :  { %3761 = vmatpush1.bf16.msra.mxu0 %v5994_v20  ;;  %v6019_v20 = vld [vmem:[%s8506_s0 + $0x510] ss:$36 sps:$4 sm:$0xff]  }
  0x81   :  { %4083 = vmatprep.subr.bf16.mxu0 %v6008_v21  ;;  %3055 = vmatpush1.bf16.msra.mxu1 %v6119_v61  ;;  %v6023_v21 = vld [vmem:[%s8506_s0 + $0xa8] ss:$36 sps:$4 sm:$0xff]   ;;  %v6094_v61 = vld [vmem:[%s8506_s0 + $0x798] ss:$36 sps:$4 sm:$0xff]  }
  0x82   :  { %2784 = vmatmul.mubr.bf16.gmra.mrb[32].mxu1 %v5917_v19  ;;  %5188 = vmatprep.subr.bf16.mxu1 %v6365_v3  ;;  %v6137_v19 = vld [vmem:[%s8505_s1 + $0x444] ss:$8 sps:$4 sm:$0xff]  }
  0x83   :  { %3490 = vmatmul.mubr.bf16.gmra.mrb[32].mxu0 %v5921_v22  ;;  %2793 = vmatprep.mubr.bf16.mxu1 %v5925_v23  ;;  %v6024_v22 = vld [vmem:[%s8506_s0 + $0x55c] ss:$36 sps:$4 sm:$0xff]   ;;  %v6026_v23 = vld [vmem:[%s8506_s0 + $0xf4] ss:$36 sps:$4 sm:$0xff]   ;;  %v6108_v3 = vld [vmem:[%s8506_s0 + $0x82c] ss:$36 sps:$4 sm:$0xff]  }
  0x84   :  { %3499 = vmatprep.mubr.bf16.mxu0 %v5927_v24  ;;  %v6135_v24 = vld [vmem:[%s8505_s1 + $0x440] ss:$8 sps:$4 sm:$0xff]  }
  0x8a   :  { %2794 = vmatmul.mubr.bf16.gmra.mrb[36].mxu1 %v5929_v27  ;;  %v6030_v27 = vld [vmem:[%s8506_s0 + $0x5a4] ss:$36 sps:$4 sm:$0xff]  }
  0x8b   :  { %3500 = vmatmul.mubr.bf16.gmra.mrb[36].mxu0 %v5930_v28  ;;  %2803 = vmatprep.mubr.bf16.mxu1 %v5934_v29  ;;  %v6032_v28 = vld [vmem:[%s8506_s0 + $0x13c] ss:$36 sps:$4 sm:$0xff]  }
  0x8c   :  { %3509 = vmatprep.mubr.bf16.mxu0 %v5936_v32  ;;  %v6034_v29 = vld [vmem:[%s8506_s0 + $0x5a0] ss:$36 sps:$4 sm:$0xff]  }
  0x8d   :  { %v6044_v32 = vld [vmem:[%s8506_s0 + $0x184] ss:$36 sps:$4 sm:$0xff]  }
  0x92   :  { %2804 = vmatmul.mubr.bf16.gmra.mrb[40].mxu1 %v5938_v33  ;;  %v6162_v33 = vld [vmem:[%s8505_s1 + $0x450] ss:$8 sps:$4 sm:$0xff]  }
  0x93   :  { %3510 = vmatmul.mubr.bf16.gmra.mrb[40].mxu0 %v5942_v34  ;;  %2813 = vmatprep.mubr.bf16.mxu1 %v5946_v35  ;;  %v6164_v34 = vld [vmem:[%s8505_s1 + $0x454] ss:$8 sps:$4 sm:$0xff]   ;;  %v6046_v35 = vld [vmem:[%s8506_s0 + $0x5e8] ss:$36 sps:$4 sm:$0xff]  }
  0x94   :  { %3519 = vmatprep.mubr.bf16.mxu0 %v5948_v38  ;;  %v6050_v38 = vld [vmem:[%s8506_s0 + $0x1cc] ss:$36 sps:$4 sm:$0xff]  }
  0x9a   :  { %2814 = vmatmul.mubr.bf16.gmra.mrb[44].mxu1 %v5950_v40  ;;  %v6056_v40 = vld [vmem:[%s8506_s0 + $0x1c8] ss:$36 sps:$4 sm:$0xff]  }
  0x9b   :  { %3520 = vmatmul.mubr.bf16.gmra.mrb[44].mxu0 %v5951_v42  ;;  %2823 = vmatprep.mubr.bf16.mxu1 %v5955_v43  ;;  %v6059_v42 = vld [vmem:[%s8506_s0 + $0x214] ss:$36 sps:$4 sm:$0xff]  }
  0x9c   :  { %3529 = vmatprep.mubr.bf16.mxu0 %v5957_v44  ;;  %v6061_v43 = vld [vmem:[%s8506_s0 + $0x678] ss:$36 sps:$4 sm:$0xff]   ;;  %v6062_v44 = vld [vmem:[%s8506_s0 + $0x210] ss:$36 sps:$4 sm:$0xff]  }
  0xa2   :  { %2824 = vmatmul.mubr.bf16.gmra.mrb[48].mxu1 %v5959_v46  ;;  %v6065_v46 = vld [vmem:[%s8506_s0 + $0x25c] ss:$36 sps:$4 sm:$0xff]  }
  0xa3   :  { %3530 = vmatmul.mubr.bf16.gmra.mrb[48].mxu0 %v5963_v48  ;;  %2833 = vmatprep.mubr.bf16.mxu1 %v5967_v49  ;;  %v6071_v48 = vld [vmem:[%s8506_s0 + $0x258] ss:$36 sps:$4 sm:$0xff]   ;;  %v6075_v49 = vld [vmem:[%s8506_s0 + $0x70c] ss:$36 sps:$4 sm:$0xff]  }
  0xa4   :  { %3539 = vmatprep.mubr.bf16.mxu0 %v5969_v50  ;;  %v6077_v50 = vld [vmem:[%s8506_s0 + $0x2a4] ss:$36 sps:$4 sm:$0xff]  }
  0xaa   :  { %2834 = vmatmul.mubr.bf16.gmra.mrb[52].mxu1 %v5971_v53  ;;  %v6079_v53 = vld [vmem:[%s8506_s0 + $0x708] ss:$36 sps:$4 sm:$0xff]  }
  0xab   :  { %3540 = vmatmul.mubr.bf16.gmra.mrb[52].mxu0 %v5972_v54  ;;  %2843 = vmatprep.mubr.bf16.mxu1 %v5976_v55  ;;  %v6080_v54 = vld [vmem:[%s8506_s0 + $0x2a0] ss:$36 sps:$4 sm:$0xff]   ;;  %v6081_v55 = vld [vmem:[%s8506_s0 + $0x754] ss:$36 sps:$4 sm:$0xff]  }
  0xac   :  { %3549 = vmatprep.mubr.bf16.mxu0 %v5978_v56  ;;  %v6083_v56 = vld [vmem:[%s8506_s0 + $0x2ec] ss:$36 sps:$4 sm:$0xff]  }
  0xb2   :  { %2844 = vmatmul.mubr.bf16.gmra.mrb[56].mxu1 %v5980_v57  ;;  %v6085_v57 = vld [vmem:[%s8506_s0 + $0x750] ss:$36 sps:$4 sm:$0xff]  }
  0xb3   :  { %3550 = vmatmul.mubr.bf16.gmra.mrb[56].mxu0 %v5984_v58  ;;  %2853 = vmatprep.mubr.bf16.mxu1 %v5988_v59  ;;  %v6089_v58 = vld [vmem:[%s8506_s0 + $0x2e8] ss:$36 sps:$4 sm:$0xff]   ;;  %v6090_v59 = vld [vmem:[%s8506_s0 + $0x79c] ss:$36 sps:$4 sm:$0xff]  }
  0xb4   :  { %3559 = vmatprep.mubr.bf16.mxu0 %v5990_v60  ;;  %v6092_v60 = vld [vmem:[%s8506_s0 + $0x334] ss:$36 sps:$4 sm:$0xff]  }
  0xba   :  { %2854 = vmatmul.mubr.bf16.gmra.mrb[60].mxu1 %v5992_v63  ;;  %v6096_v63 = vld [vmem:[%s8506_s0 + $0x7e4] ss:$36 sps:$4 sm:$0xff]  }
  0xbb   :  { %3560 = vmatmul.mubr.bf16.gmra.mrb[60].mxu0 %v5993_v0  ;;  %2863 = vmatprep.mubr.bf16.mxu1 %v5997_v1  ;;  %v6098_v0 = vld [vmem:[%s8506_s0 + $0x37c] ss:$36 sps:$4 sm:$0xff]  }
  0xbc   :  { %3762 = vmatprep.mubr.bf16.mxu0 %v6001_v2  ;;  %v6100_v1 = vld [vmem:[%s8506_s0 + $0x7e0] ss:$36 sps:$4 sm:$0xff]   ;;  %v6104_v2 = vld [vmem:[%s8506_s0 + $0x378] ss:$36 sps:$4 sm:$0xff]  }
  0xc2   :  { %2864 = vmatmul.mubr.bf16.gmra.mrb[64].mxu1 %v6002_v5  ;;  %v6216_v5 = vld [vmem:[%s8505_s1 + $0x470] ss:$8 sps:$4 sm:$0xff]  }
  0xc3   :  { %3763 = vmatmul.mubr.bf16.vlgmr.msra.gmra.mrb[0].mxu0 %v5999_v4  ;;  %2873 = vmatprep.mubr.bf16.mxu1 %v6009_v7  ;;  %v6110_v4 = vld [vmem:[%s8506_s0 + $0x3c4] ss:$36 sps:$4 sm:$0xff]  }
  0xc4   :  { %4084 = vmatpush1.bf16.msra.mxu0 %v6006_v6  ;;  %3772 = vmatprep.mubr.bf16.mxu0 %v6011_v8  ;;  %v6218_v6 = vld [vmem:[%s8505_s1 + $0x474] ss:$8 sps:$4 sm:$0xff]   ;;  %v6112_v7 = vld [vmem:[%s8506_s0 + $0x828] ss:$36 sps:$4 sm:$0xff]   ;;  %v6113_v8 = vld [vmem:[%s8506_s0 + $0x3c0] ss:$36 sps:$4 sm:$0xff]  }
  0xc5   :  { %4085 = vmatprep.subr.bf16.mxu0 %v6041_v9  ;;  %v6114_v9 = vld [vmem:[%s8506_s0 + $0x874] ss:$36 sps:$4 sm:$0xff]  }
  0xc8   :  { %4086 = vmatpush1.bf16.msra.mxu0 %v6039_v10  ;;  %v6116_v10 = vld [vmem:[%s8506_s0 + $0x40c] ss:$36 sps:$4 sm:$0xff]  }
  0xc9   :  { %4087 = vmatprep.subr.bf16.mxu0 %v6074_v13  ;;  %v6123_v13 = vld [vmem:[%s8506_s0 + $0x8bc] ss:$36 sps:$4 sm:$0xff]  }
  0xca   :  { %2874 = vmatmul.mubr.bf16.gmra.mrb[68].mxu1 %v6013_v11  ;;  %v6118_v11 = vld [vmem:[%s8506_s0 + $0x870] ss:$36 sps:$4 sm:$0xff]  }
  0xcb   :  { %3773 = vmatmul.mubr.bf16.gmra.mrb[4].mxu0 %v6014_v12  ;;  %2883 = vmatprep.mubr.bf16.mxu1 %v6015_v14  ;;  %v6122_v12 = vld [vmem:[%s8506_s0 + $0x408] ss:$36 sps:$4 sm:$0xff]   ;;  %v6125_v14 = vld [vmem:[%s8506_s0 + $0x454] ss:$36 sps:$4 sm:$0xff]  }
  0xcc   :  { %3782 = vmatprep.mubr.bf16.mxu0 %v6017_v15  ;;  %4088 = vmatpush1.bf16.msra.mxu0 %v6072_v16  ;;  %v6127_v15 = vld [vmem:[%s8506_s0 + $0x8b8] ss:$36 sps:$4 sm:$0xff]   ;;  %v6128_v16 = vld [vmem:[%s8506_s0 + $0x450] ss:$36 sps:$4 sm:$0xff]  }
  0xcd   :  { %4089 = vmatprep.subr.bf16.mxu0 %v6107_v17  ;;  %v6131_v17 = vld [vmem:[%s8506_s0 + $0xc] ss:$36 sps:$4 sm:$0xff]  }
  0xd0   :  { %4090 = vmatpush1.bf16.msra.mxu0 %v6105_v18  ;;  %v6132_v18 = vld [vmem:[%s8506_s0 + $0x49c] ss:$36 sps:$4 sm:$0xff]  }
  0xd1   :  { %4091 = vmatprep.subr.bf16.mxu0 %v6137_v19  ;;  %v6129_v19 = vld [vmem:[%s8506_s0 + $0x8] ss:$36 sps:$4 sm:$0xff]  }
  0xd2   :  { %2884 = vmatmul.mubr.bf16.gmra.mrb[72].mxu1 %v6019_v20  ;;  %v6134_v20 = vld [vmem:[%s8506_s0 + $0x498] ss:$36 sps:$4 sm:$0xff]  }
  0xd3   :  { %3783 = vmatmul.mubr.bf16.gmra.mrb[8].mxu0 %v6023_v21  ;;  %2893 = vmatprep.mubr.bf16.mxu1 %v6024_v22  ;;  %v6138_v21 = vld [vmem:[%s8506_s0 + $0x54] ss:$36 sps:$4 sm:$0xff]   ;;  %v6140_v22 = vld [vmem:[%s8506_s0 + $0x4e4] ss:$36 sps:$4 sm:$0xff]  }
  0xd4   :  { %3792 = vmatprep.mubr.bf16.mxu0 %v6026_v23  ;;  %4092 = vmatpush1.bf16.msra.mxu0 %v6135_v24  ;;  %v6366_v23 = vld [vmem:[%s8505_s1 + $0x200] ss:$8 sps:$4 sm:$0xff]   ;;  %v6367_v24 = vld [vmem:[%s8505_s1 + $0x214] ss:$8 sps:$4 sm:$0xff]  }
  0xd5   :  { %4093 = vmatprep.subr.bf16.mxu0 %v6164_v34  ;;  %v6149_v34 = vld [vmem:[%s8506_s0 + $0x528] ss:$36 sps:$4 sm:$0xff]  }
  0xd8   :  { %4094 = vmatpush1.bf16.msra.mxu0 %v6162_v33  ;;  %v6148_v33 = vld [vmem:[%s8506_s0 + $0x98] ss:$36 sps:$4 sm:$0xff]  }
  0xd9   :  { %4095 = vmatprep.subr.bf16.mxu0 %v6191_v52  ;;  %v6167_v52 = vld [vmem:[%s8506_s0 + $0x604] ss:$36 sps:$4 sm:$0xff]  }
  0xda   :  { %2894 = vmatmul.mubr.bf16.gmra.mrb[76].mxu1 %v6028_v25  ;;  %v6142_v25 = vld [vmem:[%s8506_s0 + $0x50] ss:$36 sps:$4 sm:$0xff]  }
  0xdb   :  { %3793 = vmatmul.mubr.bf16.gmra.mrb[12].mxu0 %v6029_v26  ;;  %2903 = vmatprep.mubr.bf16.mxu1 %v6030_v27  ;;  %v6143_v26 = vld [vmem:[%s8506_s0 + $0x4e0] ss:$36 sps:$4 sm:$0xff]  }
  0xdc   :  { %3802 = vmatprep.mubr.bf16.mxu0 %v6032_v28  ;;  %4096 = vmatpush1.bf16.msra.mxu0 %v6189_v51  ;;  %v6144_v27 = vld [vmem:[%s8506_s0 + $0x9c] ss:$36 sps:$4 sm:$0xff]   ;;  %v6146_v28 = vld [vmem:[%s8506_s0 + $0x52c] ss:$36 sps:$4 sm:$0xff]   ;;  %v6165_v51 = vld [vmem:[%s8506_s0 + $0x174] ss:$36 sps:$4 sm:$0xff]  }
  0xdd   :  { %4097 = vmatprep.subr.bf16.mxu0 %v6218_v6  ;;  %v6389_v6 = vld [vmem:[%s8505_s1 + $0x2c4] ss:$8 sps:$4 sm:$0xff]  }
  0xe0   :  { %4098 = vmatpush1.bf16.msra.mxu0 %v6216_v5  ;;  %v6388_v5 = vld [vmem:[%s8505_s1 + $0x2b0] ss:$8 sps:$4 sm:$0xff]  }
  0xe2   :  { %2904 = vmatmul.mubr.bf16.gmra.mrb[80].mxu1 %v6034_v29  ;;  %v6368_v29 = vld [vmem:[%s8505_s1 + $0x210] ss:$8 sps:$4 sm:$0xff]  }
  0xe3   :  { %3803 = vmatmul.mubr.bf16.gmra.mrb[16].mxu0 %v6038_v30  ;;  %2913 = vmatprep.mubr.bf16.mxu1 %v6042_v31  ;;  %v6369_v30 = vld [vmem:[%s8505_s1 + $0x224] ss:$8 sps:$4 sm:$0xff]   ;;  %v6370_v31 = vld [vmem:[%s8505_s1 + $0x220] ss:$8 sps:$4 sm:$0xff]  }
  0xe4   :  { %3812 = vmatprep.mubr.bf16.mxu0 %v6044_v32  ;;  %v6371_v32 = vld [vmem:[%s8505_s1 + $0x234] ss:$8 sps:$4 sm:$0xff]  }
  0xea   :  { %2914 = vmatmul.mubr.bf16.gmra.mrb[84].mxu1 %v6046_v35  ;;  %v6150_v35 = vld [vmem:[%s8506_s0 + $0xe4] ss:$36 sps:$4 sm:$0xff]  }
  0xeb   :  { %3813 = vmatmul.mubr.bf16.gmra.mrb[20].mxu0 %v6047_v36  ;;  %2923 = vmatprep.mubr.bf16.mxu1 %v6048_v37  ;;  %v6152_v36 = vld [vmem:[%s8506_s0 + $0x574] ss:$36 sps:$4 sm:$0xff]  }
  0xec   :  { %3822 = vmatprep.mubr.bf16.mxu0 %v6050_v38  ;;  %v6372_v37 = vld [vmem:[%s8505_s1 + $0x230] ss:$8 sps:$4 sm:$0xff]   ;;  %v6373_v38 = vld [vmem:[%s8505_s1 + $0x244] ss:$8 sps:$4 sm:$0xff]  }
  0xf2   :  { %2924 = vmatmul.mubr.bf16.gmra.mrb[88].mxu1 %v6052_v39  ;;  %v6374_v39 = vld [vmem:[%s8505_s1 + $0x240] ss:$8 sps:$4 sm:$0xff]  }
  0xf3   :  { %3823 = vmatmul.mubr.bf16.gmra.mrb[24].mxu0 %v6056_v40  ;;  %2933 = vmatprep.mubr.bf16.mxu1 %v6057_v41  ;;  %v6375_v40 = vld [vmem:[%s8505_s1 + $0x254] ss:$8 sps:$4 sm:$0xff]   ;;  %v6154_v41 = vld [vmem:[%s8506_s0 + $0xe0] ss:$36 sps:$4 sm:$0xff]  }
  0xf4   :  { %3832 = vmatprep.mubr.bf16.mxu0 %v6059_v42  ;;  %v6155_v42 = vld [vmem:[%s8506_s0 + $0x570] ss:$36 sps:$4 sm:$0xff]  }
  0xfa   :  { %2934 = vmatmul.mubr.bf16.gmra.mrb[92].mxu1 %v6061_v43  ;;  %v6156_v43 = vld [vmem:[%s8506_s0 + $0x12c] ss:$36 sps:$4 sm:$0xff]  }
  0xfb   :  { %3833 = vmatmul.mubr.bf16.gmra.mrb[28].mxu0 %v6062_v44  ;;  %2943 = vmatprep.mubr.bf16.mxu1 %v6063_v45  ;;  %v6158_v44 = vld [vmem:[%s8506_s0 + $0x5bc] ss:$36 sps:$4 sm:$0xff]   ;;  %v6376_v45 = vld [vmem:[%s8505_s1 + $0x250] ss:$8 sps:$4 sm:$0xff]  }
  0xfc   :  { %3842 = vmatprep.mubr.bf16.mxu0 %v6065_v46  ;;  %v6377_v46 = vld [vmem:[%s8505_s1 + $0x264] ss:$8 sps:$4 sm:$0xff]  }
 0x102   :  { %2944 = vmatmul.mubr.bf16.gmra.mrb[96].mxu1 %v6067_v47  ;;  %v6378_v47 = vld [vmem:[%s8505_s1 + $0x260] ss:$8 sps:$4 sm:$0xff]  }
 0x103   :  { %3843 = vmatmul.mubr.bf16.gmra.mrb[32].mxu0 %v6071_v48  ;;  %2953 = vmatprep.mubr.bf16.mxu1 %v6075_v49  ;;  %v6379_v48 = vld [vmem:[%s8505_s1 + $0x274] ss:$8 sps:$4 sm:$0xff]   ;;  %v6160_v49 = vld [vmem:[%s8506_s0 + $0x128] ss:$36 sps:$4 sm:$0xff]  }
 0x104   :  { %3852 = vmatprep.mubr.bf16.mxu0 %v6077_v50  ;;  %v6161_v50 = vld [vmem:[%s8506_s0 + $0x5b8] ss:$36 sps:$4 sm:$0xff]  }
 0x10a   :  { %2954 = vmatmul.mubr.bf16.gmra.mrb[100].mxu1 %v6079_v53  ;;  %v6380_v53 = vld [vmem:[%s8505_s1 + $0x270] ss:$8 sps:$4 sm:$0xff]  }
 0x10b   :  { %3853 = vmatmul.mubr.bf16.gmra.mrb[36].mxu0 %v6080_v54  ;;  %2963 = vmatprep.mubr.bf16.mxu1 %v6081_v55  ;;  %v6381_v54 = vld [vmem:[%s8505_s1 + $0x284] ss:$8 sps:$4 sm:$0xff]   ;;  %v6382_v55 = vld [vmem:[%s8505_s1 + $0x280] ss:$8 sps:$4 sm:$0xff]  }
 0x10c   :  { %3862 = vmatprep.mubr.bf16.mxu0 %v6083_v56  ;;  %v6383_v56 = vld [vmem:[%s8505_s1 + $0x294] ss:$8 sps:$4 sm:$0xff]  }
 0x112   :  { %2964 = vmatmul.mubr.bf16.gmra.mrb[104].mxu1 %v6085_v57  ;;  %v6169_v57 = vld [vmem:[%s8506_s0 + $0x170] ss:$36 sps:$4 sm:$0xff]  }
 0x113   :  { %3863 = vmatmul.mubr.bf16.gmra.mrb[40].mxu0 %v6089_v58  ;;  %2973 = vmatprep.mubr.bf16.mxu1 %v6090_v59  ;;  %v6170_v58 = vld [vmem:[%s8506_s0 + $0x600] ss:$36 sps:$4 sm:$0xff]  }
 0x114   :  { %3872 = vmatprep.mubr.bf16.mxu0 %v6092_v60  ;;  %v6171_v59 = vld [vmem:[%s8506_s0 + $0x1bc] ss:$36 sps:$4 sm:$0xff]   ;;  %v6173_v60 = vld [vmem:[%s8506_s0 + $0x64c] ss:$36 sps:$4 sm:$0xff]  }
 0x11a   :  { %2974 = vmatmul.mubr.bf16.gmra.mrb[108].mxu1 %v6094_v61  ;;  %v6384_v61 = vld [vmem:[%s8505_s1 + $0x290] ss:$8 sps:$4 sm:$0xff]  }
 0x11b   :  { %3873 = vmatmul.mubr.bf16.gmra.mrb[44].mxu0 %v6095_v62  ;;  %2983 = vmatprep.mubr.bf16.mxu1 %v6096_v63  ;;  %v6385_v62 = vld [vmem:[%s8505_s1 + $0x2a4] ss:$8 sps:$4 sm:$0xff]   ;;  %v6386_v63 = vld [vmem:[%s8505_s1 + $0x2a0] ss:$8 sps:$4 sm:$0xff]  }
 0x11c   :  { %3882 = vmatprep.mubr.bf16.mxu0 %v6098_v0  ;;  %v6387_v0 = vld [vmem:[%s8505_s1 + $0x2b4] ss:$8 sps:$4 sm:$0xff]  }
 0x122   :  { %2984 = vmatmul.mubr.bf16.gmra.mrb[112].mxu1 %v6100_v1  ;;  %v6175_v1 = vld [vmem:[%s8506_s0 + $0x1b8] ss:$36 sps:$4 sm:$0xff]  }
 0x123   :  { %3883 = vmatmul.mubr.bf16.gmra.mrb[48].mxu0 %v6104_v2  ;;  %2993 = vmatprep.mubr.bf16.mxu1 %v6108_v3  ;;  %v6176_v2 = vld [vmem:[%s8506_s0 + $0x648] ss:$36 sps:$4 sm:$0xff]  }
 0x124   :  { %3892 = vmatprep.mubr.bf16.mxu0 %v6110_v4  ;;  %v6177_v3 = vld [vmem:[%s8506_s0 + $0x204] ss:$36 sps:$4 sm:$0xff]   ;;  %v6179_v4 = vld [vmem:[%s8506_s0 + $0x694] ss:$36 sps:$4 sm:$0xff]  }
 0x12a   :  { %2994 = vmatmul.mubr.bf16.gmra.mrb[116].mxu1 %v6112_v7  ;;  %v6390_v7 = vld [vmem:[%s8505_s1 + $0x2c0] ss:$8 sps:$4 sm:$0xff]  }
 0x12b   :  { %3893 = vmatmul.mubr.bf16.gmra.mrb[52].mxu0 %v6113_v8  ;;  %3003 = vmatprep.mubr.bf16.mxu1 %v6114_v9  ;;  %v6391_v8 = vld [vmem:[%s8505_s1 + $0x2d4] ss:$8 sps:$4 sm:$0xff]   ;;  %v6181_v9 = vld [vmem:[%s8506_s0 + $0x200] ss:$36 sps:$4 sm:$0xff]  }
 0x12c   :  { %3902 = vmatprep.mubr.bf16.mxu0 %v6116_v10  ;;  %v6182_v10 = vld [vmem:[%s8506_s0 + $0x690] ss:$36 sps:$4 sm:$0xff]  }
 0x132   :  { %3004 = vmatmul.mubr.bf16.gmra.mrb[120].mxu1 %v6118_v11  ;;  %v6183_v11 = vld [vmem:[%s8506_s0 + $0x24c] ss:$36 sps:$4 sm:$0xff]  }
 0x133   :  { %3903 = vmatmul.mubr.bf16.gmra.mrb[56].mxu0 %v6122_v12  ;;  %3013 = vmatprep.mubr.bf16.mxu1 %v6123_v13  ;;  %v6185_v12 = vld [vmem:[%s8506_s0 + $0x6dc] ss:$36 sps:$4 sm:$0xff]   ;;  %v6392_v13 = vld [vmem:[%s8505_s1 + $0x2d0] ss:$8 sps:$4 sm:$0xff]  }
 0x134   :  { %3912 = vmatprep.mubr.bf16.mxu0 %v6125_v14  ;;  %v6393_v14 = vld [vmem:[%s8505_s1 + $0x2e4] ss:$8 sps:$4 sm:$0xff]  }
 0x13a   :  { %3014 = vmatmul.mubr.bf16.gmra.mrb[124].mxu1 %v6127_v15  ;;  %v6394_v15 = vld [vmem:[%s8505_s1 + $0x2e0] ss:$8 sps:$4 sm:$0xff]  }
 0x13b   :  { %3913 = vmatmul.mubr.bf16.gmra.mrb[60].mxu0 %v6128_v16  ;;  %3056 = vmatprep.mubr.bf16.mxu1 %v6131_v17  ;;  %v6395_v16 = vld [vmem:[%s8505_s1 + $0x2f4] ss:$8 sps:$4 sm:$0xff]   ;;  %v6187_v17 = vld [vmem:[%s8506_s0 + $0x248] ss:$36 sps:$4 sm:$0xff]  }
 0x13c   :  { %3922 = vmatprep.mubr.bf16.mxu0 %v6132_v18  ;;  %v6188_v18 = vld [vmem:[%s8506_s0 + $0x6d8] ss:$36 sps:$4 sm:$0xff]  }
 0x142   :  { %3057 = vmatmul.mubr.bf16.vlgmr.msra.gmra.mrb[0].mxu1 %v6129_v19  ;;  %v6192_v19 = vld [vmem:[%s8506_s0 + $0x294] ss:$36 sps:$4 sm:$0xff]  }
 0x143   :  { %3923 = vmatmul.mubr.bf16.gmra.mrb[64].mxu0 %v6134_v20  ;;  %5204 = vmatpush1.bf16.msra.mxu1 %v6366_v23  ;;  %v6194_v20 = vld [vmem:[%s8506_s0 + $0x724] ss:$36 sps:$4 sm:$0xff]  }
 0x144   :  { %3066 = vmatprep.mubr.bf16.mxu1 %v6138_v21  ;;  %3932 = vmatprep.mubr.bf16.mxu0 %v6140_v22  ;;  %v6396_v21 = vld [vmem:[%s8505_s1 + $0x2f0] ss:$8 sps:$4 sm:$0xff]   ;;  %v6197_v23 = vld [vmem:[%s8506_s0 + $0x720] ss:$36 sps:$4 sm:$0xff]  }
 0x145   :  { %5189 = vmatprep.subr.bf16.mxu1 %v6367_v24  ;;  %v6196_v22 = vld [vmem:[%s8506_s0 + $0x290] ss:$36 sps:$4 sm:$0xff]   ;;  %v6198_v24 = vld [vmem:[%s8506_s0 + $0x2dc] ss:$36 sps:$4 sm:$0xff]  }
 0x147   :  { %5205 = vmatpush1.bf16.msra.mxu1 %v6368_v29  ;;  %v6206_v29 = vld [vmem:[%s8506_s0 + $0x7b4] ss:$36 sps:$4 sm:$0xff]  }
 0x148   :  { %5190 = vmatprep.subr.bf16.mxu1 %v6369_v30  ;;  %v6208_v30 = vld [vmem:[%s8506_s0 + $0x320] ss:$36 sps:$4 sm:$0xff]  }
 0x14a   :  { %3067 = vmatmul.mubr.bf16.gmra.mrb[4].mxu1 %v6142_v25  ;;  %v6200_v25 = vld [vmem:[%s8506_s0 + $0x76c] ss:$36 sps:$4 sm:$0xff]  }
 0x14b   :  { %3933 = vmatmul.mubr.bf16.gmra.mrb[68].mxu0 %v6143_v26  ;;  %3076 = vmatprep.mubr.bf16.mxu1 %v6144_v27  ;;  %v6202_v26 = vld [vmem:[%s8506_s0 + $0x2d8] ss:$36 sps:$4 sm:$0xff]   ;;  %v6203_v27 = vld [vmem:[%s8506_s0 + $0x768] ss:$36 sps:$4 sm:$0xff]  }
 0x14c   :  { %3942 = vmatprep.mubr.bf16.mxu0 %v6146_v28  ;;  %5206 = vmatpush1.bf16.msra.mxu1 %v6370_v31  ;;  %v6204_v28 = vld [vmem:[%s8506_s0 + $0x324] ss:$36 sps:$4 sm:$0xff]   ;;  %v6209_v31 = vld [vmem:[%s8506_s0 + $0x7b0] ss:$36 sps:$4 sm:$0xff]  }
 0x14d   :  { %5191 = vmatprep.subr.bf16.mxu1 %v6371_v32  ;;  %v6210_v32 = vld [vmem:[%s8506_s0 + $0x36c] ss:$36 sps:$4 sm:$0xff]  }
 0x150   :  { %5207 = vmatpush1.bf16.msra.mxu1 %v6372_v37  ;;  %v6221_v37 = vld [vmem:[%s8506_s0 + $0x844] ss:$36 sps:$4 sm:$0xff]  }
 0x151   :  { %5192 = vmatprep.subr.bf16.mxu1 %v6373_v38  ;;  %v6223_v38 = vld [vmem:[%s8506_s0 + $0x3b0] ss:$36 sps:$4 sm:$0xff]  }
 0x152   :  { %3077 = vmatmul.mubr.bf16.gmra.mrb[8].mxu1 %v6148_v33  ;;  %v6212_v33 = vld [vmem:[%s8506_s0 + $0x7fc] ss:$36 sps:$4 sm:$0xff]  }
 0x153   :  { %3943 = vmatmul.mubr.bf16.gmra.mrb[72].mxu0 %v6149_v34  ;;  %3086 = vmatprep.mubr.bf16.mxu1 %v6150_v35  ;;  %v6214_v34 = vld [vmem:[%s8506_s0 + $0x368] ss:$36 sps:$4 sm:$0xff]   ;;  %v6215_v35 = vld [vmem:[%s8506_s0 + $0x7f8] ss:$36 sps:$4 sm:$0xff]  }
 0x154   :  { %3952 = vmatprep.mubr.bf16.mxu0 %v6152_v36  ;;  %5208 = vmatpush1.bf16.msra.mxu1 %v6374_v39  ;;  %v6219_v36 = vld [vmem:[%s8506_s0 + $0x3b4] ss:$36 sps:$4 sm:$0xff]   ;;  %v6224_v39 = vld [vmem:[%s8506_s0 + $0x840] ss:$36 sps:$4 sm:$0xff]  }
 0x155   :  { %5193 = vmatprep.subr.bf16.mxu1 %v6375_v40  ;;  %v6225_v40 = vld [vmem:[%s8506_s0 + $0x3fc] ss:$36 sps:$4 sm:$0xff]  }
 0x158   :  { %5209 = vmatpush1.bf16.msra.mxu1 %v6376_v45  ;;  %v6233_v45 = vld [vmem:[%s8506_s0 + $0x8d4] ss:$36 sps:$4 sm:$0xff]  }
 0x159   :  { %5194 = vmatprep.subr.bf16.mxu1 %v6377_v46  ;;  %v6235_v46 = vld [vmem:[%s8506_s0 + $0x440] ss:$36 sps:$4 sm:$0xff]  }
 0x15a   :  { %3087 = vmatmul.mubr.bf16.gmra.mrb[12].mxu1 %v6154_v41  ;;  %v6227_v41 = vld [vmem:[%s8506_s0 + $0x88c] ss:$36 sps:$4 sm:$0xff]  }
 0x15b   :  { %3953 = vmatmul.mubr.bf16.gmra.mrb[76].mxu0 %v6155_v42  ;;  %3096 = vmatprep.mubr.bf16.mxu1 %v6156_v43  ;;  %v6229_v42 = vld [vmem:[%s8506_s0 + $0x3f8] ss:$36 sps:$4 sm:$0xff]   ;;  %v6230_v43 = vld [vmem:[%s8506_s0 + $0x888] ss:$36 sps:$4 sm:$0xff]  }
 0x15c   :  { %3962 = vmatprep.mubr.bf16.mxu0 %v6158_v44  ;;  %5210 = vmatpush1.bf16.msra.mxu1 %v6378_v47  ;;  %v6231_v44 = vld [vmem:[%s8506_s0 + $0x444] ss:$36 sps:$4 sm:$0xff]   ;;  %v6236_v47 = vld [vmem:[%s8506_s0 + $0x8d0] ss:$36 sps:$4 sm:$0xff]  }
 0x15d   :  { %5195 = vmatprep.subr.bf16.mxu1 %v6379_v48  ;;  %v6237_v48 = vld [vmem:[%s8506_s0 + $0x48c] ss:$36 sps:$4 sm:$0xff]  }
 0x160   :  { %5211 = vmatpush1.bf16.msra.mxu1 %v6380_v53  ;;  %v6243_v53 = vld [vmem:[%s8506_s0 + $0x4d0] ss:$36 sps:$4 sm:$0xff]  }
 0x161   :  { %5196 = vmatprep.subr.bf16.mxu1 %v6381_v54  ;;  %v6244_v54 = vld [vmem:[%s8506_s0 + $0x68] ss:$36 sps:$4 sm:$0xff]  }
 0x162   :  { %3097 = vmatmul.mubr.bf16.gmra.mrb[16].mxu1 %v6160_v49  ;;  %v6397_v49 = vmov 0  }
 0x163   :  { %3963 = vmatmul.mubr.bf16.gmra.mrb[80].mxu0 %v6161_v50  ;;  %3106 = vmatprep.mubr.bf16.mxu1 %v6165_v51  ;;  %v6239_v50 = vld [vmem:[%s8506_s0 + $0x488] ss:$36 sps:$4 sm:$0xff]   ;;  %v6240_v51 = vld [vmem:[%s8506_s0 + $0x20] ss:$36 sps:$4 sm:$0xff]  }
 0x164   :  { %3972 = vmatprep.mubr.bf16.mxu0 %v6167_v52  ;;  %5212 = vmatpush1.bf16.msra.mxu1 %v6382_v55  ;;  %v6241_v52 = vld [vmem:[%s8506_s0 + $0x4d4] ss:$36 sps:$4 sm:$0xff]   ;;  %v6245_v55 = vld [vmem:[%s8506_s0 + $0x51c] ss:$36 sps:$4 sm:$0xff]  }
 0x165   :  { %5197 = vmatprep.subr.bf16.mxu1 %v6383_v56  ;;  %v6247_v56 = vld [vmem:[%s8506_s0 + $0x518] ss:$36 sps:$4 sm:$0xff]  }
 0x168   :  { %5213 = vmatpush1.bf16.msra.mxu1 %v6384_v61  ;;  %v6253_v61 = vld [vmem:[%s8506_s0 + $0x5ac] ss:$36 sps:$4 sm:$0xff]  }
 0x169   :  { %5198 = vmatprep.subr.bf16.mxu1 %v6385_v62  ;;  %v6255_v62 = vld [vmem:[%s8506_s0 + $0x5a8] ss:$36 sps:$4 sm:$0xff]  }
 0x16a   :  { %3107 = vmatmul.mubr.bf16.gmra.mrb[20].mxu1 %v6169_v57  ;;  %v6248_v57 = vld [vmem:[%s8506_s0 + $0xb0] ss:$36 sps:$4 sm:$0xff]  }
 0x16b   :  { %3973 = vmatmul.mubr.bf16.gmra.mrb[84].mxu0 %v6170_v58  ;;  %3116 = vmatprep.mubr.bf16.mxu1 %v6171_v59  ;;  %v6249_v58 = vld [vmem:[%s8506_s0 + $0x564] ss:$36 sps:$4 sm:$0xff]  }
 0x16c   :  { %3982 = vmatprep.mubr.bf16.mxu0 %v6173_v60  ;;  %5214 = vmatpush1.bf16.msra.mxu1 %v6386_v63  ;;  %v6251_v59 = vld [vmem:[%s8506_s0 + $0x560] ss:$36 sps:$4 sm:$0xff]   ;;  %v6252_v60 = vld [vmem:[%s8506_s0 + $0xf8] ss:$36 sps:$4 sm:$0xff]  }
 0x16d   :  { %5199 = vmatprep.subr.bf16.mxu1 %v6387_v0  ;;  %v6256_v63 = vld [vmem:[%s8506_s0 + $0x140] ss:$36 sps:$4 sm:$0xff]   ;;  %v6257_v0 = vld [vmem:[%s8506_s0 + $0x5f4] ss:$36 sps:$4 sm:$0xff]  }
 0x170   :  { %5215 = vmatpush1.bf16.msra.mxu1 %v6388_v5  ;;  %v6264_v5 = vld [vmem:[%s8506_s0 + $0x1d0] ss:$36 sps:$4 sm:$0xff]  }
 0x171   :  { %5200 = vmatprep.subr.bf16.mxu1 %v6389_v6  ;;  %v6265_v6 = vld [vmem:[%s8506_s0 + $0x684] ss:$36 sps:$4 sm:$0xff]  }
 0x172   :  { %3117 = vmatmul.mubr.bf16.gmra.mrb[24].mxu1 %v6175_v1  ;;  %v6259_v1 = vld [vmem:[%s8506_s0 + $0x5f0] ss:$36 sps:$4 sm:$0xff]  }
 0x173   :  { %3983 = vmatmul.mubr.bf16.gmra.mrb[88].mxu0 %v6176_v2  ;;  %3126 = vmatprep.mubr.bf16.mxu1 %v6177_v3  ;;  %v6260_v2 = vld [vmem:[%s8506_s0 + $0x188] ss:$36 sps:$4 sm:$0xff]   ;;  %v6261_v3 = vld [vmem:[%s8506_s0 + $0x63c] ss:$36 sps:$4 sm:$0xff]  }
 0x174   :  { %3992 = vmatprep.mubr.bf16.mxu0 %v6179_v4  ;;  %5216 = vmatpush1.bf16.msra.mxu1 %v6390_v7  ;;  %v6263_v4 = vld [vmem:[%s8506_s0 + $0x638] ss:$36 sps:$4 sm:$0xff]   ;;  %v6267_v7 = vld [vmem:[%s8506_s0 + $0x680] ss:$36 sps:$4 sm:$0xff]  }
 0x175   :  { %5201 = vmatprep.subr.bf16.mxu1 %v6391_v8  ;;  %v6268_v8 = vld [vmem:[%s8506_s0 + $0x218] ss:$36 sps:$4 sm:$0xff]  }
 0x178   :  { %5217 = vmatpush1.bf16.msra.mxu1 %v6392_v13  ;;  %v6275_v13 = vld [vmem:[%s8506_s0 + $0x710] ss:$36 sps:$4 sm:$0xff]  }
 0x179   :  { %5202 = vmatprep.subr.bf16.mxu1 %v6393_v14  ;;  %v6276_v14 = vld [vmem:[%s8506_s0 + $0x2a8] ss:$36 sps:$4 sm:$0xff]  }
 0x17a   :  { %3127 = vmatmul.mubr.bf16.gmra.mrb[28].mxu1 %v6181_v9  ;;  %v6269_v9 = vld [vmem:[%s8506_s0 + $0x6cc] ss:$36 sps:$4 sm:$0xff]  }
 0x17b   :  { %3993 = vmatmul.mubr.bf16.gmra.mrb[92].mxu0 %v6182_v10  ;;  %3136 = vmatprep.mubr.bf16.mxu1 %v6183_v11  ;;  %v6271_v10 = vld [vmem:[%s8506_s0 + $0x6c8] ss:$36 sps:$4 sm:$0xff]   ;;  %v6272_v11 = vld [vmem:[%s8506_s0 + $0x260] ss:$36 sps:$4 sm:$0xff]  }
 0x17c   :  { %4002 = vmatprep.mubr.bf16.mxu0 %v6185_v12  ;;  %5218 = vmatpush1.bf16.msra.mxu1 %v6394_v15  ;;  %v6273_v12 = vld [vmem:[%s8506_s0 + $0x714] ss:$36 sps:$4 sm:$0xff]   ;;  %v6277_v15 = vld [vmem:[%s8506_s0 + $0x75c] ss:$36 sps:$4 sm:$0xff]  }
 0x17d   :  { %5203 = vmatprep.subr.bf16.mxu1 %v6395_v16  ;;  %v6279_v16 = vld [vmem:[%s8506_s0 + $0x758] ss:$36 sps:$4 sm:$0xff]  }
 0x180   :  { %5219 = vmatpush1.bf16.msra.mxu1 %v6396_v21  ;;  %v6283_v21 = vld [vmem:[%s8506_s0 + $0x7a0] ss:$36 sps:$4 sm:$0xff]  }
 0x182   :  { %3137 = vmatmul.mubr.bf16.gmra.mrb[32].mxu1 %v6187_v17  ;;  %v6280_v17 = vld [vmem:[%s8506_s0 + $0x2f0] ss:$36 sps:$4 sm:$0xff]  }
 0x183   :  { %4003 = vmatmul.mubr.bf16.gmra.mrb[96].mxu0 %v6188_v18  ;;  %3146 = vmatprep.mubr.bf16.mxu1 %v6192_v19  ;;  %v6281_v18 = vld [vmem:[%s8506_s0 + $0x7a4] ss:$36 sps:$4 sm:$0xff]  }
 0x184   :  { %4012 = vmatprep.mubr.bf16.mxu0 %v6194_v20 }
 0x18a   :  { %3147 = vmatmul.mubr.bf16.gmra.mrb[36].mxu1 %v6196_v22  ;;  %v6284_v22 = vld [vmem:[%s8506_s0 + $0x338] ss:$36 sps:$4 sm:$0xff]  }
 0x18b   :  { %4013 = vmatmul.mubr.bf16.gmra.mrb[100].mxu0 %v6197_v23  ;;  %3156 = vmatprep.mubr.bf16.mxu1 %v6198_v24  ;;  %v6285_v24 = vld [vmem:[%s8506_s0 + $0x7ec] ss:$36 sps:$4 sm:$0xff]  }
 0x18c   :  { %4022 = vmatprep.mubr.bf16.mxu0 %v6200_v25 }
 0x192   :  { %3157 = vmatmul.mubr.bf16.gmra.mrb[40].mxu1 %v6202_v26 }
 0x193   :  { %4023 = vmatmul.mubr.bf16.gmra.mrb[104].mxu0 %v6203_v27  ;;  %3166 = vmatprep.mubr.bf16.mxu1 %v6204_v28  ;;  %v6287_v28 = vld [vmem:[%s8506_s0 + $0x7e8] ss:$36 sps:$4 sm:$0xff]  }
 0x194   :  { %4032 = vmatprep.mubr.bf16.mxu0 %v6206_v29  ;;  %v6288_v29 = vld [vmem:[%s8506_s0 + $0x380] ss:$36 sps:$4 sm:$0xff]  }
 0x19a   :  { %3167 = vmatmul.mubr.bf16.gmra.mrb[44].mxu1 %v6208_v30 }
 0x19b   :  { %4033 = vmatmul.mubr.bf16.gmra.mrb[108].mxu0 %v6209_v31  ;;  %3176 = vmatprep.mubr.bf16.mxu1 %v6210_v32  ;;  %v6289_v31 = vld [vmem:[%s8506_s0 + $0x834] ss:$36 sps:$4 sm:$0xff]  }
 0x19c   :  { %4042 = vmatprep.mubr.bf16.mxu0 %v6212_v33 }
 0x1a2   :  { %3177 = vmatmul.mubr.bf16.gmra.mrb[48].mxu1 %v6214_v34 }
 0x1a3   :  { %4043 = vmatmul.mubr.bf16.gmra.mrb[112].mxu0 %v6215_v35  ;;  %3186 = vmatprep.mubr.bf16.mxu1 %v6219_v36  ;;  %v6291_v35 = vld [vmem:[%s8506_s0 + $0x830] ss:$36 sps:$4 sm:$0xff]   ;;  %v6292_v36 = vld [vmem:[%s8506_s0 + $0x3c8] ss:$36 sps:$4 sm:$0xff]  }
 0x1a4   :  { %4052 = vmatprep.mubr.bf16.mxu0 %v6221_v37 }
 0x1aa   :  { %3187 = vmatmul.mubr.bf16.gmra.mrb[52].mxu1 %v6223_v38  ;;  %v6293_v38 = vld [vmem:[%s8506_s0 + $0x87c] ss:$36 sps:$4 sm:$0xff]  }
 0x1ab   :  { %4053 = vmatmul.mubr.bf16.gmra.mrb[116].mxu0 %v6224_v39  ;;  %3196 = vmatprep.mubr.bf16.mxu1 %v6225_v40 }
 0x1ac   :  { %4062 = vmatprep.mubr.bf16.mxu0 %v6227_v41 }
 0x1b2   :  { %3197 = vmatmul.mubr.bf16.gmra.mrb[56].mxu1 %v6229_v42  ;;  %v6295_v42 = vld [vmem:[%s8506_s0 + $0x878] ss:$36 sps:$4 sm:$0xff]  }
 0x1b3   :  { %4063 = vmatmul.mubr.bf16.gmra.mrb[120].mxu0 %v6230_v43  ;;  %3206 = vmatprep.mubr.bf16.mxu1 %v6231_v44  ;;  %v6296_v43 = vld [vmem:[%s8506_s0 + $0x410] ss:$36 sps:$4 sm:$0xff]  }
 0x1b4   :  { %4072 = vmatprep.mubr.bf16.mxu0 %v6233_v45  ;;  %v6297_v45 = vld [vmem:[%s8506_s0 + $0x8c4] ss:$36 sps:$4 sm:$0xff]  }
 0x1ba   :  { %3207 = vmatmul.mubr.bf16.gmra.mrb[60].mxu1 %v6235_v46 }
 0x1bb   :  { %4073 = vmatmul.mubr.bf16.gmra.mrb[124].mxu0 %v6236_v47  ;;  %3216 = vmatprep.mubr.bf16.mxu1 %v6237_v48 }
 0x1bc   :  { %4115 = vmatprep.mubr.bf16.mxu0 %v6397_v49 }
 0x1c2   :  { %3217 = vmatmul.mubr.bf16.gmra.mrb[64].mxu1 %v6239_v50  ;;  %v6299_v50 = vld [vmem:[%s8506_s0 + $0x8c0] ss:$36 sps:$4 sm:$0xff]  }
 0x1c3   :  { %4116 = vmatmul.mubr.bf16.vlgmr.msra.gmra.mrb[0].mxu0 %v6240_v51  ;;  %3226 = vmatprep.mubr.bf16.mxu1 %v6241_v52  ;;  %v6300_v51 = vld [vmem:[%s8506_s0 + $0x458] ss:$36 sps:$4 sm:$0xff]  }
 0x1c4   :  { %4125 = vmatprep.mubr.bf16.mxu0 %v6397_v49 }
 0x1ca   :  { %3227 = vmatmul.mubr.bf16.gmra.mrb[68].mxu1 %v6243_v53  ;;  %v6303_v53 = vld [vmem:[%s8506_s0 + $0x494] ss:$36 sps:$4 sm:$0xff]  }
 0x1cb   :  { %4126 = vmatmul.mubr.bf16.gmra.mrb[4].mxu0 %v6244_v54  ;;  %3236 = vmatprep.mubr.bf16.mxu1 %v6245_v55 }
 0x1cc   :  { %4135 = vmatprep.mubr.bf16.mxu0 %v6397_v49 }
 0x1d2   :  { %3237 = vmatmul.mubr.bf16.gmra.mrb[72].mxu1 %v6247_v56 }
 0x1d3   :  { %4136 = vmatmul.mubr.bf16.gmra.mrb[8].mxu0 %v6248_v57  ;;  %3246 = vmatprep.mubr.bf16.mxu1 %v6249_v58  ;;  %v6301_v57 = vld [vmem:[%s8506_s0 + $0x490] ss:$36 sps:$4 sm:$0xff]   ;;  %v6304_v58 = vld [vmem:[%s8506_s0 + $0x4a0] ss:$36 sps:$4 sm:$0xff]  }
 0x1d4   :  { %4145 = vmatprep.mubr.bf16.mxu0 %v6397_v49 }
 0x1da   :  { %3247 = vmatmul.mubr.bf16.gmra.mrb[76].mxu1 %v6251_v59 }
 0x1db   :  { %4146 = vmatmul.mubr.bf16.gmra.mrb[12].mxu0 %v6252_v60  ;;  %3256 = vmatprep.mubr.bf16.mxu1 %v6253_v61  ;;  %v6305_v60 = vld [vmem:[%s8506_s0 + $0x4dc] ss:$36 sps:$4 sm:$0xff]  }
 0x1dc   :  { %4155 = vmatprep.mubr.bf16.mxu0 %v6397_v49 }
 0x1e2   :  { %3257 = vmatmul.mubr.bf16.gmra.mrb[80].mxu1 %v6255_v62 }
 0x1e3   :  { %4156 = vmatmul.mubr.bf16.gmra.mrb[16].mxu0 %v6256_v63  ;;  %3266 = vmatprep.mubr.bf16.mxu1 %v6257_v0  ;;  %v6307_v0 = vld [vmem:[%s8506_s0 + $0x4d8] ss:$36 sps:$4 sm:$0xff]  }
 0x1e4   :  { %4165 = vmatprep.mubr.bf16.mxu0 %v6397_v49 }
 0x1ea   :  { %3267 = vmatmul.mubr.bf16.gmra.mrb[84].mxu1 %v6259_v1  ;;  %v6308_v1 = vld [vmem:[%s8506_s0 + $0x4e8] ss:$36 sps:$4 sm:$0xff]  }
 0x1eb   :  { %4166 = vmatmul.mubr.bf16.gmra.mrb[20].mxu0 %v6260_v2  ;;  %3276 = vmatprep.mubr.bf16.mxu1 %v6261_v3  ;;  %v6309_v3 = vld [vmem:[%s8506_s0 + $0x524] ss:$36 sps:$4 sm:$0xff]  }
 0x1ec   :  { %4175 = vmatprep.mubr.bf16.mxu0 %v6397_v49 }
 0x1f2   :  { %3277 = vmatmul.mubr.bf16.gmra.mrb[88].mxu1 %v6263_v4 }
 0x1f3   :  { %4176 = vmatmul.mubr.bf16.gmra.mrb[24].mxu0 %v6264_v5  ;;  %3286 = vmatprep.mubr.bf16.mxu1 %v6265_v6 }
 0x1f4   :  { %4185 = vmatprep.mubr.bf16.mxu0 %v6397_v49 }
 0x1fa   :  { %3287 = vmatmul.mubr.bf16.gmra.mrb[92].mxu1 %v6267_v7  ;;  %v6311_v7 = vld [vmem:[%s8506_s0 + $0x520] ss:$36 sps:$4 sm:$0xff]  }
 0x1fb   :  { %4186 = vmatmul.mubr.bf16.gmra.mrb[28].mxu0 %v6268_v8  ;;  %3296 = vmatprep.mubr.bf16.mxu1 %v6269_v9  ;;  %v6312_v8 = vld [vmem:[%s8506_s0 + $0x530] ss:$36 sps:$4 sm:$0xff]  }
 0x1fc   :  { %4195 = vmatprep.mubr.bf16.mxu0 %v6397_v49 }
 0x202   :  { %3297 = vmatmul.mubr.bf16.gmra.mrb[96].mxu1 %v6271_v10  ;;  %v6313_v10 = vld [vmem:[%s8506_s0 + $0x56c] ss:$36 sps:$4 sm:$0xff]  }
 0x203   :  { %4196 = vmatmul.mubr.bf16.gmra.mrb[32].mxu0 %v6272_v11  ;;  %3306 = vmatprep.mubr.bf16.mxu1 %v6273_v12 }
 0x204   :  { %4205 = vmatprep.mubr.bf16.mxu0 %v6397_v49 }
 0x20a   :  { %3307 = vmatmul.mubr.bf16.gmra.mrb[100].mxu1 %v6275_v13 }
 0x20b   :  { %4206 = vmatmul.mubr.bf16.gmra.mrb[36].mxu0 %v6276_v14  ;;  %3316 = vmatprep.mubr.bf16.mxu1 %v6277_v15  ;;  %v6315_v14 = vld [vmem:[%s8506_s0 + $0x568] ss:$36 sps:$4 sm:$0xff]   ;;  %v6316_v15 = vld [vmem:[%s8506_s0 + $0x578] ss:$36 sps:$4 sm:$0xff]  }
 0x20c   :  { %4215 = vmatprep.mubr.bf16.mxu0 %v6397_v49 }
 0x212   :  { %3317 = vmatmul.mubr.bf16.gmra.mrb[104].mxu1 %v6279_v16 }
 0x213   :  { %4216 = vmatmul.mubr.bf16.gmra.mrb[40].mxu0 %v6280_v17  ;;  %3326 = vmatprep.mubr.bf16.mxu1 %v6281_v18  ;;  %v6317_v17 = vld [vmem:[%s8506_s0 + $0x5b4] ss:$36 sps:$4 sm:$0xff]  }
 0x214   :  { %4225 = vmatprep.mubr.bf16.mxu0 %v6397_v49 }
 0x215   :  { %v7636_v19 = vpop.f32.mrb[0].mxu1 }
 0x216   :  { %v7638_v20 = vpop.f32.mrb[1].mxu1 }
 0x217   :  { %v7646_v23 = vpop.f32.mrb[2].mxu1 }
 0x218   :  { %v7651_v25 = vpop.f32.mrb[3].mxu1 }
 0x21a   :  { %3327 = vmatmul.mubr.bf16.gmra.mrb[108].mxu1 %v6283_v21 }
 0x21b   :  { %4226 = vmatmul.mubr.bf16.gmra.mrb[44].mxu0 %v6284_v22  ;;  %3336 = vmatprep.mubr.bf16.mxu1 %v6285_v24  ;;  %v6319_v24 = vld [vmem:[%s8506_s0 + $0x5b0] ss:$36 sps:$4 sm:$0xff]  }
 0x21c   :  { %4235 = vmatprep.mubr.bf16.mxu0 %v6397_v49 }
 0x21d   :  { %v7654_v26 = vpop.f32.mrb[4].mxu1 }
 0x21e   :  { %v7656_v27 = vpop.f32.mrb[5].mxu1 }
 0x21f   :  { %v7664_v30 = vpop.f32.mrb[6].mxu1 }
 0x220   :  { %v7669_v32 = vpop.f32.mrb[7].mxu1 }
 0x222   :  { %3337 = vmatmul.mubr.bf16.gmra.mrb[112].mxu1 %v6287_v28  ;;  %v6320_v28 = vld [vmem:[%s8506_s0 + $0x5c0] ss:$36 sps:$4 sm:$0xff]  }
 0x223   :  { %4236 = vmatmul.mubr.bf16.gmra.mrb[48].mxu0 %v6288_v29  ;;  %3346 = vmatprep.mubr.bf16.mxu1 %v6289_v31  ;;  %v6321_v31 = vld [vmem:[%s8506_s0 + $0x5fc] ss:$36 sps:$4 sm:$0xff]  }
 0x224   :  { %4245 = vmatprep.mubr.bf16.mxu0 %v6397_v49 }
 0x225   :  { %v7672_v33 = vpop.f32.mrb[8].mxu1 }
 0x226   :  { %v7674_v34 = vpop.f32.mrb[9].mxu1 }
 0x227   :  { %v7682_v37 = vpop.f32.mrb[10].mxu1 }
 0x228   :  { %v7687_v39 = vpop.f32.mrb[11].mxu1 }
 0x22a   :  { %3347 = vmatmul.mubr.bf16.gmra.mrb[116].mxu1 %v6291_v35 }
 0x22b   :  { %4246 = vmatmul.mubr.bf16.gmra.mrb[52].mxu0 %v6292_v36  ;;  %3356 = vmatprep.mubr.bf16.mxu1 %v6293_v38 }
 0x22c   :  { %4255 = vmatprep.mubr.bf16.mxu0 %v6397_v49 }
 0x22d   :  { %v7690_v40 = vpop.f32.mrb[12].mxu1 }
 0x22e   :  { %v7692_v41 = vpop.f32.mrb[13].mxu1 }
 0x22f   :  { %v7700_v44 = vpop.f32.mrb[14].mxu1 }
 0x230   :  { %v7705_v46 = vpop.f32.mrb[15].mxu1 }
 0x232   :  { %3357 = vmatmul.mubr.bf16.gmra.mrb[120].mxu1 %v6295_v42  ;;  %v6323_v42 = vld [vmem:[%s8506_s0 + $0x5f8] ss:$36 sps:$4 sm:$0xff]  }
 0x233   :  { %4256 = vmatmul.mubr.bf16.gmra.mrb[56].mxu0 %v6296_v43  ;;  %3366 = vmatprep.mubr.bf16.mxu1 %v6297_v45  ;;  %v6324_v43 = vld [vmem:[%s8506_s0 + $0x608] ss:$36 sps:$4 sm:$0xff]  }
 0x234   :  { %4265 = vmatprep.mubr.bf16.mxu0 %v6397_v49 }
 0x235   :  { %v7708_v47 = vpop.f32.mrb[16].mxu1 }
 0x236   :  { %v7710_v48 = vpop.f32.mrb[17].mxu1 }
 0x237   :  { %v7718_v52 = vpop.f32.mrb[18].mxu1 }
 0x238   :  { %v7723_v54 = vpop.f32.mrb[19].mxu1 }
 0x23a   :  { %3367 = vmatmul.mubr.bf16.gmra.mrb[124].mxu1 %v6299_v50  ;;  %v6325_v50 = vld [vmem:[%s8506_s0 + $0x644] ss:$36 sps:$4 sm:$0xff]  }
 0x23b   :  { %4266 = vmatmul.mubr.bf16.gmra.mrb[60].mxu0 %v6300_v51  ;;  %3569 = vmatprep.mubr.bf16.mxu1 %v6303_v53 }
 0x23c   :  { %4275 = vmatprep.mubr.bf16.mxu0 %v6397_v49 }
 0x23d   :  { %v7726_v55 = vpop.f32.mrb[20].mxu1 }
 0x23e   :  { %v7728_v56 = vpop.f32.mrb[21].mxu1 }
 0x23f   :  { %v7736_v59 = vpop.f32.mrb[22].mxu1 }
 0x240   :  { %v7741_v61 = vpop.f32.mrb[23].mxu1 }
 0x242   :  { %3570 = vmatmul.mubr.bf16.vlgmr.msra.gmra.mrb[64].mxu1 %v6301_v57 }
 0x243   :  { %4276 = vmatmul.mubr.bf16.gmra.mrb[64].mxu0 %v6304_v58  ;;  %3579 = vmatprep.mubr.bf16.mxu1 %v6305_v60  ;;  %v6327_v58 = vld [vmem:[%s8506_s0 + $0x640] ss:$36 sps:$4 sm:$0xff]   ;;  %v6328_v60 = vld [vmem:[%s8506_s0 + $0x650] ss:$36 sps:$4 sm:$0xff]  }
 0x244   :  { %4285 = vmatprep.mubr.bf16.mxu0 %v6397_v49 }
 0x245   :  { %v7744_v62 = vpop.f32.mrb[24].mxu1 }
 0x246   :  { %v7746_v63 = vpop.f32.mrb[25].mxu1 }
 0x247   :  { %v7754_v2 = vpop.f32.mrb[26].mxu1 }
 0x248   :  { %v7759_v4 = vpop.f32.mrb[27].mxu1 }
 0x24a   :  { %3580 = vmatmul.mubr.bf16.gmra.mrb[68].mxu1 %v6307_v0 }
 0x24b   :  { %4286 = vmatmul.mubr.bf16.gmra.mrb[68].mxu0 %v6308_v1  ;;  %3589 = vmatprep.mubr.bf16.mxu1 %v6309_v3  ;;  %v6329_v1 = vld [vmem:[%s8506_s0 + $0x68c] ss:$36 sps:$4 sm:$0xff]  }
 0x24c   :  { %4295 = vmatprep.mubr.bf16.mxu0 %v6397_v49 }
 0x24d   :  { %v7762_v5 = vpop.f32.mrb[28].mxu1 }
 0x24e   :  { %v7764_v6 = vpop.f32.mrb[29].mxu1 }
 0x24f   :  { %v7772_v9 = vpop.f32.mrb[30].mxu1 }
 0x250   :  { %v7777_v11 = vpop.f32.mrb[31].mxu1 }
 0x252   :  { %3590 = vmatmul.mubr.bf16.gmra.mrb[72].mxu1 %v6311_v7 }
 0x253   :  { %4296 = vmatmul.mubr.bf16.gmra.mrb[72].mxu0 %v6312_v8  ;;  %3599 = vmatprep.mubr.bf16.mxu1 %v6313_v10  ;;  %v6331_v10 = vld [vmem:[%s8506_s0 + $0x688] ss:$36 sps:$4 sm:$0xff]  }
 0x254   :  { %4305 = vmatprep.mubr.bf16.mxu0 %v6397_v49 }
 0x255   :  { %v7780_v12 = vpop.f32.mrb[32].mxu1 }
 0x256   :  { %v7782_v13 = vpop.f32.mrb[33].mxu1 }
 0x257   :  { %v7790_v16 = vpop.f32.mrb[34].mxu1 }
 0x258   :  { %v7795_v18 = vpop.f32.mrb[35].mxu1 }
 0x25a   :  { %3600 = vmatmul.mubr.bf16.gmra.mrb[76].mxu1 %v6315_v14  ;;  %v6332_v14 = vld [vmem:[%s8506_s0 + $0x698] ss:$36 sps:$4 sm:$0xff]  }
 0x25b   :  { %4306 = vmatmul.mubr.bf16.gmra.mrb[76].mxu0 %v6316_v15  ;;  %3609 = vmatprep.mubr.bf16.mxu1 %v6317_v17  ;;  %v6333_v17 = vld [vmem:[%s8506_s0 + $0x6d4] ss:$36 sps:$4 sm:$0xff]  }
 0x25c   :  { %4315 = vmatprep.mubr.bf16.mxu0 %v6397_v49 }
 0x25d   :  { %v7798_v21 = vpop.f32.mrb[36].mxu1 }
 0x25e   :  { %v7800_v22 = vpop.f32.mrb[37].mxu1 }
 0x25f   :  { %v7808_v29 = vpop.f32.mrb[38].mxu1 }
 0x260   :  { %v7813_v35 = vpop.f32.mrb[39].mxu1 }
 0x262   :  { %3610 = vmatmul.mubr.bf16.gmra.mrb[80].mxu1 %v6319_v24 }
 0x263   :  { %4316 = vmatmul.mubr.bf16.gmra.mrb[80].mxu0 %v6320_v28  ;;  %3619 = vmatprep.mubr.bf16.mxu1 %v6321_v31 }
 0x264   :  { %4325 = vmatprep.mubr.bf16.mxu0 %v6397_v49 }
 0x265   :  { %v7816_v36 = vpop.f32.mrb[40].mxu1 }
 0x266   :  { %v7818_v38 = vpop.f32.mrb[41].mxu1 }
 0x267   :  { %v7826_v45 = vpop.f32.mrb[42].mxu1 }
 0x268   :  { %v7831_v51 = vpop.f32.mrb[43].mxu1 }
 0x26a   :  { %3620 = vmatmul.mubr.bf16.gmra.mrb[84].mxu1 %v6323_v42  ;;  %v6335_v42 = vld [vmem:[%s8506_s0 + $0x6d0] ss:$36 sps:$4 sm:$0xff]  }
 0x26b   :  { %4326 = vmatmul.mubr.bf16.gmra.mrb[84].mxu0 %v6324_v43  ;;  %3629 = vmatprep.mubr.bf16.mxu1 %v6325_v50  ;;  %v6336_v43 = vld [vmem:[%s8506_s0 + $0x6e0] ss:$36 sps:$4 sm:$0xff]  }
 0x26c   :  { %4335 = vmatprep.mubr.bf16.mxu0 %v6397_v49 }
 0x26d   :  { %v7834_v53 = vpop.f32.mrb[44].mxu1 }
 0x26e   :  { %v7836_v57 = vpop.f32.mrb[45].mxu1 }
 0x26f   :  { %v7844_v0 = vpop.f32.mrb[46].mxu1 }
 0x270   :  { %v7849_v3 = vpop.f32.mrb[47].mxu1 }
 0x272   :  { %3630 = vmatmul.mubr.bf16.gmra.mrb[88].mxu1 %v6327_v58  ;;  %v6337_v58 = vld [vmem:[%s8506_s0 + $0x71c] ss:$36 sps:$4 sm:$0xff]  }
 0x273   :  { %4336 = vmatmul.mubr.bf16.gmra.mrb[88].mxu0 %v6328_v60  ;;  %3639 = vmatprep.mubr.bf16.mxu1 %v6329_v1 }
 0x274   :  { %4345 = vmatprep.mubr.bf16.mxu0 %v6397_v49 }
 0x275   :  { %v7852_v7 = vpop.f32.mrb[48].mxu1 }
 0x276   :  { %v7854_v8 = vpop.f32.mrb[49].mxu1 }
 0x277   :  { %v7862_v15 = vpop.f32.mrb[50].mxu1 }
 0x278   :  { %v7867_v24 = vpop.f32.mrb[51].mxu1 }
 0x27a   :  { %3640 = vmatmul.mubr.bf16.gmra.mrb[92].mxu1 %v6331_v10 }
 0x27b   :  { %4346 = vmatmul.mubr.bf16.gmra.mrb[92].mxu0 %v6332_v14  ;;  %3649 = vmatprep.mubr.bf16.mxu1 %v6333_v17  ;;  %v6339_v14 = vld [vmem:[%s8506_s0 + $0x718] ss:$36 sps:$4 sm:$0xff]   ;;  %v6340_v17 = vld [vmem:[%s8506_s0 + $0x728] ss:$36 sps:$4 sm:$0xff]  }
 0x27c   :  { %4355 = vmatprep.mubr.bf16.mxu0 %v6397_v49 }
 0x27d   :  { %v7870_v28 = vpop.f32.mrb[52].mxu1 }
 0x27e   :  { %8545 = vst [vmem:[#allocation2_spill] sm:$0xff] %v7870_v28  ;;  %v7872_v31 = vpop.f32.mrb[53].mxu1  ;;  %v6351_v28 = vld [vmem:[%s8506_s0 + $0x7f0] ss:$36 sps:$4 sm:$0xff]  }
 0x27f   :  { %8546 = vst [vmem:[#allocation3_spill] sm:$0xff] %v7872_v31  ;;  %v7880_v50 = vpop.f32.mrb[54].mxu1 }
 0x280   :  { %8547 = vst [vmem:[#allocation4_spill] sm:$0xff] %v7880_v50  ;;  %v7885_v60 = vpop.f32.mrb[55].mxu1 }
 0x281   :  { %8548 = vst [vmem:[#allocation5_spill] sm:$0xff] %v7885_v60 }
 0x282   :  { %3650 = vmatmul.mubr.bf16.gmra.mrb[96].mxu1 %v6335_v42  ;;  %v6341_v42 = vld [vmem:[%s8506_s0 + $0x764] ss:$36 sps:$4 sm:$0xff]  }
 0x283   :  { %4356 = vmatmul.mubr.bf16.gmra.mrb[96].mxu0 %v6336_v43  ;;  %3659 = vmatprep.mubr.bf16.mxu1 %v6337_v58 }
 0x284   :  { %4365 = vmatprep.mubr.bf16.mxu0 %v6397_v49 }
 0x285   :  { %v7888_v1 = vpop.f32.mrb[56].mxu1 }
 0x286   :  { %8549 = vst [vmem:[#allocation6_spill] sm:$0xff] %v7888_v1  ;;  %v7890_v10 = vpop.f32.mrb[57].mxu1  ;;  %v6343_v1 = vld [vmem:[%s8506_s0 + $0x760] ss:$36 sps:$4 sm:$0xff]  }
 0x287   :  { %8550 = vst [vmem:[#allocation7_spill] sm:$0xff] %v7890_v10  ;;  %v7898_v50 = vpop.f32.mrb[58].mxu1 }
 0x288   :  { %8551 = vst [vmem:[#allocation8_spill] sm:$0xff] %v7898_v50  ;;  %v7903_v43 = vpop.f32.mrb[59].mxu1  ;;  %v6344_v50 = vld [vmem:[%s8506_s0 + $0x770] ss:$36 sps:$4 sm:$0xff]  }
 0x289   :  { %8552 = vst [vmem:[#allocation9_spill] sm:$0xff] %v7903_v43  ;;  %v6348_v43 = vld [vmem:[%s8506_s0 + $0x7b8] ss:$36 sps:$4 sm:$0xff]  }
 0x28a   :  { %3660 = vmatmul.mubr.bf16.gmra.mrb[100].mxu1 %v6339_v14  ;;  %v6345_v14 = vld [vmem:[%s8506_s0 + $0x7ac] ss:$36 sps:$4 sm:$0xff]  }
 0x28b   :  { %4366 = vmatmul.mubr.bf16.gmra.mrb[100].mxu0 %v6340_v17  ;;  %3669 = vmatprep.mubr.bf16.mxu1 %v6341_v42 }
 0x28c   :  { %4375 = vmatprep.mubr.bf16.mxu0 %v6397_v49 }
 0x28d   :  { %v7906_v58 = vpop.f32.mrb[60].mxu1 }
 0x28e   :  { %8553 = vst [vmem:[#allocation10_spill] sm:$0xff] %v7906_v58  ;;  %v7908_v10 = vpop.f32.mrb[61].mxu1 }
 0x28f   :  { %8554 = vst [vmem:[#allocation11_spill] sm:$0xff] %v7908_v10  ;;  %v7916_v60 = vpop.f32.mrb[62].mxu1 }
 0x290   :  { %8555 = vst [vmem:[#allocation12_spill] sm:$0xff] %v7916_v60  ;;  %v7921_v17 = vpop.f32.mrb[63].mxu1  ;;  %v6347_v60 = vld [vmem:[%s8506_s0 + $0x7a8] ss:$36 sps:$4 sm:$0xff]  }
 0x291   :  { %8556 = vst [vmem:[#allocation13_spill] sm:$0xff] %v7921_v17 }
 0x292   :  { %3670 = vmatmul.mubr.bf16.gmra.mrb[104].mxu1 %v6343_v1  ;;  %v6349_v1 = vld [vmem:[%s8506_s0 + $0x7f4] ss:$36 sps:$4 sm:$0xff]  }
 0x293   :  { %4376 = vmatmul.mubr.bf16.gmra.mrb[104].mxu0 %v6344_v50  ;;  %3679 = vmatprep.mubr.bf16.mxu1 %v6345_v14 }
 0x294   :  { %4385 = vmatprep.mubr.bf16.mxu0 %v6397_v49 }
 0x296   :  { %v4117_v42 = vpop.f32.mrb[0].mxu0 }
 0x297   :  { %v7925_v10 = vadd.f32 %v4117_v42, %v7636_v19  ;;  %v4119_v58 = vpop.f32.mrb[1].mxu0 }
 0x298   :  { %v7934_v17 = vadd.f32 %v4119_v58, %v7638_v20  ;;  %v4121_v50 = vpop.f32.mrb[2].mxu0 }
 0x299   :  { %v7940_v19 = vadd.f32 %v4121_v50, %v7646_v23  ;;  %v4123_v14 = vpop.f32.mrb[3].mxu0  ;;  %v6352_v23 = vld [vmem:[%s8506_s0 + $0x800] ss:$36 sps:$4 sm:$0xff]  }
 0x29a   :  { %v7943_v42 = vadd.f32 %v4123_v14, %v7651_v25  ;;  %3680 = vmatmul.mubr.bf16.gmra.mrb[108].mxu1 %v6347_v60 }
 0x29b   :  { %4386 = vmatmul.mubr.bf16.gmra.mrb[108].mxu0 %v6348_v43  ;;  %3689 = vmatprep.mubr.bf16.mxu1 %v6349_v1  ;;  %v6353_v43 = vld [vmem:[%s8506_s0 + $0x83c] ss:$36 sps:$4 sm:$0xff]  }
 0x29c   :  { %4395 = vmatprep.mubr.bf16.mxu0 %v6397_v49 }
 0x29e   :  { %v4127_v31 = vpop.f32.mrb[4].mxu0 }
 0x29f   :  { %v7947_v20 = vadd.f32 %v4127_v31, %v7654_v26  ;;  %v4129_v58 = vpop.f32.mrb[5].mxu0 }
 0x2a0   :  { %v7956_v25 = vadd.f32 %v4129_v58, %v7656_v27  ;;  %v4131_v60 = vpop.f32.mrb[6].mxu0  ;;  %v6355_v58 = vld [vmem:[%s8506_s0 + $0x838] ss:$36 sps:$4 sm:$0xff]  }
 0x2a1   :  { %v7962_v26 = vadd.f32 %v4131_v60, %v7664_v30  ;;  %v4133_v31 = vpop.f32.mrb[7].mxu0  ;;  %v6356_v30 = vld [vmem:[%s8506_s0 + $0x848] ss:$36 sps:$4 sm:$0xff]  }
 0x2a2   :  { %v7965_v50 = vadd.f32 %v4133_v31, %v7669_v32  ;;  %3690 = vmatmul.mubr.bf16.gmra.mrb[112].mxu1 %v6351_v28 }
 0x2a3   :  { %4396 = vmatmul.mubr.bf16.gmra.mrb[112].mxu0 %v6352_v23  ;;  %3699 = vmatprep.mubr.bf16.mxu1 %v6353_v43  ;;  %v6357_v23 = vld [vmem:[%s8506_s0 + $0x884] ss:$36 sps:$4 sm:$0xff]  }
 0x2a4   :  { %4405 = vmatprep.mubr.bf16.mxu0 %v6397_v49 }
 0x2a6   :  { %v4137_v1 = vpop.f32.mrb[8].mxu0 }
 0x2a7   :  { %v7969_v27 = vadd.f32 %v4137_v1, %v7672_v33  ;;  %v4139_v14 = vpop.f32.mrb[9].mxu0 }
 0x2a8   :  { %v7978_v32 = vadd.f32 %v4139_v14, %v7674_v34  ;;  %v4141_v28 = vpop.f32.mrb[10].mxu0  ;;  %v6359_v14 = vld [vmem:[%s8506_s0 + $0x880] ss:$36 sps:$4 sm:$0xff]  }
 0x2a9   :  { %v7984_v33 = vadd.f32 %v4141_v28, %v7682_v37  ;;  %v4143_v60 = vpop.f32.mrb[11].mxu0  ;;  %v6360_v37 = vld [vmem:[%s8506_s0 + $0x890] ss:$36 sps:$4 sm:$0xff]  }
 0x2aa   :  { %v7987_v43 = vadd.f32 %v4143_v60, %v7687_v39  ;;  %3700 = vmatmul.mubr.bf16.gmra.mrb[116].mxu1 %v6355_v58 }
 0x2ab   :  { %4406 = vmatmul.mubr.bf16.gmra.mrb[116].mxu0 %v6356_v30  ;;  %3709 = vmatprep.mubr.bf16.mxu1 %v6357_v23  ;;  %v6361_v30 = vld [vmem:[%s8506_s0 + $0x8cc] ss:$36 sps:$4 sm:$0xff]  }
 0x2ac   :  { %4415 = vmatprep.mubr.bf16.mxu0 %v6397_v49 }
 0x2ae   :  { %v4147_v31 = vpop.f32.mrb[12].mxu0 }
 0x2af   :  { %v7991_v34 = vadd.f32 %v4147_v31, %v7690_v40  ;;  %v4149_v1 = vpop.f32.mrb[13].mxu0 }
 0x2b0   :  { %v8000_v39 = vadd.f32 %v4149_v1, %v7692_v41  ;;  %v4151_v58 = vpop.f32.mrb[14].mxu0  ;;  %v6363_v1 = vld [vmem:[%s8506_s0 + $0x8c8] ss:$36 sps:$4 sm:$0xff]  }
 0x2b1   :  { %v8006_v40 = vadd.f32 %v4151_v58, %v7700_v44  ;;  %v4153_v28 = vpop.f32.mrb[15].mxu0  ;;  %v6364_v44 = vld [vmem:[%s8506_s0 + $0x8d8] ss:$36 sps:$4 sm:$0xff]  }
 0x2b2   :  { %v8009_v23 = vadd.f32 %v4153_v28, %v7705_v46  ;;  %3710 = vmatmul.mubr.bf16.gmra.mrb[120].mxu1 %v6359_v14 }
 0x2b3   :  { %8557 = vst [vmem:[#allocation14_spill] sm:$0xff] %v8006_v40  ;;  %4416 = vmatmul.mubr.bf16.gmra.mrb[120].mxu0 %v6360_v37  ;;  %3719 = vmatprep.mubr.bf16.mxu1 %v6361_v30 }
 0x2b4   :  { %8558 = vst [vmem:[#allocation15_spill] sm:$0xff] %v8009_v23  ;;  %4425 = vmatprep.mubr.bf16.mxu0 %v6397_v49 }
 0x2b6   :  { %v4157_v60 = vpop.f32.mrb[16].mxu0 }
 0x2b7   :  { %v8013_v41 = vadd.f32 %v4157_v60, %v7708_v47  ;;  %v4159_v31 = vpop.f32.mrb[17].mxu0 }
 0x2b8   :  { %v8022_v46 = vadd.f32 %v4159_v31, %v7710_v48  ;;  %v4161_v14 = vpop.f32.mrb[18].mxu0 }
 0x2b9   :  { %8559 = vst [vmem:[#allocation16_spill] sm:$0xff] %v8013_v41  ;;  %v8025_v37 = vadd.f32 %v4161_v14, %v7718_v52  ;;  %v4163_v49 = vpop.f32.mrb[19].mxu0 }
 0x2ba   :  { %8560 = vst [vmem:[#allocation17_spill] sm:$0xff] %v8022_v46  ;;  %v8028_v47 = vadd.f32 %v4163_v49, %v7723_v54  ;;  %3720 = vmatmul.mubr.bf16.gmra.mrb[124].mxu1 %v6363_v1 }
 0x2bb   :  { %8561 = vst [vmem:[#allocation18_spill] sm:$0xff] %v8025_v37  ;;  %4426 = vmatmul.mubr.bf16.gmra.mrb[124].mxu0 %v6364_v44 }
 0x2bc   :  { %8562 = vst [vmem:[#allocation19_spill] sm:$0xff] %v8028_v47 }
 0x2be   :  { %v4167_v58 = vpop.f32.mrb[20].mxu0 }
 0x2bf   :  { %v8031_v30 = vadd.f32 %v4167_v58, %v7726_v55  ;;  %v4169_v28 = vpop.f32.mrb[21].mxu0 }
 0x2c0   :  { %v8034_v60 = vadd.f32 %v4169_v28, %v7728_v56  ;;  %v4171_v48 = vpop.f32.mrb[22].mxu0 }
 0x2c1   :  { %8563 = vst [vmem:[#allocation20_spill] sm:$0xff] %v8031_v30  ;;  %v8037_v31 = vadd.f32 %v4171_v48, %v7736_v59  ;;  %v4173_v52 = vpop.f32.mrb[23].mxu0 }
 0x2c2   :  { %8564 = vst [vmem:[#allocation21_spill] sm:$0xff] %v8034_v60  ;;  %v8040_v14 = vadd.f32 %v4173_v52, %v7741_v61 }
 0x2c3   :  { %8565 = vst [vmem:[#allocation22_spill] sm:$0xff] %v8037_v31 }
 0x2c4   :  { %8566 = vst [vmem:[#allocation23_spill] sm:$0xff] %v8040_v14 }
 0x2c6   :  { %v4177_v54 = vpop.f32.mrb[24].mxu0 }
 0x2c7   :  { %v8043_v1 = vadd.f32 %v4177_v54, %v7744_v62  ;;  %v4179_v44 = vpop.f32.mrb[25].mxu0 }
 0x2c8   :  { %v8046_v55 = vadd.f32 %v4179_v44, %v7746_v63  ;;  %v4181_v49 = vpop.f32.mrb[26].mxu0 }
 0x2c9   :  { %8567 = vst [vmem:[#allocation24_spill] sm:$0xff] %v8043_v1  ;;  %v8049_v56 = vadd.f32 %v4181_v49, %v7754_v2  ;;  %v4183_v58 = vpop.f32.mrb[27].mxu0 }
 0x2ca   :  { %8568 = vst [vmem:[#allocation25_spill] sm:$0xff] %v8046_v55  ;;  %v8052_v59 = vadd.f32 %v4183_v58, %v7759_v4 }
 0x2cb   :  { %8569 = vst [vmem:[#allocation26_spill] sm:$0xff] %v8049_v56 }
 0x2cc   :  { %8570 = vst [vmem:[#allocation27_spill] sm:$0xff] %v8052_v59 }
 0x2ce   :  { %v4187_v28 = vpop.f32.mrb[28].mxu0 }
 0x2cf   :  { %v8055_v61 = vadd.f32 %v4187_v28, %v7762_v5  ;;  %v4189_v48 = vpop.f32.mrb[29].mxu0 }
 0x2d0   :  { %v8058_v62 = vadd.f32 %v4189_v48, %v7764_v6  ;;  %v4191_v52 = vpop.f32.mrb[30].mxu0 }
 0x2d1   :  { %8571 = vst [vmem:[#allocation28_spill] sm:$0xff] %v8055_v61  ;;  %v8061_v63 = vadd.f32 %v4191_v52, %v7772_v9  ;;  %v4193_v54 = vpop.f32.mrb[31].mxu0 }
 0x2d2   :  { %8572 = vst [vmem:[#allocation29_spill] sm:$0xff] %v8058_v62  ;;  %v8064_v2 = vadd.f32 %v4193_v54, %v7777_v11 }
 0x2d3   :  { %8573 = vst [vmem:[#allocation30_spill] sm:$0xff] %v8061_v63 }
 0x2d4   :  { %8574 = vst [vmem:[#allocation31_spill] sm:$0xff] %v8064_v2 }
 0x2d6   :  { %v4197_v44 = vpop.f32.mrb[32].mxu0 }
 0x2d7   :  { %v8067_v4 = vadd.f32 %v4197_v44, %v7780_v12  ;;  %v4199_v49 = vpop.f32.mrb[33].mxu0 }
 0x2d8   :  { %v8070_v5 = vadd.f32 %v4199_v49, %v7782_v13  ;;  %v4201_v58 = vpop.f32.mrb[34].mxu0 }
 0x2d9   :  { %v8075_v28 = vadd.f32 %v4201_v58, %v7790_v16  ;;  %v4203_v9 = vpop.f32.mrb[35].mxu0 }
 0x2da   :  { %v8080_v48 = vadd.f32 %v4203_v9, %v7795_v18 }
 0x2de   :  { %v4207_v52 = vpop.f32.mrb[36].mxu0 }
 0x2df   :  { %v8087_v54 = vadd.f32 %v4207_v52, %v7798_v21  ;;  %v4209_v44 = vpop.f32.mrb[37].mxu0 }
 0x2e0   :  { %v8090_v16 = vadd.f32 %v4209_v44, %v7800_v22  ;;  %v4211_v49 = vpop.f32.mrb[38].mxu0 }
 0x2e1   :  { %v8095_v18 = vadd.f32 %v4211_v49, %v7808_v29  ;;  %v4213_v9 = vpop.f32.mrb[39].mxu0 }
 0x2e2   :  { %v8100_v13 = vadd.f32 %v4213_v9, %v7813_v35 }
 0x2e6   :  { %v4217_v52 = vpop.f32.mrb[40].mxu0 }
 0x2e7   :  { %v8107_v44 = vadd.f32 %v4217_v52, %v7816_v36  ;;  %v4219_v58 = vpop.f32.mrb[41].mxu0 }
 0x2e8   :  { %v8110_v29 = vadd.f32 %v4219_v58, %v7818_v38  ;;  %v4221_v49 = vpop.f32.mrb[42].mxu0 }
 0x2e9   :  { %v8115_v35 = vadd.f32 %v4221_v49, %v7826_v45  ;;  %v4223_v9 = vpop.f32.mrb[43].mxu0 }
 0x2ea   :  { %v8120_v22 = vadd.f32 %v4223_v9, %v7831_v51 }
 0x2ee   :  { %v4227_v58 = vpop.f32.mrb[44].mxu0 }
 0x2ef   :  { %v8127_v52 = vadd.f32 %v4227_v58, %v7834_v53  ;;  %v4229_v12 = vpop.f32.mrb[45].mxu0 }
 0x2f0   :  { %v8130_v45 = vadd.f32 %v4229_v12, %v7836_v57  ;;  %v4231_v49 = vpop.f32.mrb[46].mxu0 }
 0x2f1   :  { %v8135_v51 = vadd.f32 %v4231_v49, %v7844_v0  ;;  %v4233_v9 = vpop.f32.mrb[47].mxu0 }
 0x2f2   :  { %v8140_v38 = vadd.f32 %v4233_v9, %v7849_v3 }
 0x2f3   :  { %8575 = vst [vmem:[#allocation32_spill] sm:$0xff] %v8135_v51 }
 0x2f4   :  { %8576 = vst [vmem:[#allocation33_spill] sm:$0xff] %v8140_v38 }
 0x2f6   :  { %v4237_v12 = vpop.f32.mrb[48].mxu0 }
 0x2f7   :  { %v8147_v58 = vadd.f32 %v4237_v12, %v7852_v7  ;;  %v4239_v21 = vpop.f32.mrb[49].mxu0  ;;  %v8581_v12 = vld [vmem:[#allocation2_spill] sm:$0xff] }
 0x2f8   :  { %v8150_v0 = vadd.f32 %v4239_v21, %v7854_v8  ;;  %v4241_v49 = vpop.f32.mrb[50].mxu0  ;;  %v8587_v8 = vld [vmem:[#allocation5_spill] sm:$0xff] }
 0x2f9   :  { %8577 = vst [vmem:[#allocation34_spill] sm:$0xff] %v8147_v58  ;;  %v8155_v3 = vadd.f32 %v4241_v49, %v7862_v15  ;;  %v4243_v9 = vpop.f32.mrb[51].mxu0  ;;  %v8583_v15 = vld [vmem:[#allocation3_spill] sm:$0xff] }
 0x2fa   :  { %8578 = vst [vmem:[#allocation35_spill] sm:$0xff] %v8150_v0  ;;  %v8160_v57 = vadd.f32 %v4243_v9, %v7867_v24  ;;  %v8585_v24 = vld [vmem:[#allocation4_spill] sm:$0xff] }
 0x2fb   :  { %8579 = vst [vmem:[#allocation36_spill] sm:$0xff] %v8155_v3 }
 0x2fc   :  { %8580 = vst [vmem:[#allocation37_spill] sm:$0xff] %v8160_v57 }
 0x2fe   :  { %v4247_v21 = vpop.f32.mrb[52].mxu0 }
 0x2ff   :  { %v8167_v11 = vadd.f32 %v4247_v21, %v8581_v12  ;;  %v4249_v36 = vpop.f32.mrb[53].mxu0 }
 0x300   :  { %v8170_v49 = vadd.f32 %v4249_v36, %v8583_v15  ;;  %v4251_v6 = vpop.f32.mrb[54].mxu0  ;;  %v8589_v15 = vld [vmem:[#allocation6_spill] sm:$0xff]  ;;  %v8595_v36 = vld [vmem:[#allocation9_spill] sm:$0xff] }
 0x301   :  { %8582 = vst [vmem:[#allocation2_spill] sm:$0xff] %v8167_v11  ;;  %v8175_v9 = vadd.f32 %v4251_v6, %v8585_v24  ;;  %v4253_v0 = vpop.f32.mrb[55].mxu0  ;;  %v8591_v6 = vld [vmem:[#allocation7_spill] sm:$0xff] }
 0x302   :  { %8584 = vst [vmem:[#allocation3_spill] sm:$0xff] %v8170_v49  ;;  %v8180_v57 = vadd.f32 %v4253_v0, %v8587_v8  ;;  %v8593_v0 = vld [vmem:[#allocation8_spill] sm:$0xff] }
 0x303   :  { %8586 = vst [vmem:[#allocation4_spill] sm:$0xff] %v8175_v9 }
 0x304   :  { %8588 = vst [vmem:[#allocation5_spill] sm:$0xff] %v8180_v57 }
 0x306   :  { %v4257_v12 = vpop.f32.mrb[56].mxu0 }
 0x307   :  { %v8187_v47 = vadd.f32 %v4257_v12, %v8589_v15  ;;  %v4259_v53 = vpop.f32.mrb[57].mxu0 }
 0x308   :  { %v8190_v24 = vadd.f32 %v4259_v53, %v8591_v6  ;;  %v4261_v11 = vpop.f32.mrb[58].mxu0  ;;  %v8597_v6 = vld [vmem:[#allocation10_spill] sm:$0xff]  ;;  %v8603_v53 = vld [vmem:[#allocation13_spill] sm:$0xff] }
 0x309   :  { %8590 = vst [vmem:[#allocation6_spill] sm:$0xff] %v8187_v47  ;;  %v8195_v8 = vadd.f32 %v4261_v11, %v8593_v0  ;;  %v4263_v49 = vpop.f32.mrb[59].mxu0  ;;  %v8599_v11 = vld [vmem:[#allocation11_spill] sm:$0xff] }
 0x30a   :  { %8592 = vst [vmem:[#allocation7_spill] sm:$0xff] %v8190_v24  ;;  %v8200_v57 = vadd.f32 %v4263_v49, %v8595_v36  ;;  %v8601_v49 = vld [vmem:[#allocation12_spill] sm:$0xff] }
 0x30b   :  { %8594 = vst [vmem:[#allocation8_spill] sm:$0xff] %v8195_v8 }
 0x30c   :  { %8596 = vst [vmem:[#allocation9_spill] sm:$0xff] %v8200_v57 }
 0x30e   :  { %v4267_v15 = vpop.f32.mrb[60].mxu0 }
 0x30f   :  { %v8207_v14 = vadd.f32 %v4267_v15, %v8597_v6  ;;  %v4269_v7 = vpop.f32.mrb[61].mxu0 }
 0x310   :  { %v8210_v0 = vadd.f32 %v4269_v7, %v8599_v11  ;;  %v4271_v47 = vpop.f32.mrb[62].mxu0 }
 0x311   :  { %8598 = vst [vmem:[#allocation10_spill] sm:$0xff] %v8207_v14  ;;  %v8215_v36 = vadd.f32 %v4271_v47, %v8601_v49  ;;  %v4273_v24 = vpop.f32.mrb[63].mxu0 }
 0x312   :  { %8600 = vst [vmem:[#allocation11_spill] sm:$0xff] %v8210_v0  ;;  %v8220_v57 = vadd.f32 %v4273_v24, %v8603_v53 }
 0x313   :  { %8602 = vst [vmem:[#allocation12_spill] sm:$0xff] %v8215_v36 }
 0x314   :  { %8604 = vst [vmem:[#allocation13_spill] sm:$0xff] %v8220_v57 }
 0x315   :  { %v3571_v6 = vpop.f32.mrb[64].mxu1 }
 0x316   :  { %v4277_v11 = vpop.f32.mrb[64].mxu0  ;;  %v3573_v21 = vpop.f32.mrb[65].mxu1 }
 0x317   :  { %v8226_v59 = vadd.f32 %v4277_v11, %v3571_v6  ;;  %v4279_v47 = vpop.f32.mrb[65].mxu0  ;;  %v3575_v14 = vpop.f32.mrb[66].mxu1 }
 0x318   :  { %v8228_v49 = vadd.f32 %v4279_v47, %v3573_v21  ;;  %v4281_v61 = vpop.f32.mrb[66].mxu0  ;;  %v3577_v24 = vpop.f32.mrb[67].mxu1 }
 0x319   :  { %v8230_v12 = vadd.f32 %v4281_v61, %v3575_v14  ;;  %v4283_v53 = vpop.f32.mrb[67].mxu0 }
 0x31a   :  { %v8232_v0 = vadd.f32 %v4283_v53, %v3577_v24 }
 0x31d   :  { %v3581_v15 = vpop.f32.mrb[68].mxu1 }
 0x31e   :  { %v4287_v36 = vpop.f32.mrb[68].mxu0  ;;  %v3583_v7 = vpop.f32.mrb[69].mxu1 }
 0x31f   :  { %v8234_v63 = vadd.f32 %v4287_v36, %v3581_v15  ;;  %v4289_v57 = vpop.f32.mrb[69].mxu0  ;;  %v3585_v11 = vpop.f32.mrb[70].mxu1 }
 0x320   :  { %v8236_v6 = vadd.f32 %v4289_v57, %v3583_v7  ;;  %v4291_v2 = vpop.f32.mrb[70].mxu0  ;;  %v3587_v47 = vpop.f32.mrb[71].mxu1 }
 0x321   :  { %v8238_v21 = vadd.f32 %v4291_v2, %v3585_v11  ;;  %v4293_v62 = vpop.f32.mrb[71].mxu0 }
 0x322   :  { %v8240_v14 = vadd.f32 %v4293_v62, %v3587_v47 }
 0x325   :  { %v3591_v61 = vpop.f32.mrb[72].mxu1 }
 0x326   :  { %v4297_v8 = vpop.f32.mrb[72].mxu0  ;;  %v3593_v53 = vpop.f32.mrb[73].mxu1 }
 0x327   :  { %v8242_v24 = vadd.f32 %v4297_v8, %v3591_v61  ;;  %v4299_v56 = vpop.f32.mrb[73].mxu0  ;;  %v3595_v15 = vpop.f32.mrb[74].mxu1 }
 0x328   :  { %v8244_v36 = vadd.f32 %v4299_v56, %v3593_v53  ;;  %v4301_v55 = vpop.f32.mrb[74].mxu0  ;;  %v3597_v7 = vpop.f32.mrb[75].mxu1 }
 0x329   :  { %v8246_v57 = vadd.f32 %v4301_v55, %v3595_v15  ;;  %v4303_v1 = vpop.f32.mrb[75].mxu0 }
 0x32a   :  { %v8248_v2 = vadd.f32 %v4303_v1, %v3597_v7 }
 0x32d   :  { %v3601_v11 = vpop.f32.mrb[76].mxu1 }
 0x32e   :  { %v4307_v9 = vpop.f32.mrb[76].mxu0  ;;  %v3603_v47 = vpop.f32.mrb[77].mxu1 }
 0x32f   :  { %v8250_v62 = vadd.f32 %v4307_v9, %v3601_v11  ;;  %v4309_v31 = vpop.f32.mrb[77].mxu0  ;;  %v3605_v61 = vpop.f32.mrb[78].mxu1 }
 0x330   :  { %v8252_v8 = vadd.f32 %v4309_v31, %v3603_v47  ;;  %v4311_v60 = vpop.f32.mrb[78].mxu0  ;;  %v3607_v53 = vpop.f32.mrb[79].mxu1 }
 0x331   :  { %v8254_v56 = vadd.f32 %v4311_v60, %v3605_v61  ;;  %v4313_v30 = vpop.f32.mrb[79].mxu0 }
 0x332   :  { %v8256_v55 = vadd.f32 %v4313_v30, %v3607_v53 }
 0x335   :  { %v3611_v15 = vpop.f32.mrb[80].mxu1 }
 0x336   :  { %v4317_v3 = vpop.f32.mrb[80].mxu0  ;;  %v3613_v7 = vpop.f32.mrb[81].mxu1 }
 0x337   :  { %v8258_v1 = vadd.f32 %v4317_v3, %v3611_v15  ;;  %v4319_v37 = vpop.f32.mrb[81].mxu0  ;;  %v3615_v11 = vpop.f32.mrb[82].mxu1 }
 0x338   :  { %v8260_v9 = vadd.f32 %v4319_v37, %v3613_v7  ;;  %v4321_v46 = vpop.f32.mrb[82].mxu0  ;;  %v3617_v47 = vpop.f32.mrb[83].mxu1 }
 0x339   :  { %8605 = vst [vmem:[#allocation38_spill] sm:$0xff] %v8258_v1  ;;  %v8262_v31 = vadd.f32 %v4321_v46, %v3615_v11  ;;  %v4323_v58 = vpop.f32.mrb[83].mxu0 }
 0x33a   :  { %8606 = vst [vmem:[#allocation39_spill] sm:$0xff] %v8260_v9  ;;  %v8264_v60 = vadd.f32 %v4323_v58, %v3617_v47 }
 0x33b   :  { %8607 = vst [vmem:[#allocation40_spill] sm:$0xff] %v8262_v31 }
 0x33c   :  { %8608 = vst [vmem:[#allocation41_spill] sm:$0xff] %v8264_v60 }
 0x33d   :  { %v3621_v61 = vpop.f32.mrb[84].mxu1 }
 0x33e   :  { %v4327_v41 = vpop.f32.mrb[84].mxu0  ;;  %v3623_v53 = vpop.f32.mrb[85].mxu1 }
 0x33f   :  { %v8266_v30 = vadd.f32 %v4327_v41, %v3621_v61  ;;  %v4329_v38 = vpop.f32.mrb[85].mxu0  ;;  %v3625_v15 = vpop.f32.mrb[86].mxu1 }
 0x340   :  { %v8268_v3 = vadd.f32 %v4329_v38, %v3623_v53  ;;  %v4331_v1 = vpop.f32.mrb[86].mxu0  ;;  %v3627_v7 = vpop.f32.mrb[87].mxu1 }
 0x341   :  { %8609 = vst [vmem:[#allocation42_spill] sm:$0xff] %v8266_v30  ;;  %v8270_v37 = vadd.f32 %v4331_v1, %v3625_v15  ;;  %v4333_v9 = vpop.f32.mrb[87].mxu0  ;;  %v4534_v15 = vlaneseq }
 0x342   :  { %8610 = vst [vmem:[#allocation43_spill] sm:$0xff] %v8268_v3  ;;  %v8272_v46 = vadd.f32 %v4333_v9, %v3627_v7 }
 0x343   :  { %8611 = vst [vmem:[#allocation44_spill] sm:$0xff] %v8270_v37 }
 0x344   :  { %8612 = vst [vmem:[#allocation45_spill] sm:$0xff] %v8272_v46 }
 0x345   :  { %v3631_v11 = vpop.f32.mrb[88].mxu1 }
 0x346   :  { %v4337_v31 = vpop.f32.mrb[88].mxu0  ;;  %v3633_v47 = vpop.f32.mrb[89].mxu1 }
 0x347   :  { %v8274_v58 = vadd.f32 %v4337_v31, %v3631_v11  ;;  %v4339_v60 = vpop.f32.mrb[89].mxu0  ;;  %v3635_v61 = vpop.f32.mrb[90].mxu1 }
 0x348   :  { %v8276_v41 = vadd.f32 %v4339_v60, %v3633_v47  ;;  %v4341_v30 = vpop.f32.mrb[90].mxu0  ;;  %v3637_v53 = vpop.f32.mrb[91].mxu1 }
 0x349   :  { %8613 = vst [vmem:[#allocation46_spill] sm:$0xff] %v8274_v58  ;;  %v8278_v38 = vadd.f32 %v4341_v30, %v3635_v61  ;;  %v4343_v3 = vpop.f32.mrb[91].mxu0  ;;  %v4535_v61 = vshrl.u32 %v4534_v15, 7 }
 0x34a   :  { %8614 = vst [vmem:[#allocation47_spill] sm:$0xff] %v8276_v41  ;;  %v8280_v1 = vadd.f32 %v4343_v3, %v3637_v53 }
 0x34b   :  { %8615 = vst [vmem:[#allocation48_spill] sm:$0xff] %v8278_v38  ;;  %v4536_v3 = vsub.s32 0, %v4535_v61 }
 0x34c   :  { %8616 = vst [vmem:[#allocation49_spill] sm:$0xff] %v8280_v1 }
 0x34d   :  { %v3641_v37 = vpop.f32.mrb[92].mxu1 }
 0x34e   :  { %v4347_v9 = vpop.f32.mrb[92].mxu0  ;;  %v3643_v46 = vpop.f32.mrb[93].mxu1 }
 0x34f   :  { %v8282_v7 = vadd.f32 %v4347_v9, %v3641_v37  ;;  %v4349_v31 = vpop.f32.mrb[93].mxu0  ;;  %v3645_v58 = vpop.f32.mrb[94].mxu1  ;;  %v4532_v37 = vld [vmem:[%s8507_s2] sm:$0x3]  ;;  %v4540_v9 = vsub.s32 1, %v4535_v61 }
 0x350   :  { %v8284_v11 = vadd.f32 %v4349_v31, %v3643_v46  ;;  %v4351_v60 = vpop.f32.mrb[94].mxu0  ;;  %v3647_v41 = vpop.f32.mrb[95].mxu1 }
 0x351   :  { %8617 = vst [vmem:[#allocation50_spill] sm:$0xff] %v8282_v7  ;;  %v8286_v47 = vadd.f32 %v4351_v60, %v3645_v58  ;;  %v4353_v30 = vpop.f32.mrb[95].mxu0  ;;  %v8297_v51 = vrot.slane %v4532_v37, %v4540_v9 }
 0x352   :  { %8618 = vst [vmem:[#allocation51_spill] sm:$0xff] %v8284_v11  ;;  %v8288_v38 = vadd.f32 %v4353_v30, %v3647_v41 }
 0x353   :  { %8619 = vst [vmem:[#allocation52_spill] sm:$0xff] %v8286_v47  ;;  %v8294_v47 = vrot.slane %v4532_v37, %v4536_v3 }
 0x354   :  { %8620 = vst [vmem:[#allocation53_spill] sm:$0xff] %v8288_v38 }
 0x355   :  { %v3651_v53 = vpop.f32.mrb[96].mxu1 }
 0x356   :  { %v4357_v1 = vpop.f32.mrb[96].mxu0  ;;  %v3653_v46 = vpop.f32.mrb[97].mxu1 }
 0x357   :  { %v5316_v7 = vadd.f32 %v4357_v1, %v3651_v53  ;;  %v4359_v31 = vpop.f32.mrb[97].mxu0  ;;  %v3655_v23 = vpop.f32.mrb[98].mxu1  ;;  %v8621_v1 = vmax.f32 %v7925_v10, %v8067_v4  ;;  %v8624_v10 = vmax.f32 %v7943_v42, %v8080_v48 }
 0x358   :  { %v5317_v11 = vadd.f32 %v4359_v31, %v3653_v46  ;;  %v4361_v58 = vpop.f32.mrb[98].mxu0  ;;  %v3657_v15 = vpop.f32.mrb[99].mxu1  ;;  %v8622_v46 = vmax.f32 %v7934_v17, %v8070_v5 }
 0x359   :  { %v4468_v60 = vmax.f32 %v8226_v59, %v5316_v7  ;;  %v5318_v41 = vadd.f32 %v4361_v58, %v3655_v23  ;;  %v4363_v30 = vpop.f32.mrb[99].mxu0 }
 0x35a   :  { %v4469_v38 = vmax.f32 %v8228_v49, %v5317_v11  ;;  %v5319_v40 = vadd.f32 %v4363_v30, %v3657_v15  ;;  %v8623_v49 = vmax.f32 %v7940_v19, %v8075_v28 }
 0x35b   :  { %v4500_v61 = vmax.f32 %v8621_v1, %v4468_v60  ;;  %v4470_v53 = vmax.f32 %v8230_v12, %v5318_v41 }
 0x35c   :  { %v4501_v59 = vmax.f32 %v8622_v46, %v4469_v38  ;;  %v4471_v7 = vmax.f32 %v8232_v0, %v5319_v40  ;;  %v8625_v46 = vmax.f32 %v7947_v20, %v8087_v54 }
 0x35d   :  { %v4544_v23 = vadd.f32 %v8294_v47, %v4500_v61  ;;  %v4502_v11 = vmax.f32 %v8623_v49, %v4470_v53  ;;  %v3661_v37 = vpop.f32.mrb[100].mxu1 }
 0x35e   :  { %v4545_v3 = vadd.f32 %v8297_v51, %v4501_v59  ;;  %v4503_v4 = vmax.f32 %v8624_v10, %v4471_v7  ;;  %v4367_v12 = vpop.f32.mrb[100].mxu0  ;;  %v3663_v38 = vpop.f32.mrb[101].mxu1 }
 0x35f   :  { %v4576_v9 = vmax.f32 %v4544_v23, 0.0  ;;  %v4546_v17 = vadd.f32 %v8294_v47, %v4502_v11  ;;  %v5320_v5 = vadd.f32 %v4367_v12, %v3661_v37  ;;  %v4369_v40 = vpop.f32.mrb[101].mxu0  ;;  %v3665_v19 = vpop.f32.mrb[102].mxu1 }
 0x360   :  { %v4577_v0 = vmax.f32 %v4545_v3, 0.0  ;;  %v4547_v31 = vadd.f32 %v8297_v51, %v4503_v4  ;;  %v5321_v58 = vadd.f32 %v4369_v40, %v3663_v38  ;;  %v4371_v28 = vpop.f32.mrb[102].mxu0  ;;  %v3667_v42 = vpop.f32.mrb[103].mxu1  ;;  %v8627_v3 = vmax.f32 %v7962_v26, %v8095_v18 }
 0x361   :  { %v4578_v60 = vmax.f32 %v4546_v17, 0.0  ;;  %v4472_v41 = vmax.f32 %v8234_v63, %v5320_v5  ;;  %v5322_v15 = vadd.f32 %v4371_v28, %v3665_v19  ;;  %v4373_v48 = vpop.f32.mrb[103].mxu0  ;;  %v8626_v63 = vmax.f32 %v7956_v25, %v8090_v16 }
 0x362   :  { %v5172_v30 = vpack.c.bf16 %v4577_v0, %v4576_v9  ;;  %v4579_v1 = vmax.f32 %v4547_v31, 0.0  ;;  %v4473_v61 = vmax.f32 %v8236_v6, %v5321_v58  ;;  %v5323_v53 = vadd.f32 %v4373_v48, %v3667_v42 }
 0x363   :  { %v4504_v59 = vmax.f32 %v8625_v46, %v4472_v41  ;;  %v4474_v7 = vmax.f32 %v8238_v21, %v5322_v15  ;;  %v8628_v21 = vmax.f32 %v7965_v50, %v8100_v13  ;;  %v8629_v41 = vmax.f32 %v7969_v27, %v8107_v44 }
 0x364   :  { %4704 = vst [vmem:[%s8508_s3] sm:$0xff] %v5172_v30  ;;  %v5173_v23 = vpack.c.bf16 %v4579_v1, %v4578_v60  ;;  %v4505_v49 = vmax.f32 %v8626_v63, %v4473_v61  ;;  %v4475_v11 = vmax.f32 %v8240_v14, %v5323_v53  ;;  %v8631_v61 = vmax.f32 %v7984_v33, %v8115_v35 }
 0x365   :  { %v4548_v6 = vadd.f32 %v8294_v47, %v4504_v59  ;;  %v4506_v20 = vmax.f32 %v8627_v3, %v4474_v7  ;;  %v3671_v25 = vpop.f32.mrb[104].mxu1 }
 0x366   :  { %4705 = vst [vmem:[%s8508_s3 + $0x8] sm:$0xff] %v5173_v23  ;;  %v4549_v54 = vadd.f32 %v8297_v51, %v4505_v49  ;;  %v4507_v10 = vmax.f32 %v8628_v21, %v4475_v11  ;;  %v4377_v16 = vpop.f32.mrb[104].mxu0  ;;  %v3673_v12 = vpop.f32.mrb[105].mxu1 }
 0x367   :  { %v4580_v4 = vmax.f32 %v4548_v6, 0.0  ;;  %v4550_v14 = vadd.f32 %v8294_v47, %v4506_v20  ;;  %v5324_v37 = vadd.f32 %v4377_v16, %v3671_v25  ;;  %v4379_v9 = vpop.f32.mrb[105].mxu0  ;;  %v3675_v5 = vpop.f32.mrb[106].mxu1  ;;  %v8633_v16 = vmax.f32 %v7991_v34, %v8127_v52 }
 0x368   :  { %v4581_v26 = vmax.f32 %v4549_v54, 0.0  ;;  %v4551_v18 = vadd.f32 %v8297_v51, %v4507_v10  ;;  %v5325_v17 = vadd.f32 %v4379_v9, %v3673_v12  ;;  %v4381_v38 = vpop.f32.mrb[106].mxu0  ;;  %v3677_v50 = vpop.f32.mrb[107].mxu1 }
 0x369   :  { %v4582_v40 = vmax.f32 %v4550_v14, 0.0  ;;  %v4476_v0 = vmax.f32 %v8242_v24, %v5324_v37  ;;  %v5326_v31 = vadd.f32 %v4381_v38, %v3675_v5  ;;  %v4383_v13 = vpop.f32.mrb[107].mxu0  ;;  %v8630_v24 = vmax.f32 %v7978_v32, %v8110_v29  ;;  %v8639_v5 = vld [vmem:[#allocation33_spill] sm:$0xff] }
 0x36a   :  { %v5174_v58 = vpack.c.bf16 %v4581_v26, %v4580_v4  ;;  %v4583_v19 = vmax.f32 %v4551_v18, 0.0  ;;  %v4477_v28 = vmax.f32 %v8244_v36, %v5325_v17  ;;  %v5327_v60 = vadd.f32 %v4383_v13, %v3677_v50  ;;  %v8635_v26 = vld [vmem:[#allocation14_spill] sm:$0xff]  ;;  %v8636_v18 = vld [vmem:[#allocation32_spill] sm:$0xff] }
 0x36b   :  { %v4508_v15 = vmax.f32 %v8629_v41, %v4476_v0  ;;  %v4478_v42 = vmax.f32 %v8246_v57, %v5326_v31  ;;  %v8632_v57 = vmax.f32 %v7987_v43, %v8120_v22  ;;  %v8637_v17 = vmax.f32 %v8635_v26, %v8636_v18 }
 0x36c   :  { %4706 = vst [vmem:[%s8508_s3 + $0x10] sm:$0xff] %v5174_v58  ;;  %v5175_v48 = vpack.c.bf16 %v4583_v19, %v4582_v40  ;;  %v4509_v30 = vmax.f32 %v8630_v24, %v4477_v28  ;;  %v4479_v1 = vmax.f32 %v8248_v2, %v5327_v60 }
 0x36d   :  { %v4552_v36 = vadd.f32 %v8294_v47, %v4508_v15  ;;  %v4510_v27 = vmax.f32 %v8631_v61, %v4478_v42  ;;  %v3681_v32 = vpop.f32.mrb[108].mxu1  ;;  %v8641_v42 = vld [vmem:[#allocation38_spill] sm:$0xff] }
 0x36e   :  { %4707 = vst [vmem:[%s8508_s3 + $0x18] sm:$0xff] %v5175_v48  ;;  %v4553_v44 = vadd.f32 %v8297_v51, %v4509_v30  ;;  %v4511_v53 = vmax.f32 %v8632_v57, %v4479_v1  ;;  %v4387_v29 = vpop.f32.mrb[108].mxu0  ;;  %v3683_v7 = vpop.f32.mrb[109].mxu1 }
 0x36f   :  { %v4584_v46 = vmax.f32 %v4552_v36, 0.0  ;;  %v4554_v2 = vadd.f32 %v8294_v47, %v4510_v27  ;;  %v5328_v59 = vadd.f32 %v4387_v29, %v3681_v32  ;;  %v4389_v23 = vpop.f32.mrb[109].mxu0  ;;  %v3685_v49 = vpop.f32.mrb[110].mxu1  ;;  %v8642_v27 = vld [vmem:[#allocation39_spill] sm:$0xff]  ;;  %v8644_v32 = vld [vmem:[#allocation34_spill] sm:$0xff] }
 0x370   :  { %v4585_v33 = vmax.f32 %v4553_v44, 0.0  ;;  %v4555_v35 = vadd.f32 %v8297_v51, %v4511_v53  ;;  %v5329_v63 = vadd.f32 %v4389_v23, %v3683_v7  ;;  %v4391_v11 = vpop.f32.mrb[110].mxu0  ;;  %v3687_v43 = vpop.f32.mrb[111].mxu1  ;;  %v8643_v53 = vld [vmem:[#allocation16_spill] sm:$0xff]  ;;  %v8647_v23 = vld [vmem:[#allocation17_spill] sm:$0xff] }
 0x371   :  { %v4586_v6 = vmax.f32 %v4554_v2, 0.0  ;;  %v4480_v3 = vmax.f32 %v8250_v62, %v5328_v59  ;;  %v5330_v20 = vadd.f32 %v4391_v11, %v3685_v49  ;;  %v4393_v22 = vpop.f32.mrb[111].mxu0  ;;  %v8634_v62 = vmax.f32 %v8000_v39, %v8130_v45  ;;  %v8646_v2 = vld [vmem:[#allocation40_spill] sm:$0xff]  ;;  %v8650_v49 = vld [vmem:[#allocation41_spill] sm:$0xff] }
 0x372   :  { %v5176_v54 = vpack.c.bf16 %v4585_v33, %v4584_v46  ;;  %v4587_v21 = vmax.f32 %v4555_v35, 0.0  ;;  %v4481_v10 = vmax.f32 %v8252_v8, %v5329_v63  ;;  %v5331_v25 = vadd.f32 %v4393_v22, %v3687_v43  ;;  %v8648_v33 = vld [vmem:[#allocation35_spill] sm:$0xff] }
 0x373   :  { %v4512_v4 = vmax.f32 %v8633_v16, %v4480_v3  ;;  %v4482_v14 = vmax.f32 %v8254_v56, %v5330_v20  ;;  %v8638_v56 = vld [vmem:[#allocation15_spill] sm:$0xff]  ;;  %v8645_v29 = vmax.f32 %v8643_v53, %v8644_v32  ;;  %v8649_v35 = vmax.f32 %v8647_v23, %v8648_v33  ;;  %v8651_v3 = vld [vmem:[#allocation18_spill] sm:$0xff]  ;;  %v8652_v20 = vld [vmem:[#allocation36_spill] sm:$0xff] }
 0x374   :  { %4708 = vst [vmem:[%s8508_s3 + $0x20] sm:$0xff] %v5176_v54  ;;  %v5177_v37 = vpack.c.bf16 %v4587_v21, %v4586_v6  ;;  %v4513_v12 = vmax.f32 %v8634_v62, %v4481_v10  ;;  %v4483_v9 = vmax.f32 %v8256_v55, %v5331_v25  ;;  %v8640_v38 = vmax.f32 %v8638_v56, %v8639_v5  ;;  %v8654_v21 = vld [vmem:[#allocation19_spill] sm:$0xff]  ;;  %v8655_v10 = vld [vmem:[#allocation37_spill] sm:$0xff]  ;;  %v8657_v5 = vld [vmem:[#allocation42_spill] sm:$0xff] }
 0x375   :  { %v4556_v8 = vadd.f32 %v8294_v47, %v4512_v4  ;;  %v4514_v34 = vmax.f32 %v8637_v17, %v4482_v14  ;;  %v3691_v39 = vpop.f32.mrb[112].mxu1  ;;  %v8653_v43 = vmax.f32 %v8651_v3, %v8652_v20  ;;  %v8656_v25 = vmax.f32 %v8654_v21, %v8655_v10  ;;  %v8673_v10 = vld [vmem:[#allocation46_spill] sm:$0xff] }
 0x376   :  { %4709 = vst [vmem:[%s8508_s3 + $0x28] sm:$0xff] %v5177_v37  ;;  %v4557_v52 = vadd.f32 %v8297_v51, %v4513_v12  ;;  %v4515_v40 = vmax.f32 %v8640_v38, %v4483_v9  ;;  %v4397_v45 = vpop.f32.mrb[112].mxu0  ;;  %v3693_v50 = vpop.f32.mrb[113].mxu1 }
 0x377   :  { %v4588_v0 = vmax.f32 %v4556_v8, 0.0  ;;  %v4558_v55 = vadd.f32 %v8294_v47, %v4514_v34  ;;  %v5332_v31 = vadd.f32 %v4397_v45, %v3691_v39  ;;  %v4399_v13 = vpop.f32.mrb[113].mxu0  ;;  %v3695_v60 = vpop.f32.mrb[114].mxu1 }
 0x378   :  { %v4589_v58 = vmax.f32 %v4557_v52, 0.0  ;;  %v4559_v19 = vadd.f32 %v8297_v51, %v4515_v40  ;;  %v5333_v28 = vadd.f32 %v4399_v13, %v3693_v50  ;;  %v4401_v41 = vpop.f32.mrb[114].mxu0  ;;  %v3697_v30 = vpop.f32.mrb[115].mxu1 }
 0x379   :  { %v4590_v15 = vmax.f32 %v4558_v55, 0.0  ;;  %v4484_v48 = vmax.f32 %v8641_v42, %v5332_v31  ;;  %v5334_v24 = vadd.f32 %v4401_v41, %v3695_v60  ;;  %v4403_v1 = vpop.f32.mrb[115].mxu0  ;;  %v8658_v31 = vld [vmem:[#allocation43_spill] sm:$0xff]  ;;  %v8662_v41 = vld [vmem:[#allocation44_spill] sm:$0xff] }
 0x37a   :  { %v5178_v36 = vpack.c.bf16 %v4589_v58, %v4588_v0  ;;  %v4591_v61 = vmax.f32 %v4559_v19, 0.0  ;;  %v4485_v44 = vmax.f32 %v8642_v27, %v5333_v28  ;;  %v5335_v57 = vadd.f32 %v4403_v1, %v3697_v30  ;;  %v8659_v58 = vld [vmem:[#allocation20_spill] sm:$0xff]  ;;  %v8660_v19 = vld [vmem:[#allocation2_spill] sm:$0xff] }
 0x37b   :  { %v4516_v46 = vmax.f32 %v8645_v29, %v4484_v48  ;;  %v4486_v59 = vmax.f32 %v8646_v2, %v5334_v24  ;;  %v8661_v28 = vmax.f32 %v8659_v58, %v8660_v19  ;;  %v8663_v48 = vld [vmem:[#allocation21_spill] sm:$0xff]  ;;  %v8664_v24 = vld [vmem:[#allocation3_spill] sm:$0xff] }
 0x37c   :  { %4710 = vst [vmem:[%s8508_s3 + $0x30] sm:$0xff] %v5178_v36  ;;  %v5179_v7 = vpack.c.bf16 %v4591_v61, %v4590_v15  ;;  %v4517_v63 = vmax.f32 %v8649_v35, %v4485_v44  ;;  %v4487_v11 = vmax.f32 %v8650_v49, %v5335_v57  ;;  %v8665_v30 = vmax.f32 %v8663_v48, %v8664_v24  ;;  %v8666_v36 = vld [vmem:[#allocation45_spill] sm:$0xff]  ;;  %v8667_v44 = vld [vmem:[#allocation22_spill] sm:$0xff]  ;;  %v8668_v57 = vld [vmem:[#allocation4_spill] sm:$0xff] }
 0x37d   :  { %v4560_v6 = vadd.f32 %v8294_v47, %v4516_v46  ;;  %v4518_v22 = vmax.f32 %v8653_v43, %v4486_v59  ;;  %v3701_v4 = vpop.f32.mrb[116].mxu1  ;;  %v8669_v53 = vmax.f32 %v8667_v44, %v8668_v57  ;;  %v8670_v46 = vld [vmem:[#allocation23_spill] sm:$0xff]  ;;  %v8671_v2 = vld [vmem:[#allocation5_spill] sm:$0xff] }
 0x37e   :  { %4711 = vst [vmem:[%s8508_s3 + $0x38] sm:$0xff] %v5179_v7  ;;  %v4561_v54 = vadd.f32 %v8297_v51, %v4517_v63  ;;  %v4519_v16 = vmax.f32 %v8656_v25, %v4487_v11  ;;  %v4407_v14 = vpop.f32.mrb[116].mxu0  ;;  %v3703_v9 = vpop.f32.mrb[117].mxu1  ;;  %v8672_v59 = vmax.f32 %v8670_v46, %v8671_v2  ;;  %v8689_v2 = vld [vmem:[#allocation50_spill] sm:$0xff] }
 0x37f   :  { %v4592_v37 = vmax.f32 %v4560_v6, 0.0  ;;  %v4562_v62 = vadd.f32 %v8294_v47, %v4518_v22  ;;  %v5336_v12 = vadd.f32 %v4407_v14, %v3701_v4  ;;  %v4409_v8 = vpop.f32.mrb[117].mxu0  ;;  %v3705_v34 = vpop.f32.mrb[118].mxu1 }
 0x380   :  { %v4593_v26 = vmax.f32 %v4561_v54, 0.0  ;;  %v4563_v18 = vadd.f32 %v8297_v51, %v4519_v16  ;;  %v5337_v17 = vadd.f32 %v4409_v8, %v3703_v9  ;;  %v4411_v52 = vpop.f32.mrb[118].mxu0  ;;  %v3707_v39 = vpop.f32.mrb[119].mxu1 }
 0x381   :  { %v4594_v56 = vmax.f32 %v4562_v62, 0.0  ;;  %v4488_v38 = vmax.f32 %v8657_v5, %v5336_v12  ;;  %v5338_v40 = vadd.f32 %v4411_v52, %v3705_v34  ;;  %v4413_v45 = vpop.f32.mrb[119].mxu0  ;;  %v8674_v12 = vld [vmem:[#allocation47_spill] sm:$0xff]  ;;  %v8678_v52 = vld [vmem:[#allocation48_spill] sm:$0xff] }
 0x382   :  { %v5180_v0 = vpack.c.bf16 %v4593_v26, %v4592_v37  ;;  %v4595_v55 = vmax.f32 %v4563_v18, 0.0  ;;  %v4489_v50 = vmax.f32 %v8658_v31, %v5337_v17  ;;  %v5339_v13 = vadd.f32 %v4413_v45, %v3707_v39  ;;  %v8675_v26 = vld [vmem:[#allocation24_spill] sm:$0xff]  ;;  %v8676_v18 = vld [vmem:[#allocation6_spill] sm:$0xff] }
 0x383   :  { %v4520_v60 = vmax.f32 %v8661_v28, %v4488_v38  ;;  %v4490_v15 = vmax.f32 %v8662_v41, %v5338_v40  ;;  %v8677_v17 = vmax.f32 %v8675_v26, %v8676_v18  ;;  %v8679_v38 = vld [vmem:[#allocation25_spill] sm:$0xff]  ;;  %v8680_v40 = vld [vmem:[#allocation7_spill] sm:$0xff] }
 0x384   :  { %4712 = vst [vmem:[%s8508_s3 + $0x40] sm:$0xff] %v5180_v0  ;;  %v5181_v42 = vpack.c.bf16 %v4595_v55, %v4594_v56  ;;  %v4521_v1 = vmax.f32 %v8665_v30, %v4489_v50  ;;  %v4491_v61 = vmax.f32 %v8666_v36, %v5339_v13  ;;  %v8681_v39 = vmax.f32 %v8679_v38, %v8680_v40  ;;  %v8682_v0 = vld [vmem:[#allocation49_spill] sm:$0xff]  ;;  %v8683_v50 = vld [vmem:[#allocation26_spill] sm:$0xff]  ;;  %v8684_v13 = vld [vmem:[#allocation8_spill] sm:$0xff] }
 0x385   :  { %v4564_v27 = vadd.f32 %v8294_v47, %v4520_v60  ;;  %v4522_v32 = vmax.f32 %v8669_v53, %v4490_v15  ;;  %v3711_v23 = vpop.f32.mrb[120].mxu1  ;;  %v8685_v58 = vmax.f32 %v8683_v50, %v8684_v13  ;;  %v8686_v60 = vld [vmem:[#allocation27_spill] sm:$0xff]  ;;  %v8687_v41 = vld [vmem:[#allocation9_spill] sm:$0xff] }
 0x386   :  { %4713 = vst [vmem:[%s8508_s3 + $0x48] sm:$0xff] %v5181_v42  ;;  %v4565_v29 = vadd.f32 %v8297_v51, %v4521_v1  ;;  %v4523_v7 = vmax.f32 %v8672_v59, %v4491_v61  ;;  %v4417_v33 = vpop.f32.mrb[120].mxu0  ;;  %v3713_v11 = vpop.f32.mrb[121].mxu1  ;;  %v8688_v15 = vmax.f32 %v8686_v60, %v8687_v41 }
 0x387   :  { %v4596_v35 = vmax.f32 %v4564_v27, 0.0  ;;  %v4566_v63 = vadd.f32 %v8294_v47, %v4522_v32  ;;  %v5340_v49 = vadd.f32 %v4417_v33, %v3711_v23  ;;  %v4419_v6 = vpop.f32.mrb[121].mxu0  ;;  %v3715_v22 = vpop.f32.mrb[122].mxu1 }
 0x388   :  { %v4597_v3 = vmax.f32 %v4565_v29, 0.0  ;;  %v4567_v20 = vadd.f32 %v8297_v51, %v4523_v7  ;;  %v5341_v43 = vadd.f32 %v4419_v6, %v3713_v11  ;;  %v4421_v54 = vpop.f32.mrb[122].mxu0  ;;  %v3717_v4 = vpop.f32.mrb[123].mxu1 }
 0x389   :  { %v4598_v21 = vmax.f32 %v4566_v63, 0.0  ;;  %v4492_v25 = vmax.f32 %v8673_v10, %v5340_v49  ;;  %v5342_v16 = vadd.f32 %v4421_v54, %v3715_v22  ;;  %v4423_v14 = vpop.f32.mrb[123].mxu0  ;;  %v8690_v49 = vld [vmem:[#allocation51_spill] sm:$0xff]  ;;  %v8694_v54 = vld [vmem:[#allocation52_spill] sm:$0xff] }
 0x38a   :  { %v5182_v37 = vpack.c.bf16 %v4597_v3, %v4596_v35  ;;  %v4599_v62 = vmax.f32 %v4567_v20, 0.0  ;;  %v4493_v9 = vmax.f32 %v8674_v12, %v5341_v43  ;;  %v5343_v8 = vadd.f32 %v4423_v14, %v3717_v4  ;;  %v8691_v3 = vld [vmem:[#allocation28_spill] sm:$0xff]  ;;  %v8692_v20 = vld [vmem:[#allocation10_spill] sm:$0xff] }
 0x38b   :  { %v4524_v34 = vmax.f32 %v8677_v17, %v4492_v25  ;;  %v4494_v56 = vmax.f32 %v8678_v52, %v5342_v16  ;;  %v8693_v43 = vmax.f32 %v8691_v3, %v8692_v20  ;;  %v8695_v25 = vld [vmem:[#allocation29_spill] sm:$0xff]  ;;  %v8696_v16 = vld [vmem:[#allocation11_spill] sm:$0xff] }
 0x38c   :  { %4714 = vst [vmem:[%s8508_s3 + $0x50] sm:$0xff] %v5182_v37  ;;  %v5183_v5 = vpack.c.bf16 %v4599_v62, %v4598_v21  ;;  %v4525_v45 = vmax.f32 %v8681_v39, %v4493_v9  ;;  %v4495_v55 = vmax.f32 %v8682_v0, %v5343_v8  ;;  %v8697_v4 = vmax.f32 %v8695_v25, %v8696_v16  ;;  %v8698_v37 = vld [vmem:[#allocation53_spill] sm:$0xff]  ;;  %v8699_v9 = vld [vmem:[#allocation30_spill] sm:$0xff]  ;;  %v8700_v8 = vld [vmem:[#allocation12_spill] sm:$0xff] }
 0x38d   :  { %v4568_v31 = vadd.f32 %v8294_v47, %v4524_v34  ;;  %v4526_v19 = vmax.f32 %v8685_v58, %v4494_v56  ;;  %v3721_v48 = vpop.f32.mrb[124].mxu1  ;;  %v8701_v26 = vmax.f32 %v8699_v9, %v8700_v8  ;;  %v8702_v34 = vld [vmem:[#allocation31_spill] sm:$0xff]  ;;  %v8703_v52 = vld [vmem:[#allocation13_spill] sm:$0xff] }
 0x38e   :  { %4715 = vst [vmem:[%s8508_s3 + $0x58] sm:$0xff] %v5183_v5  ;;  %v4569_v28 = vadd.f32 %v8297_v51, %v4525_v45  ;;  %v4527_v42 = vmax.f32 %v8688_v15, %v4495_v55  ;;  %v4427_v24 = vpop.f32.mrb[124].mxu0  ;;  %v3723_v61 = vpop.f32.mrb[125].mxu1  ;;  %v8704_v56 = vmax.f32 %v8702_v34, %v8703_v52 }
 0x38f   :  { %v4600_v30 = vmax.f32 %v4568_v31, 0.0  ;;  %v4570_v1 = vadd.f32 %v8294_v47, %v4526_v19  ;;  %v5344_v36 = vadd.f32 %v4427_v24, %v3721_v48  ;;  %v4429_v27 = vpop.f32.mrb[125].mxu0  ;;  %v3725_v32 = vpop.f32.mrb[126].mxu1 }
 0x390   :  { %v4601_v44 = vmax.f32 %v4569_v28, 0.0  ;;  %v4571_v57 = vadd.f32 %v8297_v51, %v4527_v42  ;;  %v5345_v53 = vadd.f32 %v4429_v27, %v3723_v61  ;;  %v4431_v29 = vpop.f32.mrb[126].mxu0  ;;  %v3727_v23 = vpop.f32.mrb[127].mxu1 }
 0x391   :  { %v4602_v46 = vmax.f32 %v4570_v1, 0.0  ;;  %v4496_v59 = vmax.f32 %v8689_v2, %v5344_v36  ;;  %v5346_v7 = vadd.f32 %v4431_v29, %v3725_v32  ;;  %v4433_v33 = vpop.f32.mrb[127].mxu0 }
 0x392   :  { %v5184_v35 = vpack.c.bf16 %v4601_v44, %v4600_v30  ;;  %v4603_v63 = vmax.f32 %v4571_v57, 0.0  ;;  %v4497_v11 = vmax.f32 %v8690_v49, %v5345_v53  ;;  %v5347_v6 = vadd.f32 %v4433_v33, %v3727_v23 }
 0x393   :  { %v4528_v22 = vmax.f32 %v8693_v43, %v4496_v59  ;;  %v4498_v21 = vmax.f32 %v8694_v54, %v5346_v7 }
 0x394   :  { %4716 = vst [vmem:[%s8508_s3 + $0x60] sm:$0xff] %v5184_v35  ;;  %v5185_v10 = vpack.c.bf16 %v4603_v63, %v4602_v46  ;;  %v4529_v14 = vmax.f32 %v8697_v4, %v4497_v11  ;;  %v4499_v62 = vmax.f32 %v8698_v37, %v5347_v6 }
 0x395   :  { %v4572_v12 = vadd.f32 %v8294_v47, %v4528_v22  ;;  %v4530_v18 = vmax.f32 %v8701_v26, %v4498_v21 }
 0x396   :  { %4717 = vst [vmem:[%s8508_s3 + $0x68] sm:$0xff] %v5185_v10  ;;  %v4573_v17 = vadd.f32 %v8297_v51, %v4529_v14  ;;  %v4531_v5 = vmax.f32 %v8704_v56, %v4499_v62 }
 0x397   :  { %v4604_v38 = vmax.f32 %v4572_v12, 0.0  ;;  %v4574_v40 = vadd.f32 %v8294_v47, %v4530_v18 }
 0x398   :  { %v4605_v39 = vmax.f32 %v4573_v17, 0.0  ;;  %v4575_v45 = vadd.f32 %v8297_v51, %v4531_v5 }
 0x399   :  { %v4606_v0 = vmax.f32 %v4574_v40, 0.0 }
 0x39a   :  { %v5186_v55 = vpack.c.bf16 %v4605_v39, %v4604_v38  ;;  %v4607_v31 = vmax.f32 %v4575_v45, 0.0 }
 0x39c   :  { %4718 = vst [vmem:[%s8508_s3 + $0x70] sm:$0xff] %v5186_v55  ;;  %v5187_v50 = vpack.c.bf16 %v4607_v31, %v4606_v0 }
 0x39e   :  { %4719 = vst [vmem:[%s8508_s3 + $0x78] sm:$0xff] %v5187_v50 }

// kernel: convert4x_forward.5
= control target key start
LH: loop header
LB: loop body
LE: loop exit
PB: predicated region body
PF: predicated region fallthrough
CT: control target
= control target key end

     0   :  { %s2981_s1 = inlined_call_operand.vmem [shape: bf16[1280,128], index: 1, kind: input, shape index: {}]   ;;  %s2982_s0 = inlined_call_operand.vmem [shape: bf16[4,32,1280], index: 0, kind: input, shape index: {}]   ;;  %s2983_s2 = inlined_call_operand.vmem [shape: f32[1,128], index: 2, kind: input, shape index: {}]   ;;  %s2984_s3 = inlined_call_operand.vmem [shape: f32[32,128], index: 3, kind: output, shape index: {}]  }
   0x1   :  { %v2152_v0 = vld [vmem:[%s2981_s1 + $0x40] sm:$0xff]   ;;  %v2154_v2 = vld [vmem:[%s2981_s1 + $0x48] sm:$0xff]   ;;  %v2156_v4 = vld [vmem:[%s2981_s1 + $0x50] sm:$0xff]  }
   0x2   :  { %v2153_v1 = vld [vmem:[%s2981_s1] sm:$0xff]   ;;  %1816 = vmatprep.subr.bf16.mxu0 %v2152_v0  ;;  %2136 = vmatprep.subr.bf16.mxu1 %v2152_v0  ;;  %v2155_v3 = vld [vmem:[%s2981_s1 + $0x8] sm:$0xff]   ;;  %v2157_v5 = vld [vmem:[%s2981_s1 + $0x10] sm:$0xff]  }
   0x3   :  { %1817 = vmatpush3.bf16.msra.mxu0 %v2153_v1  ;;  %2144 = vmatpush3.bf16.msra.mxu1 %v2153_v1  ;;  %v2158_v6 = vld [vmem:[%s2981_s1 + $0x58] sm:$0xff]   ;;  %v2160_v8 = vld [vmem:[%s2981_s1 + $0x60] sm:$0xff]   ;;  %v2162_v10 = vld [vmem:[%s2981_s1 + $0x68] sm:$0xff]  }
   0x4   :  { %1818 = vmatprep.subr.bf16.mxu0 %v2154_v2  ;;  %2137 = vmatprep.subr.bf16.mxu1 %v2154_v2  ;;  %v2159_v7 = vld [vmem:[%s2981_s1 + $0x18] sm:$0xff]   ;;  %v2161_v9 = vld [vmem:[%s2981_s1 + $0x20] sm:$0xff]   ;;  %v2163_v13 = vld [vmem:[%s2981_s1 + $0x28] sm:$0xff]  }
   0x5   :  { %v2170_v11 = vld [vmem:[%s2982_s0 + $0x4] ss:$40 sps:$4 sm:$0xff]   ;;  %v2164_v14 = vld [vmem:[%s2981_s1 + $0x70] sm:$0xff]   ;;  %v2166_v16 = vld [vmem:[%s2981_s1 + $0x78] sm:$0xff]  }
   0x6   :  { %v2173_v12 = vld [vmem:[%s2982_s0 + $0x144] ss:$40 sps:$4 sm:$0xff]   ;;  %1167 = vmatprep.mubr.bf16.mxu0 %v2170_v11  ;;  %v2165_v15 = vld [vmem:[%s2981_s1 + $0x30] sm:$0xff]   ;;  %v2167_v17 = vld [vmem:[%s2981_s1 + $0x38] sm:$0xff]  }
   0x7   :  { %1819 = vmatpush3.bf16.msra.mxu0 %v2155_v3  ;;  %2145 = vmatpush3.bf16.msra.mxu1 %v2155_v3  ;;  %v2168_v18 = vld [vmem:[%s2982_s0] ss:$40 sps:$4 sm:$0xff]   ;;  %v2182_v26 = vld [vmem:[%s2982_s0 + $0x54] ss:$40 sps:$4 sm:$0xff]   ;;  %v2186_v31 = vld [vmem:[%s2982_s0 + $0x50] ss:$40 sps:$4 sm:$0xff]  }
   0x8   :  { %1820 = vmatprep.subr.bf16.mxu0 %v2156_v4  ;;  %2138 = vmatprep.subr.bf16.mxu1 %v2156_v4  ;;  %v2171_v19 = vld [vmem:[%s2982_s0 + $0x140] ss:$40 sps:$4 sm:$0xff]   ;;  %v2184_v28 = vld [vmem:[%s2982_s0 + $0x194] ss:$40 sps:$4 sm:$0xff]   ;;  %v2187_v33 = vld [vmem:[%s2982_s0 + $0x190] ss:$40 sps:$4 sm:$0xff]  }
   0x9   :  { %1199 = vmatprep.mubr.bf16.mxu1 %v2173_v12  ;;  %v2174_v20 = vld [vmem:[%s2981_s1 + $0xc0] sm:$0xff]   ;;  %v2178_v24 = vld [vmem:[%s2981_s1 + $0xc8] sm:$0xff]   ;;  %v2188_v30 = vld [vmem:[%s2981_s1 + $0xd0] sm:$0xff]  }
   0xa   :  { %v2175_v21 = vld [vmem:[%s2981_s1 + $0x140] sm:$0xff]   ;;  %v2179_v25 = vld [vmem:[%s2981_s1 + $0x148] sm:$0xff]   ;;  %v2189_v32 = vld [vmem:[%s2981_s1 + $0x150] sm:$0xff]  }
   0xb   :  { %1821 = vmatpush3.bf16.msra.mxu0 %v2157_v5  ;;  %2146 = vmatpush3.bf16.msra.mxu1 %v2157_v5  ;;  %v2176_v22 = vld [vmem:[%s2981_s1 + $0x80] sm:$0xff]   ;;  %v2180_v27 = vld [vmem:[%s2981_s1 + $0x88] sm:$0xff]   ;;  %v2190_v34 = vld [vmem:[%s2981_s1 + $0x90] sm:$0xff]  }
   0xc   :  { %1822 = vmatprep.subr.bf16.mxu0 %v2158_v6  ;;  %2139 = vmatprep.subr.bf16.mxu1 %v2158_v6  ;;  %v2177_v23 = vld [vmem:[%s2981_s1 + $0x100] sm:$0xff]   ;;  %v2181_v29 = vld [vmem:[%s2981_s1 + $0x108] sm:$0xff]   ;;  %v2191_v35 = vld [vmem:[%s2981_s1 + $0x110] sm:$0xff]  }
   0xd   :  { %v2192_v36 = vld [vmem:[%s2981_s1 + $0xd8] sm:$0xff]   ;;  %v2196_v38 = vld [vmem:[%s2982_s0 + $0xa4] ss:$40 sps:$4 sm:$0xff]   ;;  %v2200_v43 = vld [vmem:[%s2982_s0 + $0xa0] ss:$40 sps:$4 sm:$0xff]  }
   0xe   :  { %v2193_v37 = vld [vmem:[%s2981_s1 + $0x158] sm:$0xff]   ;;  %v2198_v40 = vld [vmem:[%s2982_s0 + $0x1e4] ss:$40 sps:$4 sm:$0xff]   ;;  %v2201_v44 = vld [vmem:[%s2982_s0 + $0x1e0] ss:$40 sps:$4 sm:$0xff]  }
   0xf   :  { %1823 = vmatpush3.bf16.msra.mxu0 %v2159_v7  ;;  %2147 = vmatpush3.bf16.msra.mxu1 %v2159_v7  ;;  %v2194_v39 = vld [vmem:[%s2981_s1 + $0x98] sm:$0xff]   ;;  %v2202_v42 = vld [vmem:[%s2981_s1 + $0xe0] sm:$0xff]   ;;  %v2206_v48 = vld [vmem:[%s2981_s1 + $0xe8] sm:$0xff]  }
  0x10   :  { %1824 = vmatprep.subr.bf16.mxu0 %v2160_v8  ;;  %2140 = vmatprep.subr.bf16.mxu1 %v2160_v8  ;;  %v2195_v41 = vld [vmem:[%s2981_s1 + $0x118] sm:$0xff]   ;;  %v2203_v45 = vld [vmem:[%s2981_s1 + $0x160] sm:$0xff]   ;;  %v2207_v49 = vld [vmem:[%s2981_s1 + $0x168] sm:$0xff]  }
  0x11   :  { %v2204_v46 = vld [vmem:[%s2981_s1 + $0xa0] sm:$0xff]   ;;  %v2210_v50 = vld [vmem:[%s2982_s0 + $0xf4] ss:$40 sps:$4 sm:$0xff]   ;;  %v2208_v52 = vld [vmem:[%s2981_s1 + $0xa8] sm:$0xff]  }
  0x12   :  { %v2205_v47 = vld [vmem:[%s2981_s1 + $0x120] sm:$0xff]   ;;  %v2212_v51 = vld [vmem:[%s2982_s0 + $0x234] ss:$40 sps:$4 sm:$0xff]   ;;  %v2209_v53 = vld [vmem:[%s2981_s1 + $0x128] sm:$0xff]  }
  0x13   :  { %1825 = vmatpush3.bf16.msra.mxu0 %v2161_v9  ;;  %2148 = vmatpush3.bf16.msra.mxu1 %v2161_v9  ;;  %v2216_v54 = vld [vmem:[%s2981_s1 + $0xf0] sm:$0xff]   ;;  %v2220_v60 = vld [vmem:[%s2981_s1 + $0xf8] sm:$0xff]   ;;  %v2230_v4 = vld [vmem:[%s2981_s1 + $0x1c0] sm:$0xff]  }
  0x14   :  { %1826 = vmatprep.subr.bf16.mxu0 %v2162_v10  ;;  %2141 = vmatprep.subr.bf16.mxu1 %v2162_v10  ;;  %v2214_v55 = vld [vmem:[%s2982_s0 + $0xf0] ss:$40 sps:$4 sm:$0xff]   ;;  %v2226_v0 = vld [vmem:[%s2982_s0 + $0xc] ss:$40 sps:$4 sm:$0xff]   ;;  %v2231_v5 = vld [vmem:[%s2981_s1 + $0x180] sm:$0xff]  }
  0x15   :  { %v2215_v56 = vld [vmem:[%s2982_s0 + $0x230] ss:$40 sps:$4 sm:$0xff]   ;;  %v2229_v3 = vld [vmem:[%s2982_s0 + $0x14] ss:$40 sps:$4 sm:$0xff]   ;;  %v2232_v6 = vld [vmem:[%s2981_s1 + $0x240] sm:$0xff]  }
  0x16   :  { %v2217_v57 = vld [vmem:[%s2981_s1 + $0x170] sm:$0xff]   ;;  %v2221_v61 = vld [vmem:[%s2981_s1 + $0x178] sm:$0xff]   ;;  %v2233_v7 = vld [vmem:[%s2981_s1 + $0x200] sm:$0xff]  }
  0x17   :  { %1827 = vmatpush3.bf16.msra.mxu0 %v2163_v13  ;;  %2149 = vmatpush3.bf16.msra.mxu1 %v2163_v13  ;;  %v2218_v58 = vld [vmem:[%s2981_s1 + $0xb0] sm:$0xff]   ;;  %v2222_v62 = vld [vmem:[%s2981_s1 + $0xb8] sm:$0xff]   ;;  %v2236_v9 = vld [vmem:[%s2982_s0 + $0x64] ss:$40 sps:$4 sm:$0xff]  }
  0x18   :  { %1828 = vmatprep.subr.bf16.mxu0 %v2164_v14  ;;  %2142 = vmatprep.subr.bf16.mxu1 %v2164_v14  ;;  %v2219_v59 = vld [vmem:[%s2981_s1 + $0x130] sm:$0xff]   ;;  %v2223_v63 = vld [vmem:[%s2981_s1 + $0x138] sm:$0xff]   ;;  %v2239_v11 = vld [vmem:[%s2982_s0 + $0x60] ss:$40 sps:$4 sm:$0xff]  }
  0x19   :  { %v2224_v1 = vld [vmem:[%s2982_s0 + $0x8] ss:$40 sps:$4 sm:$0xff]   ;;  %v2234_v8 = vld [vmem:[%s2982_s0 + $0x5c] ss:$40 sps:$4 sm:$0xff]   ;;  %v2238_v10 = vld [vmem:[%s2982_s0 + $0x58] ss:$40 sps:$4 sm:$0xff]  }
  0x1a   :  { %v2227_v2 = vld [vmem:[%s2982_s0 + $0x10] ss:$40 sps:$4 sm:$0xff]   ;;  %v2240_v12 = vld [vmem:[%s2981_s1 + $0x1c8] sm:$0xff]  }
  0x1b   :  { %1829 = vmatpush3.bf16.msra.mxu0 %v2165_v15  ;;  %2150 = vmatpush3.bf16.msra.mxu1 %v2165_v15  ;;  %v2241_v13 = vld [vmem:[%s2981_s1 + $0x188] sm:$0xff]  }
  0x1c   :  { %1830 = vmatprep.subr.bf16.mxu0 %v2166_v16  ;;  %2143 = vmatprep.subr.bf16.mxu1 %v2166_v16  ;;  %v2242_v14 = vld [vmem:[%s2981_s1 + $0x248] sm:$0xff]  }
  0x1d   :  { %v2243_v15 = vld [vmem:[%s2981_s1 + $0x208] sm:$0xff]  }
  0x1e   :  { %v2244_v16 = vld [vmem:[%s2982_s0 + $0xac] ss:$40 sps:$4 sm:$0xff]  }
  0x1f   :  { %1831 = vmatpush3.bf16.msra.mxu0 %v2167_v17  ;;  %2151 = vmatpush3.bf16.msra.mxu1 %v2167_v17  ;;  %v2246_v17 = vld [vmem:[%s2982_s0 + $0xb4] ss:$40 sps:$4 sm:$0xff]  }
  0x20   :  { %1880 = vmatprep.subr.bf16.mxu1 %v2174_v20  ;;  %1944 = vmatprep.subr.bf16.mxu0 %v2175_v21  ;;  %v2249_v20 = vld [vmem:[%s2982_s0 + $0xb0] ss:$40 sps:$4 sm:$0xff]  }
  0x21   :  { %v2251_v21 = vld [vmem:[%s2981_s1 + $0x190] sm:$0xff]  }
  0x22   :  { %1168 = vmatmul.mubr.bf16.vlgmr.msra.gmra.mrb[0].mxu0 %v2168_v18  ;;  %1200 = vmatmul.mubr.bf16.vlgmr.msra.gmra.mrb[0].mxu1 %v2171_v19  ;;  %v2250_v18 = vld [vmem:[%s2981_s1 + $0x1d0] sm:$0xff]  }
  0x23   :  { %1881 = vmatpush3.bf16.msra.mxu1 %v2176_v22  ;;  %1945 = vmatpush3.bf16.msra.mxu0 %v2177_v23  ;;  %v2248_v19 = vld [vmem:[%s2982_s0 + $0xa8] ss:$40 sps:$4 sm:$0xff]  }
  0x24   :  { %1882 = vmatprep.subr.bf16.mxu1 %v2178_v24  ;;  %1946 = vmatprep.subr.bf16.mxu0 %v2179_v25  ;;  %v2252_v22 = vld [vmem:[%s2981_s1 + $0x250] sm:$0xff]   ;;  %v2254_v24 = vld [vmem:[%s2982_s0 + $0xfc] ss:$40 sps:$4 sm:$0xff]  }
  0x25   :  { %1175 = vmatprep.mubr.bf16.mxu0 %v2182_v26  ;;  %1207 = vmatprep.mubr.bf16.mxu1 %v2184_v28  ;;  %v2253_v23 = vld [vmem:[%s2981_s1 + $0x210] sm:$0xff]   ;;  %v2256_v25 = vld [vmem:[%s2982_s0 + $0x104] ss:$40 sps:$4 sm:$0xff]   ;;  %v2260_v26 = vld [vmem:[%s2981_s1 + $0x1d8] sm:$0xff]  }
  0x26   :  { %v2258_v28 = vld [vmem:[%s2982_s0 + $0xf8] ss:$40 sps:$4 sm:$0xff]  }
  0x27   :  { %1883 = vmatpush3.bf16.msra.mxu1 %v2180_v27  ;;  %1947 = vmatpush3.bf16.msra.mxu0 %v2181_v29  ;;  %v2261_v27 = vld [vmem:[%s2981_s1 + $0x198] sm:$0xff]  }
  0x28   :  { %1884 = vmatprep.subr.bf16.mxu1 %v2188_v30  ;;  %1948 = vmatprep.subr.bf16.mxu0 %v2189_v32  ;;  %v2262_v29 = vld [vmem:[%s2981_s1 + $0x258] sm:$0xff]   ;;  %v2264_v32 = vld [vmem:[%s2982_s0 + $0x14c] ss:$40 sps:$4 sm:$0xff]  }
  0x29   :  { %v2263_v30 = vld [vmem:[%s2981_s1 + $0x218] sm:$0xff]  }
  0x2a   :  { %1176 = vmatmul.mubr.bf16.gmra.mrb[4].mxu0 %v2186_v31  ;;  %1208 = vmatmul.mubr.bf16.gmra.mrb[4].mxu1 %v2187_v33  ;;  %v2259_v31 = vld [vmem:[%s2982_s0 + $0x100] ss:$40 sps:$4 sm:$0xff]   ;;  %v2266_v33 = vld [vmem:[%s2982_s0 + $0x154] ss:$40 sps:$4 sm:$0xff]  }
  0x2b   :  { %1885 = vmatpush3.bf16.msra.mxu1 %v2190_v34  ;;  %1949 = vmatpush3.bf16.msra.mxu0 %v2191_v35  ;;  %v2270_v34 = vld [vmem:[%s2981_s1 + $0x1e0] sm:$0xff]  }
  0x2c   :  { %1886 = vmatprep.subr.bf16.mxu1 %v2192_v36  ;;  %1950 = vmatprep.subr.bf16.mxu0 %v2193_v37  ;;  %v2271_v35 = vld [vmem:[%s2981_s1 + $0x1a0] sm:$0xff]  }
  0x2d   :  { %1183 = vmatprep.mubr.bf16.mxu0 %v2196_v38  ;;  %1215 = vmatprep.mubr.bf16.mxu1 %v2198_v40  ;;  %v2272_v36 = vld [vmem:[%s2981_s1 + $0x260] sm:$0xff]   ;;  %v2268_v38 = vld [vmem:[%s2982_s0 + $0x148] ss:$40 sps:$4 sm:$0xff]  }
  0x2e   :  { %v2273_v37 = vld [vmem:[%s2981_s1 + $0x220] sm:$0xff]  }
  0x2f   :  { %1887 = vmatpush3.bf16.msra.mxu1 %v2194_v39  ;;  %1951 = vmatpush3.bf16.msra.mxu0 %v2195_v41  ;;  %v2269_v39 = vld [vmem:[%s2982_s0 + $0x150] ss:$40 sps:$4 sm:$0xff]   ;;  %v2274_v40 = vld [vmem:[%s2982_s0 + $0x19c] ss:$40 sps:$4 sm:$0xff]  }
  0x30   :  { %1888 = vmatprep.subr.bf16.mxu1 %v2202_v42  ;;  %1952 = vmatprep.subr.bf16.mxu0 %v2203_v45  ;;  %v2276_v41 = vld [vmem:[%s2982_s0 + $0x1a4] ss:$40 sps:$4 sm:$0xff]  }
  0x31   :  { %v2280_v42 = vld [vmem:[%s2981_s1 + $0x1e8] sm:$0xff]  }
  0x32   :  { %1184 = vmatmul.mubr.bf16.gmra.mrb[8].mxu0 %v2200_v43  ;;  %1216 = vmatmul.mubr.bf16.gmra.mrb[8].mxu1 %v2201_v44  ;;  %v2281_v43 = vld [vmem:[%s2981_s1 + $0x1a8] sm:$0xff]  }
  0x33   :  { %1889 = vmatpush3.bf16.msra.mxu1 %v2204_v46  ;;  %1953 = vmatpush3.bf16.msra.mxu0 %v2205_v47  ;;  %v2282_v44 = vld [vmem:[%s2981_s1 + $0x268] sm:$0xff]   ;;  %v2278_v46 = vld [vmem:[%s2982_s0 + $0x198] ss:$40 sps:$4 sm:$0xff]  }
  0x34   :  { %1890 = vmatprep.subr.bf16.mxu1 %v2206_v48  ;;  %1954 = vmatprep.subr.bf16.mxu0 %v2207_v49  ;;  %v2283_v45 = vld [vmem:[%s2981_s1 + $0x228] sm:$0xff]   ;;  %v2286_v49 = vld [vmem:[%s2982_s0 + $0x1f4] ss:$40 sps:$4 sm:$0xff]  }
  0x35   :  { %1191 = vmatprep.mubr.bf16.mxu0 %v2210_v50  ;;  %1223 = vmatprep.mubr.bf16.mxu1 %v2212_v51  ;;  %v2279_v47 = vld [vmem:[%s2982_s0 + $0x1a0] ss:$40 sps:$4 sm:$0xff]   ;;  %v2284_v48 = vld [vmem:[%s2982_s0 + $0x1ec] ss:$40 sps:$4 sm:$0xff]  }
  0x36   :  { %v2290_v50 = vld [vmem:[%s2981_s1 + $0x1f0] sm:$0xff]  }
  0x37   :  { %1891 = vmatpush3.bf16.msra.mxu1 %v2208_v52  ;;  %1955 = vmatpush3.bf16.msra.mxu0 %v2209_v53  ;;  %v2291_v51 = vld [vmem:[%s2981_s1 + $0x1b0] sm:$0xff]  }
  0x38   :  { %1892 = vmatprep.subr.bf16.mxu1 %v2216_v54  ;;  %1956 = vmatprep.subr.bf16.mxu0 %v2217_v57  ;;  %v2292_v52 = vld [vmem:[%s2981_s1 + $0x270] sm:$0xff]   ;;  %v2294_v57 = vld [vmem:[%s2982_s0 + $0x23c] ss:$40 sps:$4 sm:$0xff]  }
  0x39   :  { %v2293_v53 = vld [vmem:[%s2981_s1 + $0x230] sm:$0xff]  }
  0x3a   :  { %1192 = vmatmul.mubr.bf16.gmra.mrb[12].mxu0 %v2214_v55  ;;  %1224 = vmatmul.mubr.bf16.gmra.mrb[12].mxu1 %v2215_v56  ;;  %v2288_v54 = vld [vmem:[%s2982_s0 + $0x1e8] ss:$40 sps:$4 sm:$0xff]   ;;  %v2300_v56 = vld [vmem:[%s2981_s1 + $0x1f8] sm:$0xff]  }
  0x3b   :  { %1893 = vmatpush3.bf16.msra.mxu1 %v2218_v58  ;;  %1957 = vmatpush3.bf16.msra.mxu0 %v2219_v59  ;;  %v2289_v55 = vld [vmem:[%s2982_s0 + $0x1f0] ss:$40 sps:$4 sm:$0xff]   ;;  %v2296_v58 = vld [vmem:[%s2982_s0 + $0x244] ss:$40 sps:$4 sm:$0xff]  }
  0x3c   :  { %1894 = vmatprep.subr.bf16.mxu1 %v2220_v60  ;;  %1958 = vmatprep.subr.bf16.mxu0 %v2221_v61  ;;  %v2301_v59 = vld [vmem:[%s2981_s1 + $0x1b8] sm:$0xff]  }
  0x3d   :  { %1264 = vmatprep.mubr.bf16.mxu1 %v2226_v0  ;;  %1361 = vmatprep.mubr.bf16.mxu0 %v2229_v3  ;;  %v2302_v60 = vld [vmem:[%s2981_s1 + $0x278] sm:$0xff]   ;;  %v2307_v3 = vld [vmem:[%s2982_s0 + $0x20] ss:$40 sps:$4 sm:$0xff]  }
  0x3e   :  { %v2303_v61 = vld [vmem:[%s2981_s1 + $0x238] sm:$0xff]  }
  0x3f   :  { %1895 = vmatpush3.bf16.msra.mxu1 %v2222_v62  ;;  %1959 = vmatpush3.bf16.msra.mxu0 %v2223_v63  ;;  %v2298_v62 = vld [vmem:[%s2982_s0 + $0x238] ss:$40 sps:$4 sm:$0xff]   ;;  %v2306_v0 = vld [vmem:[%s2982_s0 + $0x1c] ss:$40 sps:$4 sm:$0xff]  }
  0x40   :  { %2008 = vmatprep.subr.bf16.mxu1 %v2230_v4  ;;  %2072 = vmatprep.subr.bf16.mxu0 %v2232_v6  ;;  %v2299_v63 = vld [vmem:[%s2982_s0 + $0x240] ss:$40 sps:$4 sm:$0xff]   ;;  %v2310_v4 = vld [vmem:[%s2982_s0 + $0x6c] ss:$40 sps:$4 sm:$0xff]  }
  0x41   :  { %v2314_v6 = vld [vmem:[%s2982_s0 + $0x68] ss:$40 sps:$4 sm:$0xff]  }
  0x42   :  { %1265 = vmatmul.mubr.bf16.vlgmr.msra.gmra.mrb[16].mxu1 %v2224_v1  ;;  %1362 = vmatmul.mubr.bf16.vlgmr.msra.gmra.mrb[16].mxu0 %v2227_v2  ;;  %v2309_v1 = vld [vmem:[%s2982_s0 + $0x24] ss:$40 sps:$4 sm:$0xff]   ;;  %v2304_v2 = vld [vmem:[%s2982_s0 + $0x18] ss:$40 sps:$4 sm:$0xff]  }
  0x43   :  { %2009 = vmatpush3.bf16.msra.mxu1 %v2231_v5  ;;  %2073 = vmatpush3.bf16.msra.mxu0 %v2233_v7  ;;  %v2312_v5 = vld [vmem:[%s2982_s0 + $0x74] ss:$40 sps:$4 sm:$0xff]   ;;  %v2315_v7 = vld [vmem:[%s2982_s0 + $0x70] ss:$40 sps:$4 sm:$0xff]  }
  0x44   :  { %1272 = vmatprep.mubr.bf16.mxu1 %v2234_v8  ;;  %1369 = vmatprep.mubr.bf16.mxu0 %v2236_v9  ;;  %v2316_v8 = vld [vmem:[%s2982_s0 + $0xbc] ss:$40 sps:$4 sm:$0xff]  }
  0x45   :  { %2010 = vmatprep.subr.bf16.mxu1 %v2240_v12  ;;  %2074 = vmatprep.subr.bf16.mxu0 %v2242_v14  ;;  %v2318_v9 = vld [vmem:[%s2982_s0 + $0xc4] ss:$40 sps:$4 sm:$0xff]   ;;  %v2326_v14 = vld [vmem:[%s2982_s0 + $0x108] ss:$40 sps:$4 sm:$0xff]  }
  0x46   :  { %v2322_v12 = vld [vmem:[%s2982_s0 + $0x10c] ss:$40 sps:$4 sm:$0xff]  }
  0x47   :  { %2011 = vmatpush3.bf16.msra.mxu1 %v2241_v13  ;;  %2075 = vmatpush3.bf16.msra.mxu0 %v2243_v15  ;;  %v2324_v13 = vld [vmem:[%s2982_s0 + $0x114] ss:$40 sps:$4 sm:$0xff]   ;;  %v2327_v15 = vld [vmem:[%s2982_s0 + $0x110] ss:$40 sps:$4 sm:$0xff]  }
  0x48   :  { %2012 = vmatprep.subr.bf16.mxu1 %v2250_v18  ;;  %2076 = vmatprep.subr.bf16.mxu0 %v2252_v22  ;;  %v2332_v18 = vld [vmem:[%s2982_s0 + $0x158] ss:$40 sps:$4 sm:$0xff]   ;;  %v2338_v22 = vld [vmem:[%s2982_s0 + $0x1a8] ss:$40 sps:$4 sm:$0xff]  }
  0x4a   :  { %1273 = vmatmul.mubr.bf16.gmra.mrb[20].mxu1 %v2238_v10  ;;  %1370 = vmatmul.mubr.bf16.gmra.mrb[20].mxu0 %v2239_v11  ;;  %v2320_v10 = vld [vmem:[%s2982_s0 + $0xb8] ss:$40 sps:$4 sm:$0xff]  }
  0x4b   :  { %1280 = vmatprep.mubr.bf16.mxu1 %v2244_v16  ;;  %1377 = vmatprep.mubr.bf16.mxu0 %v2246_v17  ;;  %v2321_v11 = vld [vmem:[%s2982_s0 + $0xc0] ss:$40 sps:$4 sm:$0xff]   ;;  %v2328_v16 = vld [vmem:[%s2982_s0 + $0x15c] ss:$40 sps:$4 sm:$0xff]  }
  0x4c   :  { %2013 = vmatpush3.bf16.msra.mxu1 %v2251_v21  ;;  %2077 = vmatpush3.bf16.msra.mxu0 %v2253_v23  ;;  %v2330_v17 = vld [vmem:[%s2982_s0 + $0x164] ss:$40 sps:$4 sm:$0xff]   ;;  %v2336_v21 = vld [vmem:[%s2982_s0 + $0x1b4] ss:$40 sps:$4 sm:$0xff]   ;;  %v2339_v23 = vld [vmem:[%s2982_s0 + $0x1b0] ss:$40 sps:$4 sm:$0xff]  }
  0x4d   :  { %2014 = vmatprep.subr.bf16.mxu1 %v2260_v26  ;;  %2078 = vmatprep.subr.bf16.mxu0 %v2262_v29  ;;  %v2344_v26 = vld [vmem:[%s2982_s0 + $0x1f8] ss:$40 sps:$4 sm:$0xff]   ;;  %v2348_v29 = vld [vmem:[%s2982_s0 + $0x254] ss:$40 sps:$4 sm:$0xff]  }
  0x50   :  { %2015 = vmatpush3.bf16.msra.mxu1 %v2261_v27  ;;  %2079 = vmatpush3.bf16.msra.mxu0 %v2263_v30  ;;  %v2345_v27 = vld [vmem:[%s2982_s0 + $0x200] ss:$40 sps:$4 sm:$0xff]  }
  0x51   :  { %2016 = vmatprep.subr.bf16.mxu1 %v2270_v34  ;;  %2080 = vmatprep.subr.bf16.mxu0 %v2272_v36  ;;  %v2350_v30 = vld [vmem:[%s2982_s0 + $0x248] ss:$40 sps:$4 sm:$0xff]  }
  0x52   :  { %1281 = vmatmul.mubr.bf16.gmra.mrb[24].mxu1 %v2248_v19  ;;  %1378 = vmatmul.mubr.bf16.gmra.mrb[24].mxu0 %v2249_v20  ;;  %v2333_v19 = vld [vmem:[%s2982_s0 + $0x160] ss:$40 sps:$4 sm:$0xff]   ;;  %v2334_v20 = vld [vmem:[%s2982_s0 + $0x1ac] ss:$40 sps:$4 sm:$0xff]  }
  0x53   :  { %1288 = vmatprep.mubr.bf16.mxu1 %v2254_v24  ;;  %1385 = vmatprep.mubr.bf16.mxu0 %v2256_v25  ;;  %v2340_v24 = vld [vmem:[%s2982_s0 + $0x1fc] ss:$40 sps:$4 sm:$0xff]  }
  0x54   :  { %2017 = vmatpush3.bf16.msra.mxu1 %v2271_v35  ;;  %2081 = vmatpush3.bf16.msra.mxu0 %v2273_v37  ;;  %v2342_v25 = vld [vmem:[%s2982_s0 + $0x204] ss:$40 sps:$4 sm:$0xff]  }
  0x55   :  { %2018 = vmatprep.subr.bf16.mxu1 %v2280_v42  ;;  %2082 = vmatprep.subr.bf16.mxu0 %v2282_v44 }
  0x58   :  { %2019 = vmatpush3.bf16.msra.mxu1 %v2281_v43  ;;  %2083 = vmatpush3.bf16.msra.mxu0 %v2283_v45 }
  0x59   :  { %2020 = vmatprep.subr.bf16.mxu1 %v2290_v50  ;;  %2084 = vmatprep.subr.bf16.mxu0 %v2292_v52 }
  0x5a   :  { %1289 = vmatmul.mubr.bf16.gmra.mrb[28].mxu1 %v2258_v28  ;;  %1386 = vmatmul.mubr.bf16.gmra.mrb[28].mxu0 %v2259_v31  ;;  %v2346_v28 = vld [vmem:[%s2982_s0 + $0x24c] ss:$40 sps:$4 sm:$0xff]   ;;  %v2351_v31 = vld [vmem:[%s2982_s0 + $0x250] ss:$40 sps:$4 sm:$0xff]  }
  0x5b   :  { %1296 = vmatprep.mubr.bf16.mxu1 %v2264_v32  ;;  %1393 = vmatprep.mubr.bf16.mxu0 %v2266_v33 }
  0x5c   :  { %2021 = vmatpush3.bf16.msra.mxu1 %v2291_v51  ;;  %2085 = vmatpush3.bf16.msra.mxu0 %v2293_v53 }
  0x5d   :  { %2022 = vmatprep.subr.bf16.mxu1 %v2300_v56  ;;  %2086 = vmatprep.subr.bf16.mxu0 %v2302_v60 }
  0x60   :  { %2023 = vmatpush3.bf16.msra.mxu1 %v2301_v59  ;;  %2087 = vmatpush3.bf16.msra.mxu0 %v2303_v61 }
  0x62   :  { %1297 = vmatmul.mubr.bf16.gmra.mrb[32].mxu1 %v2268_v38  ;;  %1394 = vmatmul.mubr.bf16.gmra.mrb[32].mxu0 %v2269_v39 }
  0x63   :  { %1304 = vmatprep.mubr.bf16.mxu1 %v2274_v40  ;;  %1401 = vmatprep.mubr.bf16.mxu0 %v2276_v41 }
  0x6a   :  { %1305 = vmatmul.mubr.bf16.gmra.mrb[36].mxu1 %v2278_v46  ;;  %1402 = vmatmul.mubr.bf16.gmra.mrb[36].mxu0 %v2279_v47 }
  0x6b   :  { %1312 = vmatprep.mubr.bf16.mxu1 %v2284_v48  ;;  %1409 = vmatprep.mubr.bf16.mxu0 %v2286_v49 }
  0x72   :  { %1313 = vmatmul.mubr.bf16.gmra.mrb[40].mxu1 %v2288_v54  ;;  %1410 = vmatmul.mubr.bf16.gmra.mrb[40].mxu0 %v2289_v55 }
  0x73   :  { %1320 = vmatprep.mubr.bf16.mxu1 %v2294_v57  ;;  %1417 = vmatprep.mubr.bf16.mxu0 %v2296_v58 }
  0x7a   :  { %1321 = vmatmul.mubr.bf16.gmra.mrb[44].mxu1 %v2298_v62  ;;  %1418 = vmatmul.mubr.bf16.gmra.mrb[44].mxu0 %v2299_v63 }
  0x7b   :  { %1458 = vmatprep.mubr.bf16.mxu1 %v2306_v0  ;;  %1555 = vmatprep.mubr.bf16.mxu0 %v2309_v1 }
  0x82   :  { %1459 = vmatmul.mubr.bf16.vlgmr.msra.gmra.mrb[48].mxu1 %v2304_v2  ;;  %1556 = vmatmul.mubr.bf16.vlgmr.msra.gmra.mrb[48].mxu0 %v2307_v3 }
  0x83   :  { %1466 = vmatprep.mubr.bf16.mxu1 %v2310_v4  ;;  %1563 = vmatprep.mubr.bf16.mxu0 %v2312_v5 }
  0x8a   :  { %1467 = vmatmul.mubr.bf16.gmra.mrb[52].mxu1 %v2314_v6  ;;  %1564 = vmatmul.mubr.bf16.gmra.mrb[52].mxu0 %v2315_v7 }
  0x8b   :  { %1474 = vmatprep.mubr.bf16.mxu1 %v2316_v8  ;;  %1571 = vmatprep.mubr.bf16.mxu0 %v2318_v9 }
  0x92   :  { %1475 = vmatmul.mubr.bf16.gmra.mrb[56].mxu1 %v2320_v10  ;;  %1572 = vmatmul.mubr.bf16.gmra.mrb[56].mxu0 %v2321_v11 }
  0x93   :  { %1482 = vmatprep.mubr.bf16.mxu1 %v2322_v12  ;;  %1579 = vmatprep.mubr.bf16.mxu0 %v2324_v13 }
  0x9a   :  { %1483 = vmatmul.mubr.bf16.gmra.mrb[60].mxu1 %v2326_v14  ;;  %1580 = vmatmul.mubr.bf16.gmra.mrb[60].mxu0 %v2327_v15 }
  0x9b   :  { %1490 = vmatprep.mubr.bf16.mxu1 %v2328_v16  ;;  %1587 = vmatprep.mubr.bf16.mxu0 %v2330_v17 }
  0xa2   :  { %1491 = vmatmul.mubr.bf16.gmra.mrb[64].mxu1 %v2332_v18  ;;  %1588 = vmatmul.mubr.bf16.gmra.mrb[64].mxu0 %v2333_v19 }
  0xa3   :  { %1498 = vmatprep.mubr.bf16.mxu1 %v2334_v20  ;;  %1595 = vmatprep.mubr.bf16.mxu0 %v2336_v21 }
  0xaa   :  { %1499 = vmatmul.mubr.bf16.gmra.mrb[68].mxu1 %v2338_v22  ;;  %1596 = vmatmul.mubr.bf16.gmra.mrb[68].mxu0 %v2339_v23 }
  0xab   :  { %1506 = vmatprep.mubr.bf16.mxu1 %v2340_v24  ;;  %1603 = vmatprep.mubr.bf16.mxu0 %v2342_v25 }
  0xb2   :  { %1507 = vmatmul.mubr.bf16.gmra.mrb[72].mxu1 %v2344_v26  ;;  %1604 = vmatmul.mubr.bf16.gmra.mrb[72].mxu0 %v2345_v27 }
  0xb3   :  { %1514 = vmatprep.mubr.bf16.mxu1 %v2346_v28  ;;  %1611 = vmatprep.mubr.bf16.mxu0 %v2348_v29 }
  0xba   :  { %1515 = vmatmul.mubr.bf16.gmra.mrb[76].mxu1 %v2350_v30  ;;  %1612 = vmatmul.mubr.bf16.gmra.mrb[76].mxu0 %v2351_v31 }
  0xf5   :  { %v1832_v32 = vpop.f32.mrb[0].mxu0  ;;  %v1856_v33 = vpop.f32.mrb[0].mxu1 }
  0xf6   :  { %v1833_v34 = vpop.f32.mrb[1].mxu0  ;;  %v1857_v35 = vpop.f32.mrb[1].mxu1 }
  0xf7   :  { %v1834_v36 = vadd.f32 %v1833_v34, %v1832_v32  ;;  %v2852_v37 = vadd.f32 %v1857_v35, %v1856_v33  ;;  %v1835_v38 = vpop.f32.mrb[2].mxu0  ;;  %v1859_v39 = vpop.f32.mrb[2].mxu1 }
  0xf8   :  { %v1836_v40 = vpop.f32.mrb[3].mxu0  ;;  %v1860_v41 = vpop.f32.mrb[3].mxu1 }
  0xf9   :  { %v1837_v42 = vadd.f32 %v1836_v40, %v1835_v38  ;;  %v2854_v43 = vadd.f32 %v1860_v41, %v1859_v39 }
  0xfd   :  { %v1838_v44 = vpop.f32.mrb[4].mxu0  ;;  %v1862_v45 = vpop.f32.mrb[4].mxu1 }
  0xfe   :  { %v1839_v46 = vpop.f32.mrb[5].mxu0  ;;  %v1863_v47 = vpop.f32.mrb[5].mxu1 }
  0xff   :  { %v1840_v48 = vadd.f32 %v1839_v46, %v1838_v44  ;;  %v2856_v49 = vadd.f32 %v1863_v47, %v1862_v45  ;;  %v1841_v50 = vpop.f32.mrb[6].mxu0  ;;  %v1865_v51 = vpop.f32.mrb[6].mxu1 }
 0x100   :  { %v1842_v52 = vpop.f32.mrb[7].mxu0  ;;  %v1866_v53 = vpop.f32.mrb[7].mxu1 }
 0x101   :  { %v1843_v54 = vadd.f32 %v1842_v52, %v1841_v50  ;;  %v2858_v55 = vadd.f32 %v1866_v53, %v1865_v51 }
 0x105   :  { %v1844_v56 = vpop.f32.mrb[8].mxu0  ;;  %v1868_v57 = vpop.f32.mrb[8].mxu1 }
 0x106   :  { %v1845_v58 = vpop.f32.mrb[9].mxu0  ;;  %v1869_v59 = vpop.f32.mrb[9].mxu1 }
 0x107   :  { %v1846_v60 = vadd.f32 %v1845_v58, %v1844_v56  ;;  %v2860_v61 = vadd.f32 %v1869_v59, %v1868_v57  ;;  %v1847_v62 = vpop.f32.mrb[10].mxu0  ;;  %v1871_v63 = vpop.f32.mrb[10].mxu1 }
 0x108   :  { %v1848_v0 = vpop.f32.mrb[11].mxu0  ;;  %v1872_v1 = vpop.f32.mrb[11].mxu1 }
 0x109   :  { %v1849_v2 = vadd.f32 %v1848_v0, %v1847_v62  ;;  %v2862_v3 = vadd.f32 %v1872_v1, %v1871_v63 }
 0x10d   :  { %v1850_v4 = vpop.f32.mrb[12].mxu0  ;;  %v1874_v5 = vpop.f32.mrb[12].mxu1 }
 0x10e   :  { %v1851_v6 = vpop.f32.mrb[13].mxu0  ;;  %v1875_v7 = vpop.f32.mrb[13].mxu1 }
 0x10f   :  { %v2864_v8 = vadd.f32 %v1851_v6, %v1850_v4  ;;  %v2866_v9 = vadd.f32 %v1875_v7, %v1874_v5  ;;  %v1853_v10 = vpop.f32.mrb[14].mxu0  ;;  %v1877_v11 = vpop.f32.mrb[14].mxu1 }
 0x110   :  { %v1854_v12 = vpop.f32.mrb[15].mxu0  ;;  %v1878_v13 = vpop.f32.mrb[15].mxu1 }
 0x111   :  { %v2868_v14 = vadd.f32 %v1854_v12, %v1853_v10  ;;  %v2870_v15 = vadd.f32 %v1878_v13, %v1877_v11 }
 0x115   :  { %v1896_v16 = vpop.f32.mrb[16].mxu1  ;;  %v1960_v17 = vpop.f32.mrb[16].mxu0 }
 0x116   :  { %v1897_v18 = vpop.f32.mrb[17].mxu1  ;;  %v1961_v19 = vpop.f32.mrb[17].mxu0 }
 0x117   :  { %v1898_v20 = vadd.f32 %v1897_v18, %v1896_v16  ;;  %v1962_v21 = vadd.f32 %v1961_v19, %v1960_v17  ;;  %v1899_v22 = vpop.f32.mrb[18].mxu1  ;;  %v1963_v23 = vpop.f32.mrb[18].mxu0 }
 0x118   :  { %v1900_v24 = vpop.f32.mrb[19].mxu1  ;;  %v1964_v25 = vpop.f32.mrb[19].mxu0 }
 0x119   :  { %v1267_v26 = vadd.f32 %v1898_v20, %v1834_v36  ;;  %v1901_v27 = vadd.f32 %v1900_v24, %v1899_v22  ;;  %v1965_v28 = vadd.f32 %v1964_v25, %v1963_v23 }
 0x11b   :  { %v2872_v29 = vadd.f32 %v1962_v21, %v1267_v26  ;;  %v1270_v30 = vadd.f32 %v1901_v27, %v1837_v42 }
 0x11d   :  { %v2874_v31 = vadd.f32 %v1965_v28, %v1270_v30  ;;  %v1902_v32 = vpop.f32.mrb[20].mxu1  ;;  %v1966_v33 = vpop.f32.mrb[20].mxu0 }
 0x11e   :  { %v1903_v34 = vpop.f32.mrb[21].mxu1  ;;  %v1967_v35 = vpop.f32.mrb[21].mxu0 }
 0x11f   :  { %v1904_v38 = vadd.f32 %v1903_v34, %v1902_v32  ;;  %v1968_v39 = vadd.f32 %v1967_v35, %v1966_v33  ;;  %v1905_v40 = vpop.f32.mrb[22].mxu1  ;;  %v1969_v41 = vpop.f32.mrb[22].mxu0 }
 0x120   :  { %v1906_v44 = vpop.f32.mrb[23].mxu1  ;;  %v1970_v45 = vpop.f32.mrb[23].mxu0 }
 0x121   :  { %v1275_v46 = vadd.f32 %v1904_v38, %v1840_v48  ;;  %v1907_v47 = vadd.f32 %v1906_v44, %v1905_v40  ;;  %v1971_v36 = vadd.f32 %v1970_v45, %v1969_v41 }
 0x123   :  { %v2876_v50 = vadd.f32 %v1968_v39, %v1275_v46  ;;  %v1278_v51 = vadd.f32 %v1907_v47, %v1843_v54 }
 0x125   :  { %v2878_v52 = vadd.f32 %v1971_v36, %v1278_v51  ;;  %v1908_v42 = vpop.f32.mrb[24].mxu1  ;;  %v1972_v53 = vpop.f32.mrb[24].mxu0 }
 0x126   :  { %v1909_v56 = vpop.f32.mrb[25].mxu1  ;;  %v1973_v57 = vpop.f32.mrb[25].mxu0 }
 0x127   :  { %v1910_v58 = vadd.f32 %v1909_v56, %v1908_v42  ;;  %v1974_v59 = vadd.f32 %v1973_v57, %v1972_v53  ;;  %v1911_v62 = vpop.f32.mrb[26].mxu1  ;;  %v1975_v63 = vpop.f32.mrb[26].mxu0 }
 0x128   :  { %v1912_v0 = vpop.f32.mrb[27].mxu1  ;;  %v1976_v1 = vpop.f32.mrb[27].mxu0 }
 0x129   :  { %v1283_v4 = vadd.f32 %v1910_v58, %v1846_v60  ;;  %v1913_v5 = vadd.f32 %v1912_v0, %v1911_v62  ;;  %v1977_v48 = vadd.f32 %v1976_v1, %v1975_v63 }
 0x12b   :  { %v2880_v6 = vadd.f32 %v1974_v59, %v1283_v4  ;;  %v1286_v7 = vadd.f32 %v1913_v5, %v1849_v2 }
 0x12d   :  { %v2882_v10 = vadd.f32 %v1977_v48, %v1286_v7  ;;  %v1914_v54 = vpop.f32.mrb[28].mxu1  ;;  %v1978_v11 = vpop.f32.mrb[28].mxu0 }
 0x12e   :  { %v1915_v12 = vpop.f32.mrb[29].mxu1  ;;  %v1979_v13 = vpop.f32.mrb[29].mxu0 }
 0x12f   :  { %v1916_v16 = vadd.f32 %v1915_v12, %v1914_v54  ;;  %v1980_v17 = vadd.f32 %v1979_v13, %v1978_v11  ;;  %v1917_v18 = vpop.f32.mrb[30].mxu1  ;;  %v1981_v19 = vpop.f32.mrb[30].mxu0 }
 0x130   :  { %v1918_v20 = vpop.f32.mrb[31].mxu1  ;;  %v1982_v21 = vpop.f32.mrb[31].mxu0 }
 0x131   :  { %v1291_v22 = vadd.f32 %v1916_v16, %v2864_v8  ;;  %v1919_v60 = vadd.f32 %v1918_v20, %v1917_v18  ;;  %v1983_v23 = vadd.f32 %v1982_v21, %v1981_v19 }
 0x133   :  { %v2885_v24 = vadd.f32 %v1980_v17, %v1291_v22  ;;  %v1294_v2 = vadd.f32 %v1919_v60, %v2868_v14 }
 0x135   :  { %v2888_v25 = vadd.f32 %v1983_v23, %v1294_v2  ;;  %v1920_v26 = vpop.f32.mrb[32].mxu1  ;;  %v1984_v27 = vpop.f32.mrb[32].mxu0 }
 0x136   :  { %v1921_v28 = vpop.f32.mrb[33].mxu1  ;;  %v1985_v30 = vpop.f32.mrb[33].mxu0 }
 0x137   :  { %v1922_v32 = vadd.f32 %v1921_v28, %v1920_v26  ;;  %v1986_v33 = vadd.f32 %v1985_v30, %v1984_v27  ;;  %v1923_v34 = vpop.f32.mrb[34].mxu1  ;;  %v1987_v35 = vpop.f32.mrb[34].mxu0 }
 0x138   :  { %v1924_v38 = vpop.f32.mrb[35].mxu1  ;;  %v1988_v39 = vpop.f32.mrb[35].mxu0 }
 0x139   :  { %v1299_v8 = vadd.f32 %v1922_v32, %v2852_v37  ;;  %v1925_v40 = vadd.f32 %v1924_v38, %v1923_v34  ;;  %v1989_v41 = vadd.f32 %v1988_v39, %v1987_v35 }
 0x13b   :  { %v2891_v44 = vadd.f32 %v1986_v33, %v1299_v8  ;;  %v1302_v14 = vadd.f32 %v1925_v40, %v2854_v43 }
 0x13d   :  { %v2894_v45 = vadd.f32 %v1989_v41, %v1302_v14  ;;  %v1926_v46 = vpop.f32.mrb[36].mxu1  ;;  %v1990_v47 = vpop.f32.mrb[36].mxu0 }
 0x13e   :  { %v1927_v36 = vpop.f32.mrb[37].mxu1  ;;  %v1991_v51 = vpop.f32.mrb[37].mxu0 }
 0x13f   :  { %v1928_v42 = vadd.f32 %v1927_v36, %v1926_v46  ;;  %v1992_v53 = vadd.f32 %v1991_v51, %v1990_v47  ;;  %v1929_v56 = vpop.f32.mrb[38].mxu1  ;;  %v1993_v57 = vpop.f32.mrb[38].mxu0 }
 0x140   :  { %v1930_v58 = vpop.f32.mrb[39].mxu1  ;;  %v1994_v59 = vpop.f32.mrb[39].mxu0 }
 0x141   :  { %v1307_v37 = vadd.f32 %v1928_v42, %v2856_v49  ;;  %v1931_v62 = vadd.f32 %v1930_v58, %v1929_v56  ;;  %v1995_v63 = vadd.f32 %v1994_v59, %v1993_v57 }
 0x143   :  { %v2897_v0 = vadd.f32 %v1992_v53, %v1307_v37  ;;  %v1310_v43 = vadd.f32 %v1931_v62, %v2858_v55 }
 0x145   :  { %v2900_v1 = vadd.f32 %v1995_v63, %v1310_v43  ;;  %v1932_v4 = vpop.f32.mrb[40].mxu1  ;;  %v1996_v5 = vpop.f32.mrb[40].mxu0 }
 0x146   :  { %v1933_v48 = vpop.f32.mrb[41].mxu1  ;;  %v1997_v7 = vpop.f32.mrb[41].mxu0 }
 0x147   :  { %v1934_v54 = vadd.f32 %v1933_v48, %v1932_v4  ;;  %v1998_v11 = vadd.f32 %v1997_v7, %v1996_v5  ;;  %v1935_v12 = vpop.f32.mrb[42].mxu1  ;;  %v1999_v13 = vpop.f32.mrb[42].mxu0 }
 0x148   :  { %v1936_v16 = vpop.f32.mrb[43].mxu1  ;;  %v2000_v17 = vpop.f32.mrb[43].mxu0 }
 0x149   :  { %v1315_v49 = vadd.f32 %v1934_v54, %v2860_v61  ;;  %v1937_v18 = vadd.f32 %v1936_v16, %v1935_v12  ;;  %v2001_v19 = vadd.f32 %v2000_v17, %v1999_v13 }
 0x14b   :  { %v2903_v20 = vadd.f32 %v1998_v11, %v1315_v49  ;;  %v1318_v55 = vadd.f32 %v1937_v18, %v2862_v3 }
 0x14d   :  { %v2906_v21 = vadd.f32 %v2001_v19, %v1318_v55  ;;  %v1938_v22 = vpop.f32.mrb[44].mxu1  ;;  %v2002_v60 = vpop.f32.mrb[44].mxu0 }
 0x14e   :  { %v1939_v23 = vpop.f32.mrb[45].mxu1  ;;  %v2003_v2 = vpop.f32.mrb[45].mxu0 }
 0x14f   :  { %v1940_v26 = vadd.f32 %v1939_v23, %v1938_v22  ;;  %v2004_v27 = vadd.f32 %v2003_v2, %v2002_v60  ;;  %v1941_v28 = vpop.f32.mrb[46].mxu1  ;;  %v2005_v30 = vpop.f32.mrb[46].mxu0 }
 0x150   :  { %v1942_v32 = vpop.f32.mrb[47].mxu1  ;;  %v2006_v33 = vpop.f32.mrb[47].mxu0 }
 0x151   :  { %v1323_v61 = vadd.f32 %v1940_v26, %v2866_v9  ;;  %v1943_v34 = vadd.f32 %v1942_v32, %v1941_v28  ;;  %v2007_v35 = vadd.f32 %v2006_v33, %v2005_v30 }
 0x153   :  { %v2909_v38 = vadd.f32 %v2004_v27, %v1323_v61  ;;  %v1326_v3 = vadd.f32 %v1943_v34, %v2870_v15 }
 0x155   :  { %v2912_v39 = vadd.f32 %v2007_v35, %v1326_v3  ;;  %v2024_v8 = vpop.f32.mrb[48].mxu1  ;;  %v2088_v40 = vpop.f32.mrb[48].mxu0 }
 0x156   :  { %v2025_v41 = vpop.f32.mrb[49].mxu1  ;;  %v2089_v14 = vpop.f32.mrb[49].mxu0 }
 0x157   :  { %v2026_v46 = vadd.f32 %v2025_v41, %v2024_v8  ;;  %v2090_v47 = vadd.f32 %v2089_v14, %v2088_v40  ;;  %v2027_v36 = vpop.f32.mrb[50].mxu1  ;;  %v2091_v51 = vpop.f32.mrb[50].mxu0 }
 0x158   :  { %v2028_v42 = vpop.f32.mrb[51].mxu1  ;;  %v2092_v53 = vpop.f32.mrb[51].mxu0 }
 0x159   :  { %v1461_v9 = vadd.f32 %v2026_v46, %v2872_v29  ;;  %v2029_v56 = vadd.f32 %v2028_v42, %v2027_v36  ;;  %v2093_v57 = vadd.f32 %v2092_v53, %v2091_v51 }
 0x15b   :  { %v2915_v58 = vadd.f32 %v2090_v47, %v1461_v9  ;;  %v1464_v15 = vadd.f32 %v2029_v56, %v2874_v31 }
 0x15d   :  { %v2918_v59 = vadd.f32 %v2093_v57, %v1464_v15  ;;  %v2030_v37 = vpop.f32.mrb[52].mxu1  ;;  %v2094_v62 = vpop.f32.mrb[52].mxu0 }
 0x15e   :  { %v2031_v63 = vpop.f32.mrb[53].mxu1  ;;  %v2095_v43 = vpop.f32.mrb[53].mxu0 }
 0x15f   :  { %v2032_v4 = vadd.f32 %v2031_v63, %v2030_v37  ;;  %v2096_v5 = vadd.f32 %v2095_v43, %v2094_v62  ;;  %v2033_v48 = vpop.f32.mrb[54].mxu1  ;;  %v2097_v7 = vpop.f32.mrb[54].mxu0 }
 0x160   :  { %v2034_v54 = vpop.f32.mrb[55].mxu1  ;;  %v2098_v11 = vpop.f32.mrb[55].mxu0 }
 0x161   :  { %v1469_v29 = vadd.f32 %v2032_v4, %v2876_v50  ;;  %v2035_v12 = vadd.f32 %v2034_v54, %v2033_v48  ;;  %v2099_v13 = vadd.f32 %v2098_v11, %v2097_v7 }
 0x163   :  { %v2921_v16 = vadd.f32 %v2096_v5, %v1469_v29  ;;  %v1472_v31 = vadd.f32 %v2035_v12, %v2878_v52 }
 0x165   :  { %v2924_v17 = vadd.f32 %v2099_v13, %v1472_v31  ;;  %v2036_v49 = vpop.f32.mrb[56].mxu1  ;;  %v2100_v18 = vpop.f32.mrb[56].mxu0 }
 0x166   :  { %v2037_v19 = vpop.f32.mrb[57].mxu1  ;;  %v2101_v55 = vpop.f32.mrb[57].mxu0 }
 0x167   :  { %v2038_v22 = vadd.f32 %v2037_v19, %v2036_v49  ;;  %v2102_v60 = vadd.f32 %v2101_v55, %v2100_v18  ;;  %v2039_v23 = vpop.f32.mrb[58].mxu1  ;;  %v2103_v2 = vpop.f32.mrb[58].mxu0 }
 0x168   :  { %v2040_v26 = vpop.f32.mrb[59].mxu1  ;;  %v2104_v27 = vpop.f32.mrb[59].mxu0 }
 0x169   :  { %v1477_v50 = vadd.f32 %v2038_v22, %v2880_v6  ;;  %v2041_v28 = vadd.f32 %v2040_v26, %v2039_v23  ;;  %v2105_v30 = vadd.f32 %v2104_v27, %v2103_v2 }
 0x16b   :  { %v2927_v32 = vadd.f32 %v2102_v60, %v1477_v50  ;;  %v1480_v52 = vadd.f32 %v2041_v28, %v2882_v10 }
 0x16d   :  { %v1620_v33 = vmax.f32 %v2915_v58, %v2927_v32  ;;  %v2932_v61 = vadd.f32 %v2105_v30, %v1480_v52  ;;  %v2042_v34 = vpop.f32.mrb[60].mxu1  ;;  %v2106_v35 = vpop.f32.mrb[60].mxu0 }
 0x16e   :  { %v2043_v3 = vpop.f32.mrb[61].mxu1  ;;  %v2107_v8 = vpop.f32.mrb[61].mxu0 }
 0x16f   :  { %v1621_v40 = vmax.f32 %v2918_v59, %v2932_v61  ;;  %v2044_v41 = vadd.f32 %v2043_v3, %v2042_v34  ;;  %v2108_v6 = vadd.f32 %v2107_v8, %v2106_v35  ;;  %v2045_v14 = vpop.f32.mrb[62].mxu1  ;;  %v2109_v46 = vpop.f32.mrb[62].mxu0 }
 0x170   :  { %v2046_v47 = vpop.f32.mrb[63].mxu1  ;;  %v2110_v36 = vpop.f32.mrb[63].mxu0 }
 0x171   :  { %v1485_v10 = vadd.f32 %v2044_v41, %v2885_v24  ;;  %v2047_v51 = vadd.f32 %v2046_v47, %v2045_v14  ;;  %v2111_v42 = vadd.f32 %v2110_v36, %v2109_v46 }
 0x173   :  { %v2937_v53 = vadd.f32 %v2108_v6, %v1485_v10  ;;  %v1488_v9 = vadd.f32 %v2047_v51, %v2888_v25 }
 0x175   :  { %v1622_v56 = vmax.f32 %v2921_v16, %v2937_v53  ;;  %v2942_v57 = vadd.f32 %v2111_v42, %v1488_v9  ;;  %v2048_v15 = vpop.f32.mrb[64].mxu1  ;;  %v2112_v37 = vpop.f32.mrb[64].mxu0 }
 0x176   :  { %v2049_v62 = vpop.f32.mrb[65].mxu1  ;;  %v2113_v63 = vpop.f32.mrb[65].mxu0 }
 0x177   :  { %v1623_v43 = vmax.f32 %v2924_v17, %v2942_v57  ;;  %v2050_v4 = vadd.f32 %v2049_v62, %v2048_v15  ;;  %v2114_v24 = vadd.f32 %v2113_v63, %v2112_v37  ;;  %v2051_v5 = vpop.f32.mrb[66].mxu1  ;;  %v2115_v48 = vpop.f32.mrb[66].mxu0  ;;  %v1815_v63 = vld [vmem:[%s2983_s2] ss:$0 sm:$0xff] }
 0x178   :  { %v2052_v7 = vpop.f32.mrb[67].mxu1  ;;  %v2116_v54 = vpop.f32.mrb[67].mxu0 }
 0x179   :  { %v1493_v25 = vadd.f32 %v2050_v4, %v2891_v44  ;;  %v2053_v11 = vadd.f32 %v2052_v7, %v2051_v5  ;;  %v2117_v29 = vadd.f32 %v2116_v54, %v2115_v48 }
 0x17b   :  { %v1590_v12 = vadd.f32 %v2114_v24, %v1493_v25  ;;  %v1496_v13 = vadd.f32 %v2053_v11, %v2894_v45 }
 0x17d   :  { %v1593_v31 = vadd.f32 %v2117_v29, %v1496_v13  ;;  %v2054_v49 = vpop.f32.mrb[68].mxu1  ;;  %v2118_v18 = vpop.f32.mrb[68].mxu0 }
 0x17e   :  { %v2055_v19 = vpop.f32.mrb[69].mxu1  ;;  %v2119_v55 = vpop.f32.mrb[69].mxu0 }
 0x17f   :  { %v2056_v22 = vadd.f32 %v2055_v19, %v2054_v49  ;;  %v2120_v60 = vadd.f32 %v2119_v55, %v2118_v18  ;;  %v2057_v23 = vpop.f32.mrb[70].mxu1  ;;  %v2121_v2 = vpop.f32.mrb[70].mxu0 }
 0x180   :  { %v2058_v26 = vpop.f32.mrb[71].mxu1  ;;  %v2122_v27 = vpop.f32.mrb[71].mxu0 }
 0x181   :  { %v1501_v50 = vadd.f32 %v2056_v22, %v2897_v0  ;;  %v2059_v28 = vadd.f32 %v2058_v26, %v2057_v23  ;;  %v2123_v44 = vadd.f32 %v2122_v27, %v2121_v2 }
 0x183   :  { %v1598_v30 = vadd.f32 %v2120_v60, %v1501_v50  ;;  %v1504_v52 = vadd.f32 %v2059_v28, %v2900_v1 }
 0x185   :  { %v1601_v34 = vadd.f32 %v2123_v44, %v1504_v52  ;;  %v2060_v45 = vpop.f32.mrb[72].mxu1  ;;  %v2124_v35 = vpop.f32.mrb[72].mxu0 }
 0x186   :  { %v2061_v3 = vpop.f32.mrb[73].mxu1  ;;  %v2125_v8 = vpop.f32.mrb[73].mxu0 }
 0x187   :  { %v2062_v41 = vadd.f32 %v2061_v3, %v2060_v45  ;;  %v2126_v6 = vadd.f32 %v2125_v8, %v2124_v35  ;;  %v2063_v14 = vpop.f32.mrb[74].mxu1  ;;  %v2127_v46 = vpop.f32.mrb[74].mxu0 }
 0x188   :  { %v2064_v47 = vpop.f32.mrb[75].mxu1  ;;  %v2128_v36 = vpop.f32.mrb[75].mxu0 }
 0x189   :  { %v1509_v10 = vadd.f32 %v2062_v41, %v2903_v20  ;;  %v2065_v51 = vadd.f32 %v2064_v47, %v2063_v14  ;;  %v2129_v0 = vadd.f32 %v2128_v36, %v2127_v46 }
 0x18b   :  { %v1606_v42 = vadd.f32 %v2126_v6, %v1509_v10  ;;  %v1512_v9 = vadd.f32 %v2065_v51, %v2906_v21 }
 0x18d   :  { %v1624_v15 = vmax.f32 %v1590_v12, %v1606_v42  ;;  %v1609_v1 = vadd.f32 %v2129_v0, %v1512_v9  ;;  %v2066_v37 = vpop.f32.mrb[76].mxu1  ;;  %v2130_v62 = vpop.f32.mrb[76].mxu0 }
 0x18e   :  { %v2067_v4 = vpop.f32.mrb[77].mxu1  ;;  %v2131_v24 = vpop.f32.mrb[77].mxu0 }
 0x18f   :  { %v1628_v5 = vmax.f32 %v1620_v33, %v1624_v15  ;;  %v1625_v20 = vmax.f32 %v1593_v31, %v1609_v1  ;;  %v2068_v48 = vadd.f32 %v2067_v4, %v2066_v37  ;;  %v2132_v7 = vadd.f32 %v2131_v24, %v2130_v62  ;;  %v2069_v54 = vpop.f32.mrb[78].mxu1  ;;  %v2133_v25 = vpop.f32.mrb[78].mxu0 }
 0x190   :  { %v2070_v21 = vpop.f32.mrb[79].mxu1  ;;  %v2134_v11 = vpop.f32.mrb[79].mxu0 }
 0x191   :  { %v1639_v29 = vadd.f32 %v1815_v63, %v1628_v5  ;;  %v1629_v12 = vmax.f32 %v1621_v40, %v1625_v20  ;;  %v1517_v13 = vadd.f32 %v2068_v48, %v2909_v38  ;;  %v2071_v49 = vadd.f32 %v2070_v21, %v2069_v54 }
 0x192   :  { %v2135_v18 = vadd.f32 %v2134_v11, %v2133_v25 }
 0x193   :  { %v1643_v19 = vmax.f32 %v1639_v29, 0.0  ;;  %v1640_v55 = vadd.f32 %v1815_v63, %v1629_v12  ;;  %v1614_v58 = vadd.f32 %v2132_v7, %v1517_v13  ;;  %v1520_v32 = vadd.f32 %v2071_v49, %v2912_v39 }
 0x195   :  { %1647 = vst [vmem:[%s2984_s3] sm:$0xff] %v1643_v19  ;;  %v1644_v33 = vmax.f32 %v1640_v55, 0.0  ;;  %v1626_v31 = vmax.f32 %v1598_v30, %v1614_v58  ;;  %v1617_v22 = vadd.f32 %v2135_v18, %v1520_v32 }
 0x197   :  { %1648 = vst [vmem:[%s2984_s3 + $0x8] sm:$0xff] %v1644_v33  ;;  %v1630_v38 = vmax.f32 %v1622_v56, %v1626_v31  ;;  %v1627_v59 = vmax.f32 %v1601_v34, %v1617_v22 }
 0x199   :  { %v1641_v61 = vadd.f32 %v1815_v63, %v1630_v38  ;;  %v1631_v39 = vmax.f32 %v1623_v43, %v1627_v59 }
 0x19b   :  { %v1645_v40 = vmax.f32 %v1641_v61, 0.0  ;;  %v1642_v60 = vadd.f32 %v1815_v63, %v1631_v39 }
 0x19d   :  { %1649 = vst [vmem:[%s2984_s3 + $0x10] sm:$0xff] %v1645_v40  ;;  %v1646_v23 = vmax.f32 %v1642_v60, 0.0 }
 0x19f   :  { %1650 = vst [vmem:[%s2984_s3 + $0x18] sm:$0xff] %v1646_v23 }

</bundles_post_ra>
